<compile_context>
chip_gen: v6e
topology: v6e:2x2x1
jax: 0.10.0
libtpu: 0.0.40
codegen_flags: <defaults>
</compile_context>

<pallas_src>
import numpy as np
import jax
import jax.numpy as jnp
from jax import lax
from jax.experimental import pallas as pl
from jax.experimental.pallas import tpu as pltpu


def _band_matrices(conv_weight, H, W, ks):
    """Matmul operands realizing a (2 -> 1) ks x ks conv with pad = ks // 2.

    Returns:
      bw: (2, ks, W, W)  column-direction band matrices (weight-dependent).
      sh: (ks, H, H)     row-direction 0/1 shift matrices.
    such that  conv(feat)[h, w] = (sum_i sh[i] @ (sum_c feat[c] @ bw[c, i]))[h, w]
    matches PyTorch Conv2d (cross-correlation, zero padding, no bias).
    """
    pad = ks // 2
    k = conv_weight.reshape(2, ks, ks).astype(jnp.float32)

    wi = np.arange(W)[:, None]
    wo = np.arange(W)[None, :]
    d = wi - wo + pad                                        # (W, W)
    valid = ((d >= 0) & (d < ks)).astype(np.float32)
    d_clip = np.clip(d, 0, ks - 1)
    bw = k[:, :, d_clip] * jnp.asarray(valid, jnp.float32)   # (2, ks, W, W)

    i_ = np.arange(ks)[:, None, None]
    h_ = np.arange(H)[None, :, None]
    hp = np.arange(H)[None, None, :]
    sh = jnp.asarray((hp == h_ + i_ - pad).astype(np.float32))  # (ks, H, H)
    return bw, sh


def spatial_attention(x, conv_weight, *, kernel_size=7, block_bytes=2 << 20):
    """x: (B, C, H, W) f32 (NCHW).  conv_weight: (1, 2, ks, ks) f32 (no bias)."""
    B, C, H, W = x.shape
    ks = kernel_size
    assert conv_weight.shape == (1, 2, ks, ks)

    bw, sh = _band_matrices(conv_weight, H, W, ks)

    # Fold several batches into one block to amortize the ~0.35us per-grid-step
    # overhead, while keeping (in + out, double-buffered) well under the default
    # scoped VMEM limit on v5e/v6e/v7x.
    per_batch = C * H * W * 4
    bt = 1
    for cand in range(min(B, 8), 0, -1):
        if B % cand == 0 and cand * per_batch <= block_bytes:
            bt = cand
            break

    inv_c = np.float32(1.0 / C)

    def kernel(x_ref, bw_ref, sh_ref, o_ref):
        for b in range(bt):
            xb = x_ref[b]                                    # (C, H, W)
            # Channel-wise mean / max: leading-axis reductions -> VPU only.
            mean_map = jnp.sum(xb, axis=0) * inv_c           # (H, W)
            max_map = jnp.max(xb, axis=0)                    # (H, W)
            # ks x ks conv as 3*ks small MXU matmuls.
            att = None
            for i in range(ks):
                m_i = jnp.dot(mean_map, bw_ref[0, i],
                              precision=lax.Precision.HIGHEST,
                              preferred_element_type=jnp.float32)
                m_i = m_i + jnp.dot(max_map, bw_ref[1, i],
                                    precision=lax.Precision.HIGHEST,
                                    preferred_element_type=jnp.float32)
                t_i = jnp.dot(sh_ref[i], m_i,
                              precision=lax.Precision.HIGHEST,
                              preferred_element_type=jnp.float32)
                att = t_i if att is None else att + t_i
            gate = jax.nn.sigmoid(att)                       # (H, W), EUP
            # Modulate input: single load-mul-store over the full tile.
            o_ref[b] = xb * gate[None, :, :]

    out = pl.pallas_call(
        kernel,
        out_shape=jax.ShapeDtypeStruct((B, C, H, W), jnp.float32),
        grid=(B // bt,),
        in_specs=[
            pl.BlockSpec((bt, C, H, W), lambda b: (b, 0, 0, 0)),   # x
            pl.BlockSpec((2, ks, W, W), lambda b: (0, 0, 0, 0)),   # band matrices
            pl.BlockSpec((ks, H, H), lambda b: (0, 0, 0)),         # shift matrices
        ],
        out_specs=pl.BlockSpec((bt, C, H, W), lambda b: (b, 0, 0, 0)),
        compiler_params=pltpu.CompilerParams(
            dimension_semantics=("parallel",)),
    )(x, bw, sh)
    return out


def reference(x, conv_weight, *, kernel_size=7):
    """Pure-JAX reference mirroring the PyTorch forward."""
    pad = kernel_size // 2
    mean = jnp.mean(x, axis=1, keepdims=True)
    mx = jnp.max(x, axis=1, keepdims=True)
    feat = jnp.concatenate([mean, mx], axis=1)               # (B, 2, H, W)
    conv = lax.conv_general_dilated(
        feat, conv_weight, window_strides=(1, 1),
        padding=[(pad, pad), (pad, pad)],
        dimension_numbers=("NCHW", "OIHW", "NCHW"),
        precision=lax.Precision.HIGHEST)                     # (B, 1, H, W)
    return x * jax.nn.sigmoid(conv)


if __name__ == "__main__":
    key = jax.random.PRNGKey(0)
    B, C, H, W = 2, 8, 16, 16
    ks = 7

    kx, kw = jax.random.split(key)
    x = jax.random.normal(kx, (B, C, H, W), jnp.float32)
    # Conv2d default init: kaiming_uniform(a=sqrt(5)) => U(-1/sqrt(fan_in), 1/sqrt(fan_in))
    bound = 1.0 / np.sqrt(2 * ks * ks)
    conv_weight = jax.random.uniform(kw, (1, 2, ks, ks), jnp.float32, -bound, bound)

    out = jax.block_until_ready(spatial_attention(x, conv_weight, kernel_size=ks))
    ref = jax.block_until_ready(reference(x, conv_weight, kernel_size=ks))

    assert out.shape == (B, C, H, W)
    err = float(jnp.max(jnp.abs(out - ref)))
    assert err < 1e-3, f"mismatch vs JAX reference: max abs err {err}"
    print("KERNEL_OK")
</pallas_src>

<mosaic_0001>
module attributes {stable_mosaic.version = 11 : i64} {
  func.func @kernel(%arg0: i32, %arg1: memref<2x8x16x16xf32, #tpu.memory_space<vmem>>, %arg2: memref<2x7x16x16xf32, #tpu.memory_space<vmem>>, %arg3: memref<7x16x16xf32, #tpu.memory_space<vmem>>, %arg4: memref<2x8x16x16xf32, #tpu.memory_space<vmem>>) attributes {dimension_semantics = [#tpu.dimension_semantics<parallel>], iteration_bounds = array<i64: 1>, scalar_prefetch = 0 : i64, scratch_operands = 0 : i64, tpu.core_type = #tpu.core_type<tc>, window_params = [{transform_indices = @transform_0, window_bounds = array<i64: 2, 8, 16, 16>}, {pipeline_mode = #tpu.pipeline_mode<synchronous>, transform_indices = @transform_1, window_bounds = array<i64: 2, 7, 16, 16>}, {pipeline_mode = #tpu.pipeline_mode<synchronous>, transform_indices = @transform_2, window_bounds = array<i64: 7, 16, 16>}, {transform_indices = @transform_3, window_bounds = array<i64: 2, 8, 16, 16>}]} {
    %c0 = arith.constant 0 : index
    %c0_0 = arith.constant 0 : index
    %c0_1 = arith.constant 0 : index
    %c0_2 = arith.constant 0 : index
    %0 = vector.load %arg1[%c0, %c0_0, %c0_1, %c0_2] : memref<2x8x16x16xf32, #tpu.memory_space<vmem>>, vector<1x8x16x16xf32>
    %1 = vector.shape_cast %0 : vector<1x8x16x16xf32> to vector<8x16x16xf32>
    %cst = arith.constant dense<0.000000e+00> : vector<16x16xf32>
    %2 = vector.multi_reduction <add>, %1, %cst [0] : vector<8x16x16xf32> to vector<16x16xf32>
    %cst_3 = arith.constant 1.250000e-01 : f32
    %3 = vector.broadcast %cst_3 : f32 to vector<16x16xf32>
    %4 = arith.mulf %2, %3 : vector<16x16xf32>
    %cst_4 = arith.constant dense<0xFF800000> : vector<16x16xf32>
    %5 = vector.multi_reduction <maximumf>, %1, %cst_4 [0] : vector<8x16x16xf32> to vector<16x16xf32>
    %c0_5 = arith.constant 0 : index
    %c0_6 = arith.constant 0 : index
    %c0_7 = arith.constant 0 : index
    %c0_8 = arith.constant 0 : index
    %6 = vector.load %arg2[%c0_5, %c0_6, %c0_7, %c0_8] : memref<2x7x16x16xf32, #tpu.memory_space<vmem>>, vector<1x1x16x16xf32>
    %7 = vector.shape_cast %6 : vector<1x1x16x16xf32> to vector<16x16xf32>
    %cst_9 = arith.constant dense<0.000000e+00> : vector<16x16xf32>
    %8 = tpu.matmul %4, %7, %cst_9 {dimension_numbers = #tpu.dot_dimension_numbers<[1], [0], [0], [1], [0, 0, 1, 1], [], []>, precision = #tpu.contract_precision<fp32>} : vector<16x16xf32>, vector<16x16xf32>, vector<16x16xf32> -> vector<16x16xf32>
    %c1 = arith.constant 1 : index
    %c0_10 = arith.constant 0 : index
    %c0_11 = arith.constant 0 : index
    %c0_12 = arith.constant 0 : index
    %9 = vector.load %arg2[%c1, %c0_10, %c0_11, %c0_12] : memref<2x7x16x16xf32, #tpu.memory_space<vmem>>, vector<1x1x16x16xf32>
    %10 = vector.shape_cast %9 : vector<1x1x16x16xf32> to vector<16x16xf32>
    %cst_13 = arith.constant dense<0.000000e+00> : vector<16x16xf32>
    %11 = tpu.matmul %5, %10, %cst_13 {dimension_numbers = #tpu.dot_dimension_numbers<[1], [0], [0], [1], [0, 0, 1, 1], [], []>, precision = #tpu.contract_precision<fp32>} : vector<16x16xf32>, vector<16x16xf32>, vector<16x16xf32> -> vector<16x16xf32>
    %12 = arith.addf %8, %11 : vector<16x16xf32>
    %c0_14 = arith.constant 0 : index
    %c0_15 = arith.constant 0 : index
    %c0_16 = arith.constant 0 : index
    %13 = vector.load %arg3[%c0_14, %c0_15, %c0_16] : memref<7x16x16xf32, #tpu.memory_space<vmem>>, vector<1x16x16xf32>
    %14 = vector.shape_cast %13 : vector<1x16x16xf32> to vector<16x16xf32>
    %cst_17 = arith.constant dense<0.000000e+00> : vector<16x16xf32>
    %15 = tpu.matmul %14, %12, %cst_17 {dimension_numbers = #tpu.dot_dimension_numbers<[1], [0], [0], [1], [0, 0, 1, 1], [], []>, precision = #tpu.contract_precision<fp32>} : vector<16x16xf32>, vector<16x16xf32>, vector<16x16xf32> -> vector<16x16xf32>
    %c0_18 = arith.constant 0 : index
    %c1_19 = arith.constant 1 : index
    %c0_20 = arith.constant 0 : index
    %c0_21 = arith.constant 0 : index
    %16 = vector.load %arg2[%c0_18, %c1_19, %c0_20, %c0_21] : memref<2x7x16x16xf32, #tpu.memory_space<vmem>>, vector<1x1x16x16xf32>
    %17 = vector.shape_cast %16 : vector<1x1x16x16xf32> to vector<16x16xf32>
    %cst_22 = arith.constant dense<0.000000e+00> : vector<16x16xf32>
    %18 = tpu.matmul %4, %17, %cst_22 {dimension_numbers = #tpu.dot_dimension_numbers<[1], [0], [0], [1], [0, 0, 1, 1], [], []>, precision = #tpu.contract_precision<fp32>} : vector<16x16xf32>, vector<16x16xf32>, vector<16x16xf32> -> vector<16x16xf32>
    %c1_23 = arith.constant 1 : index
    %c1_24 = arith.constant 1 : index
    %c0_25 = arith.constant 0 : index
    %c0_26 = arith.constant 0 : index
    %19 = vector.load %arg2[%c1_23, %c1_24, %c0_25, %c0_26] : memref<2x7x16x16xf32, #tpu.memory_space<vmem>>, vector<1x1x16x16xf32>
    %20 = vector.shape_cast %19 : vector<1x1x16x16xf32> to vector<16x16xf32>
    %cst_27 = arith.constant dense<0.000000e+00> : vector<16x16xf32>
    %21 = tpu.matmul %5, %20, %cst_27 {dimension_numbers = #tpu.dot_dimension_numbers<[1], [0], [0], [1], [0, 0, 1, 1], [], []>, precision = #tpu.contract_precision<fp32>} : vector<16x16xf32>, vector<16x16xf32>, vector<16x16xf32> -> vector<16x16xf32>
    %22 = arith.addf %18, %21 : vector<16x16xf32>
    %c1_28 = arith.constant 1 : index
    %c0_29 = arith.constant 0 : index
    %c0_30 = arith.constant 0 : index
    %23 = vector.load %arg3[%c1_28, %c0_29, %c0_30] : memref<7x16x16xf32, #tpu.memory_space<vmem>>, vector<1x16x16xf32>
    %24 = vector.shape_cast %23 : vector<1x16x16xf32> to vector<16x16xf32>
    %cst_31 = arith.constant dense<0.000000e+00> : vector<16x16xf32>
    %25 = tpu.matmul %24, %22, %cst_31 {dimension_numbers = #tpu.dot_dimension_numbers<[1], [0], [0], [1], [0, 0, 1, 1], [], []>, precision = #tpu.contract_precision<fp32>} : vector<16x16xf32>, vector<16x16xf32>, vector<16x16xf32> -> vector<16x16xf32>
    %26 = arith.addf %15, %25 : vector<16x16xf32>
    %c0_32 = arith.constant 0 : index
    %c2 = arith.constant 2 : index
    %c0_33 = arith.constant 0 : index
    %c0_34 = arith.constant 0 : index
    %27 = vector.load %arg2[%c0_32, %c2, %c0_33, %c0_34] : memref<2x7x16x16xf32, #tpu.memory_space<vmem>>, vector<1x1x16x16xf32>
    %28 = vector.shape_cast %27 : vector<1x1x16x16xf32> to vector<16x16xf32>
    %cst_35 = arith.constant dense<0.000000e+00> : vector<16x16xf32>
    %29 = tpu.matmul %4, %28, %cst_35 {dimension_numbers = #tpu.dot_dimension_numbers<[1], [0], [0], [1], [0, 0, 1, 1], [], []>, precision = #tpu.contract_precision<fp32>} : vector<16x16xf32>, vector<16x16xf32>, vector<16x16xf32> -> vector<16x16xf32>
    %c1_36 = arith.constant 1 : index
    %c2_37 = arith.constant 2 : index
    %c0_38 = arith.constant 0 : index
    %c0_39 = arith.constant 0 : index
    %30 = vector.load %arg2[%c1_36, %c2_37, %c0_38, %c0_39] : memref<2x7x16x16xf32, #tpu.memory_space<vmem>>, vector<1x1x16x16xf32>
    %31 = vector.shape_cast %30 : vector<1x1x16x16xf32> to vector<16x16xf32>
    %cst_40 = arith.constant dense<0.000000e+00> : vector<16x16xf32>
    %32 = tpu.matmul %5, %31, %cst_40 {dimension_numbers = #tpu.dot_dimension_numbers<[1], [0], [0], [1], [0, 0, 1, 1], [], []>, precision = #tpu.contract_precision<fp32>} : vector<16x16xf32>, vector<16x16xf32>, vector<16x16xf32> -> vector<16x16xf32>
    %33 = arith.addf %29, %32 : vector<16x16xf32>
    %c2_41 = arith.constant 2 : index
    %c0_42 = arith.constant 0 : index
    %c0_43 = arith.constant 0 : index
    %34 = vector.load %arg3[%c2_41, %c0_42, %c0_43] : memref<7x16x16xf32, #tpu.memory_space<vmem>>, vector<1x16x16xf32>
    %35 = vector.shape_cast %34 : vector<1x16x16xf32> to vector<16x16xf32>
    %cst_44 = arith.constant dense<0.000000e+00> : vector<16x16xf32>
    %36 = tpu.matmul %35, %33, %cst_44 {dimension_numbers = #tpu.dot_dimension_numbers<[1], [0], [0], [1], [0, 0, 1, 1], [], []>, precision = #tpu.contract_precision<fp32>} : vector<16x16xf32>, vector<16x16xf32>, vector<16x16xf32> -> vector<16x16xf32>
    %37 = arith.addf %26, %36 : vector<16x16xf32>
    %c0_45 = arith.constant 0 : index
    %c3 = arith.constant 3 : index
    %c0_46 = arith.constant 0 : index
    %c0_47 = arith.constant 0 : index
    %38 = vector.load %arg2[%c0_45, %c3, %c0_46, %c0_47] : memref<2x7x16x16xf32, #tpu.memory_space<vmem>>, vector<1x1x16x16xf32>
    %39 = vector.shape_cast %38 : vector<1x1x16x16xf32> to vector<16x16xf32>
    %cst_48 = arith.constant dense<0.000000e+00> : vector<16x16xf32>
    %40 = tpu.matmul %4, %39, %cst_48 {dimension_numbers = #tpu.dot_dimension_numbers<[1], [0], [0], [1], [0, 0, 1, 1], [], []>, precision = #tpu.contract_precision<fp32>} : vector<16x16xf32>, vector<16x16xf32>, vector<16x16xf32> -> vector<16x16xf32>
    %c1_49 = arith.constant 1 : index
    %c3_50 = arith.constant 3 : index
    %c0_51 = arith.constant 0 : index
    %c0_52 = arith.constant 0 : index
    %41 = vector.load %arg2[%c1_49, %c3_50, %c0_51, %c0_52] : memref<2x7x16x16xf32, #tpu.memory_space<vmem>>, vector<1x1x16x16xf32>
    %42 = vector.shape_cast %41 : vector<1x1x16x16xf32> to vector<16x16xf32>
    %cst_53 = arith.constant dense<0.000000e+00> : vector<16x16xf32>
    %43 = tpu.matmul %5, %42, %cst_53 {dimension_numbers = #tpu.dot_dimension_numbers<[1], [0], [0], [1], [0, 0, 1, 1], [], []>, precision = #tpu.contract_precision<fp32>} : vector<16x16xf32>, vector<16x16xf32>, vector<16x16xf32> -> vector<16x16xf32>
    %44 = arith.addf %40, %43 : vector<16x16xf32>
    %c3_54 = arith.constant 3 : index
    %c0_55 = arith.constant 0 : index
    %c0_56 = arith.constant 0 : index
    %45 = vector.load %arg3[%c3_54, %c0_55, %c0_56] : memref<7x16x16xf32, #tpu.memory_space<vmem>>, vector<1x16x16xf32>
    %46 = vector.shape_cast %45 : vector<1x16x16xf32> to vector<16x16xf32>
    %cst_57 = arith.constant dense<0.000000e+00> : vector<16x16xf32>
    %47 = tpu.matmul %46, %44, %cst_57 {dimension_numbers = #tpu.dot_dimension_numbers<[1], [0], [0], [1], [0, 0, 1, 1], [], []>, precision = #tpu.contract_precision<fp32>} : vector<16x16xf32>, vector<16x16xf32>, vector<16x16xf32> -> vector<16x16xf32>
    %48 = arith.addf %37, %47 : vector<16x16xf32>
    %c0_58 = arith.constant 0 : index
    %c4 = arith.constant 4 : index
    %c0_59 = arith.constant 0 : index
    %c0_60 = arith.constant 0 : index
    %49 = vector.load %arg2[%c0_58, %c4, %c0_59, %c0_60] : memref<2x7x16x16xf32, #tpu.memory_space<vmem>>, vector<1x1x16x16xf32>
    %50 = vector.shape_cast %49 : vector<1x1x16x16xf32> to vector<16x16xf32>
    %cst_61 = arith.constant dense<0.000000e+00> : vector<16x16xf32>
    %51 = tpu.matmul %4, %50, %cst_61 {dimension_numbers = #tpu.dot_dimension_numbers<[1], [0], [0], [1], [0, 0, 1, 1], [], []>, precision = #tpu.contract_precision<fp32>} : vector<16x16xf32>, vector<16x16xf32>, vector<16x16xf32> -> vector<16x16xf32>
    %c1_62 = arith.constant 1 : index
    %c4_63 = arith.constant 4 : index
    %c0_64 = arith.constant 0 : index
    %c0_65 = arith.constant 0 : index
    %52 = vector.load %arg2[%c1_62, %c4_63, %c0_64, %c0_65] : memref<2x7x16x16xf32, #tpu.memory_space<vmem>>, vector<1x1x16x16xf32>
    %53 = vector.shape_cast %52 : vector<1x1x16x16xf32> to vector<16x16xf32>
    %cst_66 = arith.constant dense<0.000000e+00> : vector<16x16xf32>
    %54 = tpu.matmul %5, %53, %cst_66 {dimension_numbers = #tpu.dot_dimension_numbers<[1], [0], [0], [1], [0, 0, 1, 1], [], []>, precision = #tpu.contract_precision<fp32>} : vector<16x16xf32>, vector<16x16xf32>, vector<16x16xf32> -> vector<16x16xf32>
    %55 = arith.addf %51, %54 : vector<16x16xf32>
    %c4_67 = arith.constant 4 : index
    %c0_68 = arith.constant 0 : index
    %c0_69 = arith.constant 0 : index
    %56 = vector.load %arg3[%c4_67, %c0_68, %c0_69] : memref<7x16x16xf32, #tpu.memory_space<vmem>>, vector<1x16x16xf32>
    %57 = vector.shape_cast %56 : vector<1x16x16xf32> to vector<16x16xf32>
    %cst_70 = arith.constant dense<0.000000e+00> : vector<16x16xf32>
    %58 = tpu.matmul %57, %55, %cst_70 {dimension_numbers = #tpu.dot_dimension_numbers<[1], [0], [0], [1], [0, 0, 1, 1], [], []>, precision = #tpu.contract_precision<fp32>} : vector<16x16xf32>, vector<16x16xf32>, vector<16x16xf32> -> vector<16x16xf32>
    %59 = arith.addf %48, %58 : vector<16x16xf32>
    %c0_71 = arith.constant 0 : index
    %c5 = arith.constant 5 : index
    %c0_72 = arith.constant 0 : index
    %c0_73 = arith.constant 0 : index
    %60 = vector.load %arg2[%c0_71, %c5, %c0_72, %c0_73] : memref<2x7x16x16xf32, #tpu.memory_space<vmem>>, vector<1x1x16x16xf32>
    %61 = vector.shape_cast %60 : vector<1x1x16x16xf32> to vector<16x16xf32>
    %cst_74 = arith.constant dense<0.000000e+00> : vector<16x16xf32>
    %62 = tpu.matmul %4, %61, %cst_74 {dimension_numbers = #tpu.dot_dimension_numbers<[1], [0], [0], [1], [0, 0, 1, 1], [], []>, precision = #tpu.contract_precision<fp32>} : vector<16x16xf32>, vector<16x16xf32>, vector<16x16xf32> -> vector<16x16xf32>
    %c1_75 = arith.constant 1 : index
    %c5_76 = arith.constant 5 : index
    %c0_77 = arith.constant 0 : index
    %c0_78 = arith.constant 0 : index
    %63 = vector.load %arg2[%c1_75, %c5_76, %c0_77, %c0_78] : memref<2x7x16x16xf32, #tpu.memory_space<vmem>>, vector<1x1x16x16xf32>
    %64 = vector.shape_cast %63 : vector<1x1x16x16xf32> to vector<16x16xf32>
    %cst_79 = arith.constant dense<0.000000e+00> : vector<16x16xf32>
    %65 = tpu.matmul %5, %64, %cst_79 {dimension_numbers = #tpu.dot_dimension_numbers<[1], [0], [0], [1], [0, 0, 1, 1], [], []>, precision = #tpu.contract_precision<fp32>} : vector<16x16xf32>, vector<16x16xf32>, vector<16x16xf32> -> vector<16x16xf32>
    %66 = arith.addf %62, %65 : vector<16x16xf32>
    %c5_80 = arith.constant 5 : index
    %c0_81 = arith.constant 0 : index
    %c0_82 = arith.constant 0 : index
    %67 = vector.load %arg3[%c5_80, %c0_81, %c0_82] : memref<7x16x16xf32, #tpu.memory_space<vmem>>, vector<1x16x16xf32>
    %68 = vector.shape_cast %67 : vector<1x16x16xf32> to vector<16x16xf32>
    %cst_83 = arith.constant dense<0.000000e+00> : vector<16x16xf32>
    %69 = tpu.matmul %68, %66, %cst_83 {dimension_numbers = #tpu.dot_dimension_numbers<[1], [0], [0], [1], [0, 0, 1, 1], [], []>, precision = #tpu.contract_precision<fp32>} : vector<16x16xf32>, vector<16x16xf32>, vector<16x16xf32> -> vector<16x16xf32>
    %70 = arith.addf %59, %69 : vector<16x16xf32>
    %c0_84 = arith.constant 0 : index
    %c6 = arith.constant 6 : index
    %c0_85 = arith.constant 0 : index
    %c0_86 = arith.constant 0 : index
    %71 = vector.load %arg2[%c0_84, %c6, %c0_85, %c0_86] : memref<2x7x16x16xf32, #tpu.memory_space<vmem>>, vector<1x1x16x16xf32>
    %72 = vector.shape_cast %71 : vector<1x1x16x16xf32> to vector<16x16xf32>
    %cst_87 = arith.constant dense<0.000000e+00> : vector<16x16xf32>
    %73 = tpu.matmul %4, %72, %cst_87 {dimension_numbers = #tpu.dot_dimension_numbers<[1], [0], [0], [1], [0, 0, 1, 1], [], []>, precision = #tpu.contract_precision<fp32>} : vector<16x16xf32>, vector<16x16xf32>, vector<16x16xf32> -> vector<16x16xf32>
    %c1_88 = arith.constant 1 : index
    %c6_89 = arith.constant 6 : index
    %c0_90 = arith.constant 0 : index
    %c0_91 = arith.constant 0 : index
    %74 = vector.load %arg2[%c1_88, %c6_89, %c0_90, %c0_91] : memref<2x7x16x16xf32, #tpu.memory_space<vmem>>, vector<1x1x16x16xf32>
    %75 = vector.shape_cast %74 : vector<1x1x16x16xf32> to vector<16x16xf32>
    %cst_92 = arith.constant dense<0.000000e+00> : vector<16x16xf32>
    %76 = tpu.matmul %5, %75, %cst_92 {dimension_numbers = #tpu.dot_dimension_numbers<[1], [0], [0], [1], [0, 0, 1, 1], [], []>, precision = #tpu.contract_precision<fp32>} : vector<16x16xf32>, vector<16x16xf32>, vector<16x16xf32> -> vector<16x16xf32>
    %77 = arith.addf %73, %76 : vector<16x16xf32>
    %c6_93 = arith.constant 6 : index
    %c0_94 = arith.constant 0 : index
    %c0_95 = arith.constant 0 : index
    %78 = vector.load %arg3[%c6_93, %c0_94, %c0_95] : memref<7x16x16xf32, #tpu.memory_space<vmem>>, vector<1x16x16xf32>
    %79 = vector.shape_cast %78 : vector<1x16x16xf32> to vector<16x16xf32>
    %cst_96 = arith.constant dense<0.000000e+00> : vector<16x16xf32>
    %80 = tpu.matmul %79, %77, %cst_96 {dimension_numbers = #tpu.dot_dimension_numbers<[1], [0], [0], [1], [0, 0, 1, 1], [], []>, precision = #tpu.contract_precision<fp32>} : vector<16x16xf32>, vector<16x16xf32>, vector<16x16xf32> -> vector<16x16xf32>
    %81 = arith.addf %70, %80 : vector<16x16xf32>
    %82 = arith.negf %81 : vector<16x16xf32>
    %83 = math.exp %82 : vector<16x16xf32>
    %cst_97 = arith.constant 1.000000e+00 : f32
    %84 = vector.broadcast %cst_97 : f32 to vector<16x16xf32>
    %85 = arith.addf %84, %83 : vector<16x16xf32>
    %86 = arith.divf %84, %85 : vector<16x16xf32>
    %87 = vector.shape_cast %86 : vector<16x16xf32> to vector<1x16x16xf32>
    %88 = vector.broadcast %87 : vector<1x16x16xf32> to vector<8x16x16xf32>
    %89 = arith.mulf %1, %88 : vector<8x16x16xf32>
    %c0_98 = arith.constant 0 : index
    %c0_99 = arith.constant 0 : index
    %c0_100 = arith.constant 0 : index
    %c0_101 = arith.constant 0 : index
    %90 = vector.load %arg4[%c0_98, %c0_99, %c0_100, %c0_101] : memref<2x8x16x16xf32, #tpu.memory_space<vmem>>, vector<1x8x16x16xf32>
    %91 = vector.shape_cast %90 : vector<1x8x16x16xf32> to vector<8x16x16xf32>
    %92 = vector.shape_cast %89 : vector<8x16x16xf32> to vector<1x8x16x16xf32>
    tpu.vector_store %arg4[%c0_98, %c0_99, %c0_100, %c0_101], %92 {strides = array<i32>} : memref<2x8x16x16xf32, #tpu.memory_space<vmem>>, vector<1x8x16x16xf32>,
    %c1_102 = arith.constant 1 : index
    %c0_103 = arith.constant 0 : index
    %c0_104 = arith.constant 0 : index
    %c0_105 = arith.constant 0 : index
    %93 = vector.load %arg1[%c1_102, %c0_103, %c0_104, %c0_105] : memref<2x8x16x16xf32, #tpu.memory_space<vmem>>, vector<1x8x16x16xf32>
    %94 = vector.shape_cast %93 : vector<1x8x16x16xf32> to vector<8x16x16xf32>
    %cst_106 = arith.constant dense<0.000000e+00> : vector<16x16xf32>
    %95 = vector.multi_reduction <add>, %94, %cst_106 [0] : vector<8x16x16xf32> to vector<16x16xf32>
    %cst_107 = arith.constant 1.250000e-01 : f32
    %96 = vector.broadcast %cst_107 : f32 to vector<16x16xf32>
    %97 = arith.mulf %95, %96 : vector<16x16xf32>
    %cst_108 = arith.constant dense<0xFF800000> : vector<16x16xf32>
    %98 = vector.multi_reduction <maximumf>, %94, %cst_108 [0] : vector<8x16x16xf32> to vector<16x16xf32>
    %c0_109 = arith.constant 0 : index
    %c0_110 = arith.constant 0 : index
    %c0_111 = arith.constant 0 : index
    %c0_112 = arith.constant 0 : index
    %99 = vector.load %arg2[%c0_109, %c0_110, %c0_111, %c0_112] : memref<2x7x16x16xf32, #tpu.memory_space<vmem>>, vector<1x1x16x16xf32>
    %100 = vector.shape_cast %99 : vector<1x1x16x16xf32> to vector<16x16xf32>
    %cst_113 = arith.constant dense<0.000000e+00> : vector<16x16xf32>
    %101 = tpu.matmul %97, %100, %cst_113 {dimension_numbers = #tpu.dot_dimension_numbers<[1], [0], [0], [1], [0, 0, 1, 1], [], []>, precision = #tpu.contract_precision<fp32>} : vector<16x16xf32>, vector<16x16xf32>, vector<16x16xf32> -> vector<16x16xf32>
    %c1_114 = arith.constant 1 : index
    %c0_115 = arith.constant 0 : index
    %c0_116 = arith.constant 0 : index
    %c0_117 = arith.constant 0 : index
    %102 = vector.load %arg2[%c1_114, %c0_115, %c0_116, %c0_117] : memref<2x7x16x16xf32, #tpu.memory_space<vmem>>, vector<1x1x16x16xf32>
    %103 = vector.shape_cast %102 : vector<1x1x16x16xf32> to vector<16x16xf32>
    %cst_118 = arith.constant dense<0.000000e+00> : vector<16x16xf32>
    %104 = tpu.matmul %98, %103, %cst_118 {dimension_numbers = #tpu.dot_dimension_numbers<[1], [0], [0], [1], [0, 0, 1, 1], [], []>, precision = #tpu.contract_precision<fp32>} : vector<16x16xf32>, vector<16x16xf32>, vector<16x16xf32> -> vector<16x16xf32>
    %105 = arith.addf %101, %104 : vector<16x16xf32>
    %c0_119 = arith.constant 0 : index
    %c0_120 = arith.constant 0 : index
    %c0_121 = arith.constant 0 : index
    %106 = vector.load %arg3[%c0_119, %c0_120, %c0_121] : memref<7x16x16xf32, #tpu.memory_space<vmem>>, vector<1x16x16xf32>
    %107 = vector.shape_cast %106 : vector<1x16x16xf32> to vector<16x16xf32>
    %cst_122 = arith.constant dense<0.000000e+00> : vector<16x16xf32>
    %108 = tpu.matmul %107, %105, %cst_122 {dimension_numbers = #tpu.dot_dimension_numbers<[1], [0], [0], [1], [0, 0, 1, 1], [], []>, precision = #tpu.contract_precision<fp32>} : vector<16x16xf32>, vector<16x16xf32>, vector<16x16xf32> -> vector<16x16xf32>
    %c0_123 = arith.constant 0 : index
    %c1_124 = arith.constant 1 : index
    %c0_125 = arith.constant 0 : index
    %c0_126 = arith.constant 0 : index
    %109 = vector.load %arg2[%c0_123, %c1_124, %c0_125, %c0_126] : memref<2x7x16x16xf32, #tpu.memory_space<vmem>>, vector<1x1x16x16xf32>
    %110 = vector.shape_cast %109 : vector<1x1x16x16xf32> to vector<16x16xf32>
    %cst_127 = arith.constant dense<0.000000e+00> : vector<16x16xf32>
    %111 = tpu.matmul %97, %110, %cst_127 {dimension_numbers = #tpu.dot_dimension_numbers<[1], [0], [0], [1], [0, 0, 1, 1], [], []>, precision = #tpu.contract_precision<fp32>} : vector<16x16xf32>, vector<16x16xf32>, vector<16x16xf32> -> vector<16x16xf32>
    %c1_128 = arith.constant 1 : index
    %c1_129 = arith.constant 1 : index
    %c0_130 = arith.constant 0 : index
    %c0_131 = arith.constant 0 : index
    %112 = vector.load %arg2[%c1_128, %c1_129, %c0_130, %c0_131] : memref<2x7x16x16xf32, #tpu.memory_space<vmem>>, vector<1x1x16x16xf32>
    %113 = vector.shape_cast %112 : vector<1x1x16x16xf32> to vector<16x16xf32>
    %cst_132 = arith.constant dense<0.000000e+00> : vector<16x16xf32>
    %114 = tpu.matmul %98, %113, %cst_132 {dimension_numbers = #tpu.dot_dimension_numbers<[1], [0], [0], [1], [0, 0, 1, 1], [], []>, precision = #tpu.contract_precision<fp32>} : vector<16x16xf32>, vector<16x16xf32>, vector<16x16xf32> -> vector<16x16xf32>
    %115 = arith.addf %111, %114 : vector<16x16xf32>
    %c1_133 = arith.constant 1 : index
    %c0_134 = arith.constant 0 : index
    %c0_135 = arith.constant 0 : index
    %116 = vector.load %arg3[%c1_133, %c0_134, %c0_135] : memref<7x16x16xf32, #tpu.memory_space<vmem>>, vector<1x16x16xf32>
    %117 = vector.shape_cast %116 : vector<1x16x16xf32> to vector<16x16xf32>
    %cst_136 = arith.constant dense<0.000000e+00> : vector<16x16xf32>
    %118 = tpu.matmul %117, %115, %cst_136 {dimension_numbers = #tpu.dot_dimension_numbers<[1], [0], [0], [1], [0, 0, 1, 1], [], []>, precision = #tpu.contract_precision<fp32>} : vector<16x16xf32>, vector<16x16xf32>, vector<16x16xf32> -> vector<16x16xf32>
    %119 = arith.addf %108, %118 : vector<16x16xf32>
    %c0_137 = arith.constant 0 : index
    %c2_138 = arith.constant 2 : index
    %c0_139 = arith.constant 0 : index
    %c0_140 = arith.constant 0 : index
    %120 = vector.load %arg2[%c0_137, %c2_138, %c0_139, %c0_140] : memref<2x7x16x16xf32, #tpu.memory_space<vmem>>, vector<1x1x16x16xf32>
    %121 = vector.shape_cast %120 : vector<1x1x16x16xf32> to vector<16x16xf32>
    %cst_141 = arith.constant dense<0.000000e+00> : vector<16x16xf32>
    %122 = tpu.matmul %97, %121, %cst_141 {dimension_numbers = #tpu.dot_dimension_numbers<[1], [0], [0], [1], [0, 0, 1, 1], [], []>, precision = #tpu.contract_precision<fp32>} : vector<16x16xf32>, vector<16x16xf32>, vector<16x16xf32> -> vector<16x16xf32>
    %c1_142 = arith.constant 1 : index
    %c2_143 = arith.constant 2 : index
    %c0_144 = arith.constant 0 : index
    %c0_145 = arith.constant 0 : index
    %123 = vector.load %arg2[%c1_142, %c2_143, %c0_144, %c0_145] : memref<2x7x16x16xf32, #tpu.memory_space<vmem>>, vector<1x1x16x16xf32>
    %124 = vector.shape_cast %123 : vector<1x1x16x16xf32> to vector<16x16xf32>
    %cst_146 = arith.constant dense<0.000000e+00> : vector<16x16xf32>
    %125 = tpu.matmul %98, %124, %cst_146 {dimension_numbers = #tpu.dot_dimension_numbers<[1], [0], [0], [1], [0, 0, 1, 1], [], []>, precision = #tpu.contract_precision<fp32>} : vector<16x16xf32>, vector<16x16xf32>, vector<16x16xf32> -> vector<16x16xf32>
    %126 = arith.addf %122, %125 : vector<16x16xf32>
    %c2_147 = arith.constant 2 : index
    %c0_148 = arith.constant 0 : index
    %c0_149 = arith.constant 0 : index
    %127 = vector.load %arg3[%c2_147, %c0_148, %c0_149] : memref<7x16x16xf32, #tpu.memory_space<vmem>>, vector<1x16x16xf32>
    %128 = vector.shape_cast %127 : vector<1x16x16xf32> to vector<16x16xf32>
    %cst_150 = arith.constant dense<0.000000e+00> : vector<16x16xf32>
    %129 = tpu.matmul %128, %126, %cst_150 {dimension_numbers = #tpu.dot_dimension_numbers<[1], [0], [0], [1], [0, 0, 1, 1], [], []>, precision = #tpu.contract_precision<fp32>} : vector<16x16xf32>, vector<16x16xf32>, vector<16x16xf32> -> vector<16x16xf32>
    %130 = arith.addf %119, %129 : vector<16x16xf32>
    %c0_151 = arith.constant 0 : index
    %c3_152 = arith.constant 3 : index
    %c0_153 = arith.constant 0 : index
    %c0_154 = arith.constant 0 : index
    %131 = vector.load %arg2[%c0_151, %c3_152, %c0_153, %c0_154] : memref<2x7x16x16xf32, #tpu.memory_space<vmem>>, vector<1x1x16x16xf32>
    %132 = vector.shape_cast %131 : vector<1x1x16x16xf32> to vector<16x16xf32>
    %cst_155 = arith.constant dense<0.000000e+00> : vector<16x16xf32>
    %133 = tpu.matmul %97, %132, %cst_155 {dimension_numbers = #tpu.dot_dimension_numbers<[1], [0], [0], [1], [0, 0, 1, 1], [], []>, precision = #tpu.contract_precision<fp32>} : vector<16x16xf32>, vector<16x16xf32>, vector<16x16xf32> -> vector<16x16xf32>
    %c1_156 = arith.constant 1 : index
    %c3_157 = arith.constant 3 : index
    %c0_158 = arith.constant 0 : index
    %c0_159 = arith.constant 0 : index
    %134 = vector.load %arg2[%c1_156, %c3_157, %c0_158, %c0_159] : memref<2x7x16x16xf32, #tpu.memory_space<vmem>>, vector<1x1x16x16xf32>
    %135 = vector.shape_cast %134 : vector<1x1x16x16xf32> to vector<16x16xf32>
    %cst_160 = arith.constant dense<0.000000e+00> : vector<16x16xf32>
    %136 = tpu.matmul %98, %135, %cst_160 {dimension_numbers = #tpu.dot_dimension_numbers<[1], [0], [0], [1], [0, 0, 1, 1], [], []>, precision = #tpu.contract_precision<fp32>} : vector<16x16xf32>, vector<16x16xf32>, vector<16x16xf32> -> vector<16x16xf32>
    %137 = arith.addf %133, %136 : vector<16x16xf32>
    %c3_161 = arith.constant 3 : index
    %c0_162 = arith.constant 0 : index
    %c0_163 = arith.constant 0 : index
    %138 = vector.load %arg3[%c3_161, %c0_162, %c0_163] : memref<7x16x16xf32, #tpu.memory_space<vmem>>, vector<1x16x16xf32>
    %139 = vector.shape_cast %138 : vector<1x16x16xf32> to vector<16x16xf32>
    %cst_164 = arith.constant dense<0.000000e+00> : vector<16x16xf32>
    %140 = tpu.matmul %139, %137, %cst_164 {dimension_numbers = #tpu.dot_dimension_numbers<[1], [0], [0], [1], [0, 0, 1, 1], [], []>, precision = #tpu.contract_precision<fp32>} : vector<16x16xf32>, vector<16x16xf32>, vector<16x16xf32> -> vector<16x16xf32>
    %141 = arith.addf %130, %140 : vector<16x16xf32>
    %c0_165 = arith.constant 0 : index
    %c4_166 = arith.constant 4 : index
    %c0_167 = arith.constant 0 : index
    %c0_168 = arith.constant 0 : index
    %142 = vector.load %arg2[%c0_165, %c4_166, %c0_167, %c0_168] : memref<2x7x16x16xf32, #tpu.memory_space<vmem>>, vector<1x1x16x16xf32>
    %143 = vector.shape_cast %142 : vector<1x1x16x16xf32> to vector<16x16xf32>
    %cst_169 = arith.constant dense<0.000000e+00> : vector<16x16xf32>
    %144 = tpu.matmul %97, %143, %cst_169 {dimension_numbers = #tpu.dot_dimension_numbers<[1], [0], [0], [1], [0, 0, 1, 1], [], []>, precision = #tpu.contract_precision<fp32>} : vector<16x16xf32>, vector<16x16xf32>, vector<16x16xf32> -> vector<16x16xf32>
    %c1_170 = arith.constant 1 : index
    %c4_171 = arith.constant 4 : index
    %c0_172 = arith.constant 0 : index
    %c0_173 = arith.constant 0 : index
    %145 = vector.load %arg2[%c1_170, %c4_171, %c0_172, %c0_173] : memref<2x7x16x16xf32, #tpu.memory_space<vmem>>, vector<1x1x16x16xf32>
    %146 = vector.shape_cast %145 : vector<1x1x16x16xf32> to vector<16x16xf32>
    %cst_174 = arith.constant dense<0.000000e+00> : vector<16x16xf32>
    %147 = tpu.matmul %98, %146, %cst_174 {dimension_numbers = #tpu.dot_dimension_numbers<[1], [0], [0], [1], [0, 0, 1, 1], [], []>, precision = #tpu.contract_precision<fp32>} : vector<16x16xf32>, vector<16x16xf32>, vector<16x16xf32> -> vector<16x16xf32>
    %148 = arith.addf %144, %147 : vector<16x16xf32>
    %c4_175 = arith.constant 4 : index
    %c0_176 = arith.constant 0 : index
    %c0_177 = arith.constant 0 : index
    %149 = vector.load %arg3[%c4_175, %c0_176, %c0_177] : memref<7x16x16xf32, #tpu.memory_space<vmem>>, vector<1x16x16xf32>
    %150 = vector.shape_cast %149 : vector<1x16x16xf32> to vector<16x16xf32>
    %cst_178 = arith.constant dense<0.000000e+00> : vector<16x16xf32>
    %151 = tpu.matmul %150, %148, %cst_178 {dimension_numbers = #tpu.dot_dimension_numbers<[1], [0], [0], [1], [0, 0, 1, 1], [], []>, precision = #tpu.contract_precision<fp32>} : vector<16x16xf32>, vector<16x16xf32>, vector<16x16xf32> -> vector<16x16xf32>
    %152 = arith.addf %141, %151 : vector<16x16xf32>
    %c0_179 = arith.constant 0 : index
    %c5_180 = arith.constant 5 : index
    %c0_181 = arith.constant 0 : index
    %c0_182 = arith.constant 0 : index
    %153 = vector.load %arg2[%c0_179, %c5_180, %c0_181, %c0_182] : memref<2x7x16x16xf32, #tpu.memory_space<vmem>>, vector<1x1x16x16xf32>
    %154 = vector.shape_cast %153 : vector<1x1x16x16xf32> to vector<16x16xf32>
    %cst_183 = arith.constant dense<0.000000e+00> : vector<16x16xf32>
    %155 = tpu.matmul %97, %154, %cst_183 {dimension_numbers = #tpu.dot_dimension_numbers<[1], [0], [0], [1], [0, 0, 1, 1], [], []>, precision = #tpu.contract_precision<fp32>} : vector<16x16xf32>, vector<16x16xf32>, vector<16x16xf32> -> vector<16x16xf32>
    %c1_184 = arith.constant 1 : index
    %c5_185 = arith.constant 5 : index
    %c0_186 = arith.constant 0 : index
    %c0_187 = arith.constant 0 : index
    %156 = vector.load %arg2[%c1_184, %c5_185, %c0_186, %c0_187] : memref<2x7x16x16xf32, #tpu.memory_space<vmem>>, vector<1x1x16x16xf32>
    %157 = vector.shape_cast %156 : vector<1x1x16x16xf32> to vector<16x16xf32>
    %cst_188 = arith.constant dense<0.000000e+00> : vector<16x16xf32>
    %158 = tpu.matmul %98, %157, %cst_188 {dimension_numbers = #tpu.dot_dimension_numbers<[1], [0], [0], [1], [0, 0, 1, 1], [], []>, precision = #tpu.contract_precision<fp32>} : vector<16x16xf32>, vector<16x16xf32>, vector<16x16xf32> -> vector<16x16xf32>
    %159 = arith.addf %155, %158 : vector<16x16xf32>
    %c5_189 = arith.constant 5 : index
    %c0_190 = arith.constant 0 : index
    %c0_191 = arith.constant 0 : index
    %160 = vector.load %arg3[%c5_189, %c0_190, %c0_191] : memref<7x16x16xf32, #tpu.memory_space<vmem>>, vector<1x16x16xf32>
    %161 = vector.shape_cast %160 : vector<1x16x16xf32> to vector<16x16xf32>
    %cst_192 = arith.constant dense<0.000000e+00> : vector<16x16xf32>
    %162 = tpu.matmul %161, %159, %cst_192 {dimension_numbers = #tpu.dot_dimension_numbers<[1], [0], [0], [1], [0, 0, 1, 1], [], []>, precision = #tpu.contract_precision<fp32>} : vector<16x16xf32>, vector<16x16xf32>, vector<16x16xf32> -> vector<16x16xf32>
    %163 = arith.addf %152, %162 : vector<16x16xf32>
    %c0_193 = arith.constant 0 : index
    %c6_194 = arith.constant 6 : index
    %c0_195 = arith.constant 0 : index
    %c0_196 = arith.constant 0 : index
    %164 = vector.load %arg2[%c0_193, %c6_194, %c0_195, %c0_196] : memref<2x7x16x16xf32, #tpu.memory_space<vmem>>, vector<1x1x16x16xf32>
    %165 = vector.shape_cast %164 : vector<1x1x16x16xf32> to vector<16x16xf32>
    %cst_197 = arith.constant dense<0.000000e+00> : vector<16x16xf32>
    %166 = tpu.matmul %97, %165, %cst_197 {dimension_numbers = #tpu.dot_dimension_numbers<[1], [0], [0], [1], [0, 0, 1, 1], [], []>, precision = #tpu.contract_precision<fp32>} : vector<16x16xf32>, vector<16x16xf32>, vector<16x16xf32> -> vector<16x16xf32>
    %c1_198 = arith.constant 1 : index
    %c6_199 = arith.constant 6 : index
    %c0_200 = arith.constant 0 : index
    %c0_201 = arith.constant 0 : index
    %167 = vector.load %arg2[%c1_198, %c6_199, %c0_200, %c0_201] : memref<2x7x16x16xf32, #tpu.memory_space<vmem>>, vector<1x1x16x16xf32>
    %168 = vector.shape_cast %167 : vector<1x1x16x16xf32> to vector<16x16xf32>
    %cst_202 = arith.constant dense<0.000000e+00> : vector<16x16xf32>
    %169 = tpu.matmul %98, %168, %cst_202 {dimension_numbers = #tpu.dot_dimension_numbers<[1], [0], [0], [1], [0, 0, 1, 1], [], []>, precision = #tpu.contract_precision<fp32>} : vector<16x16xf32>, vector<16x16xf32>, vector<16x16xf32> -> vector<16x16xf32>
    %170 = arith.addf %166, %169 : vector<16x16xf32>
    %c6_203 = arith.constant 6 : index
    %c0_204 = arith.constant 0 : index
    %c0_205 = arith.constant 0 : index
    %171 = vector.load %arg3[%c6_203, %c0_204, %c0_205] : memref<7x16x16xf32, #tpu.memory_space<vmem>>, vector<1x16x16xf32>
    %172 = vector.shape_cast %171 : vector<1x16x16xf32> to vector<16x16xf32>
    %cst_206 = arith.constant dense<0.000000e+00> : vector<16x16xf32>
    %173 = tpu.matmul %172, %170, %cst_206 {dimension_numbers = #tpu.dot_dimension_numbers<[1], [0], [0], [1], [0, 0, 1, 1], [], []>, precision = #tpu.contract_precision<fp32>} : vector<16x16xf32>, vector<16x16xf32>, vector<16x16xf32> -> vector<16x16xf32>
    %174 = arith.addf %163, %173 : vector<16x16xf32>
    %175 = arith.negf %174 : vector<16x16xf32>
    %176 = math.exp %175 : vector<16x16xf32>
    %cst_207 = arith.constant 1.000000e+00 : f32
    %177 = vector.broadcast %cst_207 : f32 to vector<16x16xf32>
    %178 = arith.addf %177, %176 : vector<16x16xf32>
    %179 = arith.divf %177, %178 : vector<16x16xf32>
    %180 = vector.shape_cast %179 : vector<16x16xf32> to vector<1x16x16xf32>
    %181 = vector.broadcast %180 : vector<1x16x16xf32> to vector<8x16x16xf32>
    %182 = arith.mulf %94, %181 : vector<8x16x16xf32>
    %c1_208 = arith.constant 1 : index
    %c0_209 = arith.constant 0 : index
    %c0_210 = arith.constant 0 : index
    %c0_211 = arith.constant 0 : index
    %183 = vector.load %arg4[%c1_208, %c0_209, %c0_210, %c0_211] : memref<2x8x16x16xf32, #tpu.memory_space<vmem>>, vector<1x8x16x16xf32>
    %184 = vector.shape_cast %183 : vector<1x8x16x16xf32> to vector<8x16x16xf32>
    %185 = vector.shape_cast %182 : vector<8x16x16xf32> to vector<1x8x16x16xf32>
    tpu.vector_store %arg4[%c1_208, %c0_209, %c0_210, %c0_211], %185 {strides = array<i32>} : memref<2x8x16x16xf32, #tpu.memory_space<vmem>>, vector<1x8x16x16xf32>,
    return
  }
  func.func @transform_0(%arg0: i32) -> (i32, i32, i32, i32) {
    %c0_i32 = arith.constant 0 : i32
    %c0_i32_0 = arith.constant 0 : i32
    %c0_i32_1 = arith.constant 0 : i32
    %c0_i32_2 = arith.constant 0 : i32
    return %arg0, %c0_i32, %c0_i32_0, %c0_i32_1 : i32, i32, i32, i32
  }
  func.func @transform_1(%arg0: i32) -> (i32, i32, i32, i32) {
    %c0_i32 = arith.constant 0 : i32
    %c0_i32_0 = arith.constant 0 : i32
    %c0_i32_1 = arith.constant 0 : i32
    %c0_i32_2 = arith.constant 0 : i32
    %c0_i32_3 = arith.constant 0 : i32
    return %c0_i32, %c0_i32_0, %c0_i32_1, %c0_i32_2 : i32, i32, i32, i32
  }
  func.func @transform_2(%arg0: i32) -> (i32, i32, i32) {
    %c0_i32 = arith.constant 0 : i32
    %c0_i32_0 = arith.constant 0 : i32
    %c0_i32_1 = arith.constant 0 : i32
    %c0_i32_2 = arith.constant 0 : i32
    return %c0_i32, %c0_i32_0, %c0_i32_1 : i32, i32, i32
  }
  func.func @transform_3(%arg0: i32) -> (i32, i32, i32, i32) {
    %c0_i32 = arith.constant 0 : i32
    %c0_i32_0 = arith.constant 0 : i32
    %c0_i32_1 = arith.constant 0 : i32
    %c0_i32_2 = arith.constant 0 : i32
    return %arg0, %c0_i32, %c0_i32_0, %c0_i32_1 : i32, i32, i32, i32
  }
}

</mosaic_0001>

<bundles_post_ra>
// kernel: tpu_custom_call.1
= control target key start
LH: loop header
LB: loop body
LE: loop exit
PB: predicated region body
PF: predicated region fallthrough
CT: control target
= control target key end

     0   :  { %8 = vsyncpa [#allocation3], 0  ;;  %s26520_s0 = inlined_call_operand.hbm [shape: f32[2,8,16,16], index: 0, kind: input, shape index: {}]   ;;  %s26521_s1 = inlined_call_operand.hbm [shape: f32[2,7,16,16], index: 1, kind: input, shape index: {}]   ;;  %s26522_s2 = inlined_call_operand.hbm [shape: f32[7,16,16], index: 2, kind: input, shape index: {}]   ;;  %s26523_s3 = inlined_call_operand.hbm [shape: f32[2,8,16,16], index: 3, kind: output, shape index: {}]  }
   0x1   :  { %9 = vsyncpa [#allocation6], 0 }
   0x2   :  { %10 = vsyncpa [#allocation4], 0  ;;  %s24552_s12 = smov [#allocation5]   ;;  %s24553_s14 = smov [#allocation2]  }
   0x3   :  { %s28_s13 = sshll.u32 %s24552_s12, 4  ;;  %s16_s15 = sshll.u32 %s24553_s14, 4  ;;  %s29_s13 = int_to_ptr.vmem [resolvable:$true] %s28_s13  ;;  %s17_s15 = int_to_ptr.vmem [resolvable:$true] %s16_s15 }
   0x4   :  { %s24474_s16 = scalar_lea.vmem %s29_s13, 3584  ;;  %p24479_p1 = scmp.lt.s32.totalorder %s29_s13, %s29_s13 }
   0x5   :  { %p24475_p0 = scmp.ne.s32.totalorder %s29_s13, %s24474_s16  ;;  %p24480_p2 = scmp.lt.s32.totalorder %s24474_s16, %s24474_s16 }
   0x7   :  { %p24481_p3 = por %p24480_p2, %p24479_p1 }
   0x9   :  { %p24482_p4 = pnand %p24481_p3, %p24475_p0 }
   0xb   :  { %24485 = shalt.err (!%p24482_p4)
}
   0xc   :  { %s24554_s17 = smov 128   ;;  %s24555_s18 = smov 8  }
   0xd   :  { %34 = dma.hbm_to_vmem [thread:$0]  %s26521_s1, 3584, %s29_s13, [#allocation6], %s24554_s17, %s24554_s17, %s24555_s18  }
   0xe   :  { %s24494_s21 = scalar_lea.vmem %s17_s15, 4096  ;;  %p24499_p6 = scmp.lt.s32.totalorder %s17_s15, %s17_s15 }
   0xf   :  { %p24495_p5 = scmp.ne.s32.totalorder %s17_s15, %s24494_s21  ;;  %p24500_p7 = scmp.lt.s32.totalorder %s24494_s21, %s24494_s21 }
  0x11   :  { %p24501_p8 = por %p24500_p7, %p24499_p6 }
  0x13   :  { %p24502_p9 = pnand %p24501_p8, %p24495_p5 }
  0x15   :  { %24505 = shalt.err (!%p24502_p9)
}
  0x16   :  { %22 = dma.hbm_to_vmem [thread:$0]  %s26520_s0, 4096, %s17_s15, [#allocation3], %s24554_s17, %s24554_s17, %s24555_s18  }
  0x17   :  { %s24556_s24 = smov [#allocation7]  }
  0x18   :  { %s40_s25 = sshll.u32 %s24556_s24, 4  ;;  %s41_s25 = int_to_ptr.vmem [resolvable:$true] %s40_s25 }
  0x19   :  { %s24514_s26 = scalar_lea.vmem %s41_s25, 1792  ;;  %p24519_p11 = scmp.lt.s32.totalorder %s41_s25, %s41_s25 }
  0x1a   :  { %p24515_p10 = scmp.ne.s32.totalorder %s41_s25, %s24514_s26  ;;  %p24520_p12 = scmp.lt.s32.totalorder %s24514_s26, %s24514_s26 }
  0x1c   :  { %p24521_p13 = por %p24520_p12, %p24519_p11 }
  0x1e   :  { %p24522_p0 = pnand %p24521_p13, %p24515_p10 }
  0x20   :  { %24525 = shalt.err (!%p24522_p0)
}
  0x21   :  { %46 = dma.hbm_to_vmem [thread:$0]  %s26522_s2, 1792, %s41_s25, [#allocation6], %s24554_s17, %s24554_s17, %s24555_s18  }
  0x22   :  { %24546 = dma.done.wait [#allocation3], 4096  }
  0x23   :  { %24547 = vsyncadd [#allocation3], 4294963200 }
  0x24   :  { %24548 = dma.done.wait [#allocation6], 5376  }
  0x25   :  { %24549 = vsyncadd [#allocation6], 4294961920  ;;  %vm72_vm0 = vcmask 130048   ;;  %v139_v0 = vld [vmem:[#allocation5 + $0x78] sm:$0xff]  ;;  %v138_v1 = vld [vmem:[#allocation5 + $0x70] sm:$0xff]  ;;  %s24557_s0 = smov [#allocation8]  }
  0x26   :  { %v56_v2 = vld [vmem:[#allocation2] sm:$0xff]  ;;  %v24596_v3 = vand.u32 4294901760, %v139_v0  ;;  %v24598_v4 = vand.u32 4294901760, %v138_v1  ;;  %v58_v5 = vld [vmem:[#allocation2 + $0x10] sm:$0xff]  ;;  %v57_v22 = vld [vmem:[#allocation2 + $0x8] sm:$0xff]  ;;  %s26495_s2 = sshll.u32 %s24557_s0, 4  ;;  %s21624_s2 = int_to_ptr.vmem [resolvable:$true] %s26495_s2 }
  0x27   :  { %v24600_v6 = vld [vmem:[#allocation2 + $0x20] sm:$0xff]  ;;  %v24602_v7 = vld [vmem:[#allocation2 + $0x30] sm:$0xff]  ;;  %v105_v11 = vsel %vm72_vm0, %v56_v2, -inf  ;;  %v106_v12 = vsel %vm72_vm0, %v58_v5, -inf  ;;  %v59_v23 = vld [vmem:[#allocation2 + $0x18] sm:$0xff]  ;;  %v73_v30 = vsel %vm72_vm0, %v56_v2, 0.0  ;;  %p24531_p2 = scmp.lt.s32.totalorder %s21624_s2, %s21624_s2 }
  0x28   :  { %v24604_v8 = vld [vmem:[#allocation2 + $0x40] sm:$0xff]  ;;  %v24606_v9 = vld [vmem:[#allocation2 + $0x50] sm:$0xff]  ;;  %22648 = vmatprep.subr.mxu0 %v24596_v3  ;;  %v24614_v13 = vsub.f32 %v139_v0, %v24596_v3  ;;  %v24617_v14 = vsub.f32 %v138_v1, %v24598_v4  ;;  %v107_v16 = vsel %vm72_vm0, %v24600_v6, -inf  ;;  %v109_v17 = vsel %vm72_vm0, %v24602_v7, -inf  ;;  %v24641_v28 = vld [vmem:[#allocation2 + $0x28] sm:$0xff]  ;;  %s24526_s28 = scalar_lea.vmem %s21624_s2, 4096 }
  0x29   :  { %v24608_v10 = vld [vmem:[#allocation2 + $0x60] sm:$0xff]  ;;  %v24619_v15 = vld [vmem:[#allocation2 + $0x70] sm:$0xff]  ;;  %22649 = vmatpush3.msra.mxu0 %v24596_v3  ;;  %v108_v18 = vmax.f32 %v105_v11, %v107_v16  ;;  %v110_v19 = vmax.f32 %v106_v12, %v109_v17  ;;  %v111_v20 = vsel %vm72_vm0, %v24604_v8, -inf  ;;  %v113_v21 = vsel %vm72_vm0, %v24606_v9, -inf  ;;  %v24643_v29 = vld [vmem:[#allocation2 + $0x38] sm:$0xff]  ;;  %p24527_p1 = scmp.ne.s32.totalorder %s21624_s2, %s24526_s28  ;;  %p24532_p3 = scmp.lt.s32.totalorder %s24526_s28, %s24526_s28 }
  0x2a   :  { %v24631_v24 = vand.u32 4294901760, %v24614_v13  ;;  %22650 = vmatprep.subr.mxu0 %v24598_v4  ;;  %v24635_v25 = vand.u32 4294901760, %v24617_v14  ;;  %v115_v26 = vsel %vm72_vm0, %v24608_v10, -inf  ;;  %v117_v27 = vsel %vm72_vm0, %v24619_v15, -inf  ;;  %v24652_v36 = vld [vmem:[#allocation2 + $0x48] sm:$0xff]  ;;  %v24654_v37 = vld [vmem:[#allocation2 + $0x58] sm:$0xff] }
  0x2b   :  { %22651 = vmatpush3.msra.mxu0 %v24598_v4  ;;  %v74_v31 = vsel %vm72_vm0, %v58_v5, 0.0  ;;  %v112_v32 = vmax.f32 %v108_v18, %v111_v20  ;;  %v114_v33 = vmax.f32 %v110_v19, %v113_v21  ;;  %v24656_v38 = vld [vmem:[#allocation2 + $0x68] sm:$0xff]  ;;  %v120_v39 = vsel %vm72_vm0, %v57_v22, -inf  ;;  %v24661_v43 = vld [vmem:[#allocation2 + $0x78] sm:$0xff]  ;;  %v135_v51 = vld [vmem:[#allocation5] sm:$0xff]  ;;  %p24533_p4 = por %p24532_p3, %p24531_p2 }
  0x2c   :  { %v265_v34 = vsub.f32 %v24614_v13, %v24631_v24  ;;  %v272_v35 = vsub.f32 %v24617_v14, %v24635_v25  ;;  %v121_v40 = vsel %vm72_vm0, %v59_v23, -inf  ;;  %22662 = vmatprep.subr.mxu0 %v24614_v13  ;;  %v122_v44 = vsel %vm72_vm0, %v24641_v28, -inf  ;;  %v136_v46 = vld [vmem:[#allocation5 + $0x8] sm:$0xff] }
  0x2d   :  { %v116_v41 = vmax.f32 %v112_v32, %v115_v26  ;;  %v118_v42 = vmax.f32 %v114_v33, %v117_v27  ;;  %v124_v45 = vsel %vm72_vm0, %v24643_v29, -inf  ;;  %v123_v49 = vmax.f32 %v120_v39, %v122_v44  ;;  %p24534_p5 = pnand %p24533_p4, %p24527_p1 }
  0x2e   :  { %v266_v47 = vand.u32 4294901760, %v265_v34  ;;  %v273_v48 = vand.u32 4294901760, %v272_v35  ;;  %v125_v50 = vmax.f32 %v121_v40, %v124_v45  ;;  %v126_v53 = vsel %vm72_vm0, %v24652_v36, -inf }
  0x2f   :  { %v119_v52 = vmax.f32 %v116_v41, %v118_v42  ;;  %v128_v54 = vsel %vm72_vm0, %v24654_v37, -inf  ;;  %v130_v55 = vsel %vm72_vm0, %v24656_v38, -inf  ;;  %v127_v56 = vmax.f32 %v123_v49, %v126_v53 }
  0x30   :  { %22655 = vmatprep.subr.mxu1 %v266_v47  ;;  %v129_v57 = vmax.f32 %v125_v50, %v128_v54  ;;  %v132_v58 = vsel %vm72_vm0, %v24661_v43, -inf  ;;  %v24675_v59 = vand.u32 4294901760, %v136_v46  ;;  %v24678_v61 = vand.u32 4294901760, %v135_v51 }
  0x31   :  { %22656 = vmatpush3.msra.mxu1 %v266_v47  ;;  %v141_v60 = vsel %vm72_vm0, %v119_v52, 0  ;;  %v75_v62 = vadd.f32 %v74_v31, %v73_v30  ;;  %v76_v63 = vsel %vm72_vm0, %v24600_v6, 0.0  ;;  %v88_v1 = vsel %vm72_vm0, %v57_v22, 0.0 }
  0x32   :  { %22657 = vmatprep.subr.mxu1 %v273_v48  ;;  %v24682_v0 = vand.u32 4294901760, %v141_v60  ;;  %v131_v2 = vmax.f32 %v127_v56, %v130_v55  ;;  %v133_v5 = vmax.f32 %v129_v57, %v132_v58  ;;  %v89_v11 = vsel %vm72_vm0, %v59_v23, 0.0  ;;  %v1163_v57 = vld [vmem:[#allocation5 + $0x88] sm:$0xff] }
  0x33   :  { %22658 = vmatpush3.msra.mxu1 %v273_v48  ;;  %v24687_v12 = vsub.f32 %v136_v46, %v24675_v59  ;;  %v77_v16 = vadd.f32 %v76_v63, %v75_v62  ;;  %v78_v17 = vsel %vm72_vm0, %v24602_v7, 0.0  ;;  %v80_v19 = vsel %vm72_vm0, %v24604_v8, 0.0 }
  0x34   :  { %v24692_v18 = vsub.f32 %v141_v60, %v24682_v0  ;;  %22659 = vmatprep.mubr.f32.mxu1 %v24682_v0  ;;  %v134_v6 = vmax.f32 %v131_v2, %v133_v5  ;;  %22669 = vmatprep.subr.mxu1 %v24596_v3  ;;  %v24699_v20 = vsub.f32 %v135_v51, %v24678_v61  ;;  %v82_v23 = vsel %vm72_vm0, %v24606_v9, 0.0 }
  0x35   :  { %v79_v21 = vadd.f32 %v78_v17, %v77_v16  ;;  %v90_v26 = vadd.f32 %v89_v11, %v88_v1  ;;  %v24710_v30 = vand.u32 4294901760, %v24687_v12  ;;  %v91_v8 = vsel %vm72_vm0, %v24641_v28, 0.0 }
  0x36   :  { %v24702_v22 = vand.u32 4294901760, %v24692_v18  ;;  %v144_v7 = vsel %vm72_vm0, %v134_v6, 0  ;;  %v84_v33 = vsel %vm72_vm0, %v24608_v10, 0.0  ;;  %v93_v9 = vsel %vm72_vm0, %v24643_v29, 0.0 }
  0x37   :  { %v24707_v27 = vand.u32 4294901760, %v144_v7  ;;  %v81_v31 = vadd.f32 %v80_v19, %v79_v21  ;;  %v92_v34 = vadd.f32 %v91_v8, %v90_v26  ;;  %v95_v40 = vsel %vm72_vm0, %v24652_v36, 0.0 }
  0x38   :  { %v216_v32 = vsub.f32 %v24692_v18, %v24702_v22  ;;  %v24731_v10 = vand.u32 4294901760, %v24699_v20  ;;  %v86_v29 = vsel %vm72_vm0, %v24619_v15, 0.0  ;;  %v773_v36 = vsub.f32 %v24687_v12, %v24710_v30 }
  0x39   :  { %v24721_v35 = vsub.f32 %v144_v7, %v24707_v27  ;;  %22660 = vmatmul.mubr.f32.vlgmr.msra.gmra.mxu1 %v24707_v27  ;;  %v83_v39 = vadd.f32 %v82_v23, %v81_v31  ;;  %v94_v41 = vadd.f32 %v93_v9, %v92_v34  ;;  %v97_v45 = vsel %vm72_vm0, %v24654_v37, 0.0 }
  0x3a   :  { %v24726_v28 = vand.u32 4294901760, %v216_v32  ;;  %22670 = vmatpush3.msra.mxu1 %v24596_v3  ;;  %22673 = vmatprep.mubr.f32.mxu1 %v24702_v22  ;;  %v99_v48 = vsel %vm72_vm0, %v24656_v38, 0.0  ;;  %v780_v37 = vsub.f32 %v24699_v20, %v24731_v10  ;;  %v774_v51 = vand.u32 4294901760, %v773_v36 }
  0x3b   :  { %v24736_v42 = vand.u32 4294901760, %v24721_v35  ;;  %22671 = vmatprep.subr.mxu1 %v24598_v4  ;;  %v85_v44 = vadd.f32 %v84_v33, %v83_v39  ;;  %v96_v46 = vadd.f32 %v95_v40, %v94_v41  ;;  %v101_v53 = vsel %vm72_vm0, %v24661_v43, 0.0  ;;  %v2169_v40 = vld [vmem:[#allocation7 + $0x10] sm:$0xff] }
  0x3c   :  { %22652 = vmatprep.mubr.f32.mxu0 %v24726_v28  ;;  %22672 = vmatpush3.msra.mxu1 %v24598_v4  ;;  %v781_v43 = vand.u32 4294901760, %v780_v37  ;;  %v24784_v62 = vand.u32 4294901760, %v1163_v57 }
  0x3d   :  { %v226_v15 = vsub.f32 %v24721_v35, %v24736_v42  ;;  %22674 = vmatmul.mubr.f32.vlgmr.msra.gmra.mxu1 %v24736_v42  ;;  %22683 = vmatprep.subr.mxu1 %v24596_v3  ;;  %v87_v47 = vadd.f32 %v86_v29, %v85_v44  ;;  %v98_v49 = vadd.f32 %v97_v45, %v96_v46 }
  0x3e   :  { %22684 = vmatpush3.msra.mxu1 %v24596_v3  ;;  %22687 = vmatprep.mubr.f32.mxu1 %v24682_v0  ;;  %v1281_v5 = vsub.f32 %v1163_v57, %v24784_v62 }
  0x3f   :  { %v24755_v50 = vand.u32 4294901760, %v226_v15  ;;  %22685 = vmatprep.subr.mxu1 %v24598_v4  ;;  %v103_v52 = vmul.f32 0.125, %v87_v47  ;;  %v100_v38 = vadd.f32 %v99_v48, %v98_v49 }
  0x40   :  { %22686 = vmatpush3.msra.mxu1 %v24598_v4  ;;  %v1282_v6 = vand.u32 4294901760, %v1281_v5 }
  0x41   :  { %22653 = vmatmul.mubr.f32.vlgmr.msra.gmra.mxu0 %v24755_v50  ;;  %22688 = vmatmul.mubr.f32.vlgmr.msra.gmra.mxu1 %v24707_v27  ;;  %v649_v3 = vsel %vm72_vm0, %v103_v52, 0  ;;  %v102_v55 = vadd.f32 %v101_v53, %v100_v38 }
  0x42   :  { %22663 = vmatpush3.msra.mxu0 %v24614_v13  ;;  %22666 = vmatprep.mubr.f32.mxu0 %v24692_v18  ;;  %v24766_v54 = vand.u32 4294901760, %v649_v3  ;;  %v1283_v21 = vsub.f32 %v1281_v5, %v1282_v6 }
  0x43   :  { %22664 = vmatprep.subr.mxu0 %v24617_v14  ;;  %22697 = vmatprep.subr.mxu1 %v774_v51  ;;  %v104_v56 = vmul.f32 0.125, %v102_v55 }
  0x44   :  { %22665 = vmatpush3.msra.mxu0 %v24617_v14  ;;  %22698 = vmatpush3.msra.mxu1 %v774_v51  ;;  %v24771_v4 = vsub.f32 %v649_v3, %v24766_v54  ;;  %v1162_v14 = vld [vmem:[#allocation5 + $0x80] sm:$0xff]  ;;  %v1284_v23 = vand.u32 4294901760, %v1283_v21 }
  0x45   :  { %22667 = vmatmul.mubr.f32.vlgmr.msra.gmra.mxu0 %v24721_v35  ;;  %22676 = vmatprep.subr.mxu0 %v24631_v24  ;;  %v652_v58 = vsel %vm72_vm0, %v104_v56, 0  ;;  %v24794_v1 = vand.u32 4294901760, %v1162_v14 }
  0x46   :  { %22677 = vmatpush3.msra.mxu0 %v24631_v24  ;;  %22680 = vmatprep.mubr.f32.mxu0 %v24682_v0  ;;  %v24778_v13 = vand.u32 4294901760, %v24771_v4  ;;  %v24782_v60 = vand.u32 4294901760, %v652_v58 }
  0x47   :  { %22678 = vmatprep.subr.mxu0 %v24635_v25  ;;  %22699 = vmatprep.subr.mxu1 %v781_v43  ;;  %v1288_v16 = vsub.f32 %v1162_v14, %v24794_v1 }
  0x48   :  { %22679 = vmatpush3.msra.mxu0 %v24635_v25  ;;  %v724_v24 = vsub.f32 %v24771_v4, %v24778_v13  ;;  %22700 = vmatpush3.msra.mxu1 %v781_v43  ;;  %v24792_v63 = vsub.f32 %v652_v58, %v24782_v60 }
  0x49   :  { %22681 = vmatmul.mubr.f32.vlgmr.msra.gmra.mxu0 %v24707_v27  ;;  %22690 = vmatprep.subr.mxu0 %v24675_v59  ;;  %v1289_v19 = vand.u32 4294901760, %v1288_v16 }
  0x4a   :  { %22691 = vmatpush3.msra.mxu0 %v24675_v59  ;;  %v24797_v2 = vand.u32 4294901760, %v724_v24  ;;  %22701 = vmatprep.mubr.f32.mxu1 %v24766_v54  ;;  %v24802_v25 = vand.u32 4294901760, %v24792_v63 }
  0x4b   :  { %22692 = vmatprep.subr.mxu0 %v24678_v61  ;;  %22702 = vmatmul.mubr.f32.vlgmr.msra.gmra.mxu1 %v24782_v60  ;;  %v1290_v7 = vsub.f32 %v1288_v16, %v1289_v19 }
  0x4c   :  { %26530 = vst [vmem:[#allocation12_spill] sm:$0xff] %v24802_v25  ;;  %22693 = vmatpush3.msra.mxu0 %v24678_v61  ;;  %22694 = vmatprep.mubr.f32.mxu0 %v24797_v2  ;;  %v734_v11 = vsub.f32 %v24792_v63, %v24802_v25 }
  0x4d   :  { %22704 = vmatprep.subr.mxu0 %v24687_v12  ;;  %22711 = vmatprep.subr.mxu1 %v24675_v59 }
  0x4e   :  { %22712 = vmatpush3.msra.mxu1 %v24675_v59  ;;  %22715 = vmatprep.mubr.f32.mxu1 %v24778_v13  ;;  %v24815_v17 = vand.u32 4294901760, %v734_v11 }
  0x4f   :  { %22713 = vmatprep.subr.mxu1 %v24678_v61 }
  0x50   :  { %22714 = vmatpush3.msra.mxu1 %v24678_v61  ;;  %22695 = vmatmul.mubr.f32.vlgmr.msra.gmra.mxu0 %v24815_v17 }
  0x51   :  { %22716 = vmatmul.mubr.f32.vlgmr.msra.gmra.mxu1 %v24802_v25  ;;  %22705 = vmatpush3.msra.mxu0 %v24687_v12  ;;  %v1160_v12 = vld [vmem:[#allocation5 + $0x18] sm:$0xff] }
  0x52   :  { %22708 = vmatprep.mubr.f32.mxu0 %v24771_v4  ;;  %22706 = vmatprep.subr.mxu0 %v24699_v20  ;;  %v24837_v26 = vand.u32 4294901760, %v1160_v12 }
  0x53   :  { %22725 = vmatprep.subr.mxu1 %v24675_v59  ;;  %22707 = vmatpush3.msra.mxu0 %v24699_v20  ;;  %v1291_v20 = vand.u32 4294901760, %v1290_v7 }
  0x54   :  { %22726 = vmatpush3.msra.mxu1 %v24675_v59  ;;  %22709 = vmatmul.mubr.f32.vlgmr.msra.gmra.mxu0 %v24792_v63  ;;  %v1159_v59 = vld [vmem:[#allocation5 + $0x10] sm:$0xff] }
  0x55   :  { %22718 = vmatprep.subr.mxu0 %v24710_v30  ;;  %22727 = vmatprep.subr.mxu1 %v24678_v61 }
  0x56   :  { %22719 = vmatpush3.msra.mxu0 %v24710_v30  ;;  %22722 = vmatprep.mubr.f32.mxu0 %v24766_v54  ;;  %v24842_v30 = vand.u32 4294901760, %v1159_v59 }
  0x57   :  { %22720 = vmatprep.subr.mxu0 %v24731_v10  ;;  %22728 = vmatpush3.msra.mxu1 %v24678_v61  ;;  %v1783_v61 = vsub.f32 %v1160_v12, %v24837_v26 }
  0x58   :  { %22721 = vmatpush3.msra.mxu0 %v24731_v10  ;;  %22729 = vmatprep.mubr.f32.mxu1 %v24766_v54  ;;  %v1790_v31 = vsub.f32 %v1159_v59, %v24842_v30  ;;  %v2172_v10 = vsel %vm72_vm0, %v2169_v40, 0 }
  0x59   :  { %22723 = vmatmul.mubr.f32.vlgmr.msra.gmra.mxu0 %v24782_v60  ;;  %22730 = vmatmul.mubr.f32.vlgmr.msra.gmra.mxu1 %v24782_v60  ;;  %v1784_v8 = vand.u32 4294901760, %v1783_v61  ;;  %v24893_v29 = vand.u32 4294901760, %v2172_v10 }
  0x5a   :  { %22732 = vmatprep.subr.mxu0 %v24784_v62  ;;  %22739 = vmatprep.subr.mxu1 %v1284_v23  ;;  %v1791_v32 = vand.u32 4294901760, %v1790_v31 }
  0x5b   :  { %22733 = vmatpush3.msra.mxu0 %v24784_v62  ;;  %22740 = vmatpush3.msra.mxu1 %v1284_v23  ;;  %v1785_v33 = vsub.f32 %v1783_v61, %v1784_v8  ;;  %v24896_v41 = vsub.f32 %v2172_v10, %v24893_v29 }
  0x5c   :  { %22734 = vmatprep.subr.mxu0 %v24794_v1  ;;  %22741 = vmatprep.subr.mxu1 %v1291_v20  ;;  %v1792_v34 = vsub.f32 %v1790_v31, %v1791_v32 }
  0x5d   :  { %22735 = vmatpush3.msra.mxu0 %v24794_v1  ;;  %22736 = vmatprep.mubr.f32.mxu0 %v24726_v28  ;;  %v1786_v9 = vand.u32 4294901760, %v1785_v33  ;;  %v26524_v36 = vand.u32 4294901760, %v24896_v41 }
  0x5e   :  { %22742 = vmatpush3.msra.mxu1 %v1291_v20  ;;  %22743 = vmatprep.mubr.f32.mxu1 %v24682_v0  ;;  %v1793_v39 = vand.u32 4294901760, %v1792_v34 }
  0x5f   :  { %22737 = vmatmul.mubr.f32.vlgmr.msra.gmra.mxu0 %v24755_v50  ;;  %22744 = vmatmul.mubr.f32.vlgmr.msra.gmra.mxu1 %v24707_v27  ;;  %v2247_v44 = vsub.f32 %v24896_v41, %v26524_v36 }
  0x60   :  { %22746 = vmatprep.subr.mxu0 %v1281_v5  ;;  %22753 = vmatprep.subr.mxu1 %v24784_v62 }
  0x61   :  { %22747 = vmatpush3.msra.mxu0 %v1281_v5  ;;  %22754 = vmatpush3.msra.mxu1 %v24784_v62  ;;  %v2248_v45 = vand.u32 4294901760, %v2247_v44 }
  0x62   :  { %22748 = vmatprep.subr.mxu0 %v1288_v16  ;;  %22755 = vmatprep.subr.mxu1 %v24794_v1 }
  0x63   :  { %22749 = vmatpush3.msra.mxu0 %v1288_v16  ;;  %22750 = vmatprep.mubr.f32.mxu0 %v24692_v18 }
  0x64   :  { %22756 = vmatpush3.msra.mxu1 %v24794_v1  ;;  %22757 = vmatprep.mubr.f32.mxu1 %v24702_v22 }
  0x65   :  { %22751 = vmatmul.mubr.f32.vlgmr.msra.gmra.mxu0 %v24721_v35  ;;  %22758 = vmatmul.mubr.f32.vlgmr.msra.gmra.mxu1 %v24736_v42 }
  0x66   :  { %22760 = vmatprep.subr.mxu0 %v1282_v6  ;;  %22767 = vmatprep.subr.mxu1 %v24784_v62 }
  0x67   :  { %22761 = vmatpush3.msra.mxu0 %v1282_v6  ;;  %22768 = vmatpush3.msra.mxu1 %v24784_v62 }
  0x68   :  { %22762 = vmatprep.subr.mxu0 %v1289_v19  ;;  %22769 = vmatprep.subr.mxu1 %v24794_v1 }
  0x69   :  { %22763 = vmatpush3.msra.mxu0 %v1289_v19  ;;  %22764 = vmatprep.mubr.f32.mxu0 %v24682_v0 }
  0x6a   :  { %22770 = vmatpush3.msra.mxu1 %v24794_v1  ;;  %22771 = vmatprep.mubr.f32.mxu1 %v24682_v0 }
  0x6b   :  { %22765 = vmatmul.mubr.f32.vlgmr.msra.gmra.mxu0 %v24707_v27  ;;  %22772 = vmatmul.mubr.f32.vlgmr.msra.gmra.mxu1 %v24707_v27 }
  0x6c   :  { %22774 = vmatprep.subr.mxu0 %v24837_v26  ;;  %22781 = vmatprep.subr.mxu1 %v1786_v9 }
  0x6d   :  { %22775 = vmatpush3.msra.mxu0 %v24837_v26  ;;  %22782 = vmatpush3.msra.mxu1 %v1786_v9 }
  0x6e   :  { %22776 = vmatprep.subr.mxu0 %v24842_v30  ;;  %22783 = vmatprep.subr.mxu1 %v1793_v39 }
  0x6f   :  { %22777 = vmatpush3.msra.mxu0 %v24842_v30  ;;  %22778 = vmatprep.mubr.f32.mxu0 %v24797_v2 }
  0x70   :  { %22784 = vmatpush3.msra.mxu1 %v1793_v39  ;;  %22785 = vmatprep.mubr.f32.mxu1 %v24766_v54 }
  0x71   :  { %22779 = vmatmul.mubr.f32.vlgmr.msra.gmra.mxu0 %v24815_v17  ;;  %22786 = vmatmul.mubr.f32.vlgmr.msra.gmra.mxu1 %v24782_v60 }
  0x72   :  { %22788 = vmatprep.subr.mxu0 %v1783_v61  ;;  %22795 = vmatprep.subr.mxu1 %v24837_v26 }
  0x73   :  { %22789 = vmatpush3.msra.mxu0 %v1783_v61  ;;  %22796 = vmatpush3.msra.mxu1 %v24837_v26 }
  0x74   :  { %22790 = vmatprep.subr.mxu0 %v1790_v31  ;;  %22797 = vmatprep.subr.mxu1 %v24842_v30 }
  0x75   :  { %22791 = vmatpush3.msra.mxu0 %v1790_v31  ;;  %22792 = vmatprep.mubr.f32.mxu0 %v24771_v4 }
  0x76   :  { %22798 = vmatpush3.msra.mxu1 %v24842_v30  ;;  %22799 = vmatprep.mubr.f32.mxu1 %v24778_v13 }
  0x77   :  { %22793 = vmatmul.mubr.f32.vlgmr.msra.gmra.mxu0 %v24792_v63  ;;  %22800 = vmatmul.mubr.f32.vlgmr.msra.gmra.mxu1 %v24802_v25 }
  0x78   :  { %22802 = vmatprep.subr.mxu0 %v1784_v8  ;;  %22809 = vmatprep.subr.mxu1 %v24837_v26 }
  0x79   :  { %22803 = vmatpush3.msra.mxu0 %v1784_v8  ;;  %22810 = vmatpush3.msra.mxu1 %v24837_v26 }
  0x7a   :  { %22804 = vmatprep.subr.mxu0 %v1791_v32  ;;  %22811 = vmatprep.subr.mxu1 %v24842_v30 }
  0x7b   :  { %22805 = vmatpush3.msra.mxu0 %v1791_v32  ;;  %22806 = vmatprep.mubr.f32.mxu0 %v24766_v54 }
  0x7c   :  { %22812 = vmatpush3.msra.mxu1 %v24842_v30  ;;  %22813 = vmatprep.mubr.f32.mxu1 %v24766_v54 }
  0x7d   :  { %22807 = vmatmul.mubr.f32.vlgmr.msra.gmra.mxu0 %v24782_v60  ;;  %22814 = vmatmul.mubr.f32.vlgmr.msra.gmra.mxu1 %v24782_v60 }
  0x7e   :  { %22827 = vmatprep.mubr.f32.mxu1 %v24893_v29  ;;  %22820 = vmatprep.mubr.f32.mxu0 %v2248_v45 }
  0xf9   :  { %v22661_v46 = vpop.f32.mrf.mxu1 }
  0xfb   :  { %v310_v15 = vpop.f32.mrf.mxu1 }
  0xfd   :  { %v22675_v47 = vpop.f32.mrf.mxu1 }
  0xff   :  { %v474_v48 = vpop.f32.mrf.mxu1 }
 0x101   :  { %v22654_v37 = vpop.f32.mrf.mxu0  ;;  %v22689_v51 = vpop.f32.mrf.mxu1 }
 0x102   :  { %v317_v7 = vadd.f32 %v22661_v46, %v22654_v37 }
 0x103   :  { %v219_v49 = vpop.f32.mrf.mxu0  ;;  %v638_v38 = vpop.f32.mrf.mxu1 }
 0x104   :  { %v311_v59 = vadd.f32 %v310_v15, %v219_v49 }
 0x105   :  { %v22668_v52 = vpop.f32.mrf.mxu0 }
 0x106   :  { %v400_v20 = vadd.f32 %v22668_v52, %v317_v7 }
 0x107   :  { %v392_v53 = vpop.f32.mrf.mxu0 }
 0x108   :  { %v393_v30 = vadd.f32 %v392_v53, %v311_v59  ;;  %v483_v33 = vadd.f32 %v22675_v47, %v400_v20 }
 0x109   :  { %v22682_v3 = vpop.f32.mrf.mxu0 }
 0x10a   :  { %v475_v10 = vadd.f32 %v474_v48, %v393_v30  ;;  %v566_v45 = vadd.f32 %v22682_v3, %v483_v33 }
 0x10b   :  { %v22703_v55 = vpop.f32.mrf.mxu1  ;;  %v559_v43 = vpop.f32.mrf.mxu0 }
 0x10c   :  { %v560_v25 = vadd.f32 %v559_v43, %v475_v10 }
 0x10d   :  { %v818_v56 = vpop.f32.mrf.mxu1 }
 0x110   :  { %v22696_v57 = vpop.f32.mrf.mxu0 }
 0x111   :  { %v24903_v58 = vpop.f32.mrf.mxu1 }
 0x112   :  { %v727_v14 = vpop.f32.mrf.mxu0 }
 0x113   :  { %v24905_v24 = vpop.f32.mrf.mxu1 }
 0x114   :  { %v22710_v62 = vpop.f32.mrf.mxu0 }
 0x116   :  { %v24907_v1 = vpop.f32.mrf.mxu0 }
 0x119   :  { %v24909_v5 = vpop.f32.mrf.mxu0  ;;  %v24911_v11 = vpop.f32.mrf.mxu1 }
 0x11b   :  { %v24913_v16 = vpop.f32.mrf.mxu0  ;;  %v24915_v6 = vpop.f32.mrf.mxu1 }
 0x11f   :  { %v22738_v19 = vpop.f32.mrf.mxu0  ;;  %v22745_v21 = vpop.f32.mrf.mxu1 }
 0x120   :  { %v1335_v26 = vadd.f32 %v22745_v21, %v22738_v19  ;;  %v2170_v19 = vld [vmem:[#allocation7 + $0x18] sm:$0xff]  ;;  %v645_v21 = vadd.f32 %v22689_v51, %v566_v45 }
 0x121   :  { %v1237_v12 = vpop.f32.mrf.mxu0  ;;  %v1328_v23 = vpop.f32.mrf.mxu1 }
 0x122   :  { %v1329_v31 = vadd.f32 %v1328_v23, %v1237_v12  ;;  %v639_v12 = vadd.f32 %v638_v38, %v560_v25  ;;  %v2175_v23 = vsel %vm72_vm0, %v2170_v19, 0  ;;  %v738_v48 = vadd.f32 %v22696_v57, %v645_v21 }
 0x124   :  { %v728_v43 = vadd.f32 %v727_v14, %v639_v12 }
 0x125   :  { %v22752_v61 = vpop.f32.mrf.mxu0  ;;  %v22759_v32 = vpop.f32.mrf.mxu1 }
 0x126   :  { %v1418_v8 = vadd.f32 %v22752_v61, %v1335_v26  ;;  %v24918_v61 = vand.u32 4294901760, %v2175_v23  ;;  %v819_v38 = vadd.f32 %v818_v56, %v728_v43 }
 0x127   :  { %v1410_v34 = vpop.f32.mrf.mxu0  ;;  %v1492_v40 = vpop.f32.mrf.mxu1 }
 0x128   :  { %v1501_v9 = vadd.f32 %v22759_v32, %v1418_v8  ;;  %v1411_v39 = vadd.f32 %v1410_v34, %v1329_v31  ;;  %v825_v8 = vadd.f32 %v22703_v55, %v738_v48  ;;  %v24921_v25 = vsub.f32 %v2175_v23, %v24918_v61 }
 0x129   :  { %v901_v45 = vadd.f32 %v24907_v1, %v819_v38 }
 0x12a   :  { %v1493_v44 = vadd.f32 %v1492_v40, %v1411_v39  ;;  %v908_v40 = vadd.f32 %v22710_v62, %v825_v8 }
 0x12b   :  { %v22766_v36 = vpop.f32.mrf.mxu0  ;;  %v22773_v37 = vpop.f32.mrf.mxu1  ;;  %v983_v21 = vadd.f32 %v24905_v24, %v901_v45 }
 0x12c   :  { %v1584_v46 = vadd.f32 %v22766_v36, %v1501_v9 }
 0x12d   :  { %v1577_v15 = vpop.f32.mrf.mxu0  ;;  %v1656_v53 = vpop.f32.mrf.mxu1 }
 0x12e   :  { %v1663_v49 = vadd.f32 %v22773_v37, %v1584_v46  ;;  %v1578_v52 = vadd.f32 %v1577_v15, %v1493_v44  ;;  %v2256_v44 = vand.u32 4294901760, %v24921_v25  ;;  %v1156_v46 = vld [vmem:[#allocation7] sm:$0xff]  ;;  %v991_v15 = vadd.f32 %v24903_v58, %v908_v40 }
 0x12f   :  { %v2680_v62 = vsel %vm72_vm0, %v1156_v46, 0 }
 0x130   :  { %v1657_v7 = vadd.f32 %v1656_v53, %v1578_v52  ;;  %v1157_v52 = vld [vmem:[#allocation7 + $0x8] sm:$0xff]  ;;  %v2257_v19 = vsub.f32 %v24921_v25, %v2256_v44  ;;  %v1074_v58 = vadd.f32 %v24909_v5, %v991_v15  ;;  %v24935_v23 = vand.u32 4294901760, %v2680_v62 }
 0x131   :  { %v22780_v47 = vpop.f32.mrf.mxu0  ;;  %v22787_v20 = vpop.f32.mrf.mxu1 }
 0x132   :  { %v1750_v59 = vadd.f32 %v22780_v47, %v1663_v49  ;;  %v2683_v47 = vsel %vm72_vm0, %v1157_v52, 0  ;;  %v2258_v48 = vand.u32 4294901760, %v2257_v19 }
 0x133   :  { %v1739_v26 = vpop.f32.mrf.mxu0  ;;  %v1830_v36 = vpop.f32.mrf.mxu1  ;;  %v24943_v24 = vand.u32 4294901760, %v2683_v47 }
 0x134   :  { %v1837_v3 = vadd.f32 %v22787_v20, %v1750_v59  ;;  %v1740_v30 = vadd.f32 %v1739_v26, %v1657_v7  ;;  %v1068_v26 = vadd.f32 %v24913_v16, %v983_v21 }
 0x135   :  { %v24955_v8 = vsub.f32 %v2683_v47, %v24943_v24 }
 0x136   :  { %v1831_v31 = vadd.f32 %v1830_v36, %v1740_v30  ;;  %v1153_v30 = vadd.f32 %v24911_v11, %v1074_v58  ;;  %v24950_v36 = vsub.f32 %v2680_v62, %v24935_v23 }
 0x137   :  { %v22794_v32 = vpop.f32.mrf.mxu0  ;;  %v22801_v51 = vpop.f32.mrf.mxu1 }
 0x138   :  { %v1920_v33 = vadd.f32 %v22794_v32, %v1837_v3 }
 0x139   :  { %v1912_v34 = vpop.f32.mrf.mxu0  ;;  %v1994_v57 = vpop.f32.mrf.mxu1 }
 0x13a   :  { %v2003_v9 = vadd.f32 %v22801_v51, %v1920_v33  ;;  %v1913_v39 = vadd.f32 %v1912_v34, %v1831_v31  ;;  %v1147_v31 = vadd.f32 %v24915_v6, %v1068_v26  ;;  %v24957_v33 = vand.u32 4294901760, %v1153_v30 }
 0x13b   :  { %v2754_v51 = vand.u32 4294901760, %v24950_v36  ;;  %v2764_v6 = vand.u32 4294901760, %v24955_v8 }
 0x13c   :  { %v1995_v10 = vadd.f32 %v1994_v57, %v1913_v39  ;;  %v24960_v34 = vand.u32 4294901760, %v1147_v31 }
 0x13d   :  { %v22808_v14 = vpop.f32.mrf.mxu0  ;;  %v22815_v37 = vpop.f32.mrf.mxu1  ;;  %v2755_v39 = vsub.f32 %v24950_v36, %v2754_v51  ;;  %v2765_v40 = vsub.f32 %v24955_v8, %v2764_v6 }
 0x13e   :  { %v2086_v55 = vadd.f32 %v22808_v14, %v2003_v9  ;;  %v2802_v9 = vsub.f32 %v1153_v30, %v24957_v33  ;;  %v2809_v57 = vsub.f32 %v1147_v31, %v24960_v34  ;;  %v26531_v14 = vand.u32 4294901760, %v24896_v41 }
 0x13f   :  { %v2079_v49 = vpop.f32.mrf.mxu0  ;;  %v2158_v7 = vpop.f32.mrf.mxu1  ;;  %v2766_v46 = vand.u32 4294901760, %v2765_v40 }
 0x140   :  { %v2165_v53 = vadd.f32 %v22815_v37, %v2086_v55  ;;  %v2080_v56 = vadd.f32 %v2079_v49, %v1995_v10  ;;  %v2756_v10 = vand.u32 4294901760, %v2755_v39  ;;  %v2803_v45 = vand.u32 4294901760, %v2802_v9  ;;  %v3192_v37 = vld [vmem:[#allocation5 + $0x98] sm:$0xff]  ;;  %v3191_v49 = vld [vmem:[#allocation5 + $0x90] sm:$0xff] }
 0x141   :  { %v2810_v55 = vand.u32 4294901760, %v2809_v57  ;;  %v24990_v52 = vand.u32 4294901760, %v3192_v37 }
 0x142   :  { %v24931_v1 = vand.u32 4294901760, %v2165_v53  ;;  %v2159_v12 = vadd.f32 %v2158_v7, %v2080_v56  ;;  %v2804_v15 = vsub.f32 %v2802_v9, %v2803_v45  ;;  %v3189_v7 = vld [vmem:[#allocation5 + $0x28] sm:$0xff] }
 0x143   :  { %v3310_v56 = vsub.f32 %v3192_v37, %v24990_v52  ;;  %v25023_v58 = vand.u32 4294901760, %v3189_v7 }
 0x144   :  { %v2294_v59 = vsub.f32 %v2165_v53, %v24931_v1  ;;  %v24938_v20 = vand.u32 4294901760, %v2159_v12  ;;  %22816 = vmatprep.subr.mxu0 %v24931_v1 }
 0x145   :  { %22817 = vmatpush3.msra.mxu0 %v24931_v1 }
 0x146   :  { %v2301_v3 = vsub.f32 %v2159_v12, %v24938_v20  ;;  %22818 = vmatprep.subr.mxu0 %v24938_v20  ;;  %v2295_v5 = vand.u32 4294901760, %v2294_v59  ;;  %v3188_v12 = vld [vmem:[#allocation5 + $0x20] sm:$0xff] }
 0x147   :  { %22819 = vmatpush3.msra.mxu0 %v24938_v20 }
 0x148   :  { %22830 = vmatprep.subr.mxu0 %v2294_v59  ;;  %22821 = vmatmul.mubr.f32.vlgmr.msra.gmra.mxu0 %v2258_v48  ;;  %v2296_v43 = vsub.f32 %v2294_v59, %v2295_v5  ;;  %v2302_v16 = vand.u32 4294901760, %v2301_v3 }
 0x149   :  { %22831 = vmatpush3.msra.mxu0 %v2294_v59  ;;  %22834 = vmatprep.mubr.f32.mxu0 %v24896_v41  ;;  %v2811_v41 = vsub.f32 %v2809_v57, %v2810_v55  ;;  %v25027_v59 = vand.u32 4294901760, %v3188_v12 }
 0x14a   :  { %22832 = vmatprep.subr.mxu0 %v2301_v3  ;;  %v2297_v32 = vand.u32 4294901760, %v2296_v43  ;;  %v2303_v11 = vsub.f32 %v2301_v3, %v2302_v16  ;;  %v4198_v43 = vld [vmem:[#allocation7 + $0x20] sm:$0xff] }
 0x14b   :  { %22833 = vmatpush3.msra.mxu0 %v2301_v3  ;;  %v2812_v53 = vand.u32 4294901760, %v2811_v41 }
 0x14c   :  { %22823 = vmatprep.subr.mxu1 %v2297_v32  ;;  %22844 = vmatprep.subr.mxu0 %v2295_v5  ;;  %v2304_v38 = vand.u32 4294901760, %v2303_v11 }
 0x14d   :  { %22824 = vmatpush3.msra.mxu1 %v2297_v32  ;;  %22835 = vmatmul.mubr.f32.vlgmr.msra.gmra.mxu0 %v24921_v25  ;;  %v2805_v25 = vand.u32 4294901760, %v2804_v15 }
 0x14e   :  { %22845 = vmatpush3.msra.mxu0 %v2295_v5  ;;  %22825 = vmatprep.subr.mxu1 %v2304_v38 }
 0x14f   :  { %22846 = vmatprep.subr.mxu0 %v2302_v16  ;;  %22826 = vmatpush3.msra.mxu1 %v2304_v38 }
 0x150   :  { %22847 = vmatpush3.msra.mxu0 %v2302_v16  ;;  %22828 = vmatmul.mubr.f32.vlgmr.msra.gmra.mxu1 %v24918_v61  ;;  %v4201_v16 = vsel %vm72_vm0, %v4198_v43, 0 }
 0x151   :  { %22837 = vmatprep.subr.mxu1 %v24931_v1  ;;  %22848 = vmatprep.mubr.f32.mxu0 %v24893_v29  ;;  %v25074_v31 = vand.u32 4294901760, %v4201_v16 }
 0x152   :  { %22858 = vmatprep.subr.mxu0 %v24957_v33  ;;  %22838 = vmatpush3.msra.mxu1 %v24931_v1 }
 0x153   :  { %22849 = vmatmul.mubr.f32.vlgmr.msra.gmra.mxu0 %v24918_v61  ;;  %22839 = vmatprep.subr.mxu1 %v24938_v20 }
 0x154   :  { %22859 = vmatpush3.msra.mxu0 %v24957_v33  ;;  %22840 = vmatpush3.msra.mxu1 %v24938_v20 }
 0x155   :  { %22860 = vmatprep.subr.mxu0 %v24960_v34  ;;  %22841 = vmatprep.mubr.f32.mxu1 %v26531_v14 }
 0x156   :  { %22861 = vmatpush3.msra.mxu0 %v24960_v34  ;;  %22842 = vmatmul.mubr.f32.vlgmr.msra.gmra.mxu1 %v2256_v44  ;;  %v24994_v44 = vand.u32 4294901760, %v3191_v49 }
 0x157   :  { %22851 = vmatprep.subr.mxu1 %v24931_v1  ;;  %22862 = vmatprep.mubr.f32.mxu0 %v2756_v10 }
 0x158   :  { %22872 = vmatprep.subr.mxu0 %v2802_v9  ;;  %22852 = vmatpush3.msra.mxu1 %v24931_v1  ;;  %v3317_v19 = vsub.f32 %v3191_v49, %v24994_v44 }
 0x159   :  { %22863 = vmatmul.mubr.f32.vlgmr.msra.gmra.mxu0 %v2766_v46  ;;  %22853 = vmatprep.subr.mxu1 %v24938_v20 }
 0x15a   :  { %22873 = vmatpush3.msra.mxu0 %v2802_v9  ;;  %22854 = vmatpush3.msra.mxu1 %v24938_v20  ;;  %v3819_v20 = vsub.f32 %v3188_v12, %v25027_v59 }
 0x15b   :  { %22874 = vmatprep.subr.mxu0 %v2809_v57  ;;  %22855 = vmatprep.mubr.f32.mxu1 %v24893_v29  ;;  %v3311_v29 = vand.u32 4294901760, %v3310_v56 }
 0x15c   :  { %22875 = vmatpush3.msra.mxu0 %v2809_v57  ;;  %22856 = vmatmul.mubr.f32.vlgmr.msra.gmra.mxu1 %v24918_v61  ;;  %v3318_v61 = vand.u32 4294901760, %v3317_v19  ;;  %v3820_v26 = vand.u32 4294901760, %v3819_v20 }
 0x15d   :  { %22865 = vmatprep.subr.mxu1 %v2805_v25  ;;  %22876 = vmatprep.mubr.f32.mxu0 %v24950_v36  ;;  %v3312_v62 = vsub.f32 %v3310_v56, %v3311_v29  ;;  %v26532_v36 = vld [vmem:[#allocation12_spill] sm:$0xff] }
 0x15e   :  { %22886 = vmatprep.subr.mxu0 %v2803_v45  ;;  %22866 = vmatpush3.msra.mxu1 %v2805_v25  ;;  %v3319_v21 = vsub.f32 %v3317_v19, %v3318_v61  ;;  %v3821_v3 = vsub.f32 %v3819_v20, %v3820_v26 }
 0x15f   :  { %22877 = vmatmul.mubr.f32.vlgmr.msra.gmra.mxu0 %v24955_v8  ;;  %22867 = vmatprep.subr.mxu1 %v2812_v53  ;;  %v3313_v1 = vand.u32 4294901760, %v3312_v62  ;;  %v25077_v8 = vsub.f32 %v4201_v16, %v25074_v31 }
 0x160   :  { %22887 = vmatpush3.msra.mxu0 %v2803_v45  ;;  %22868 = vmatpush3.msra.mxu1 %v2812_v53  ;;  %v3320_v47 = vand.u32 4294901760, %v3319_v21  ;;  %v3822_v30 = vand.u32 4294901760, %v3821_v3 }
 0x161   :  { %22888 = vmatprep.subr.mxu0 %v2810_v55  ;;  %22869 = vmatprep.mubr.f32.mxu1 %v24935_v23  ;;  %v4275_v32 = vand.u32 4294901760, %v25077_v8 }
 0x162   :  { %22889 = vmatpush3.msra.mxu0 %v2810_v55  ;;  %22870 = vmatmul.mubr.f32.vlgmr.msra.gmra.mxu1 %v24943_v24 }
 0x163   :  { %22879 = vmatprep.subr.mxu1 %v24957_v33  ;;  %22883 = vmatprep.mubr.f32.mxu1 %v2754_v51  ;;  %v4276_v11 = vsub.f32 %v25077_v8, %v4275_v32 }
 0x164   :  { %22880 = vmatpush3.msra.mxu1 %v24957_v33  ;;  %22890 = vmatprep.mubr.f32.mxu0 %v24935_v23 }
 0x165   :  { %22881 = vmatprep.subr.mxu1 %v24960_v34  ;;  %22891 = vmatmul.mubr.f32.vlgmr.msra.gmra.mxu0 %v24943_v24 }
 0x166   :  { %22882 = vmatpush3.msra.mxu1 %v24960_v34  ;;  %22900 = vmatprep.subr.mxu0 %v24990_v52 }
 0x167   :  { %22884 = vmatmul.mubr.f32.vlgmr.msra.gmra.mxu1 %v2764_v6  ;;  %22893 = vmatprep.subr.mxu1 %v24957_v33 }
 0x168   :  { %22894 = vmatpush3.msra.mxu1 %v24957_v33  ;;  %22901 = vmatpush3.msra.mxu0 %v24990_v52  ;;  %v4277_v33 = vand.u32 4294901760, %v4276_v11 }
 0x169   :  { %22895 = vmatprep.subr.mxu1 %v24960_v34  ;;  %22902 = vmatprep.subr.mxu0 %v24994_v44 }
 0x16a   :  { %22896 = vmatpush3.msra.mxu1 %v24960_v34  ;;  %22897 = vmatprep.mubr.f32.mxu1 %v24935_v23  ;;  %v3812_v23 = vsub.f32 %v3189_v7, %v25023_v58 }
 0x16b   :  { %22903 = vmatpush3.msra.mxu0 %v24994_v44  ;;  %22904 = vmatprep.mubr.f32.mxu0 %v24726_v28 }
 0x16c   :  { %22898 = vmatmul.mubr.f32.vlgmr.msra.gmra.mxu1 %v24943_v24  ;;  %22905 = vmatmul.mubr.f32.vlgmr.msra.gmra.mxu0 %v24755_v50  ;;  %v3813_v48 = vand.u32 4294901760, %v3812_v23 }
 0x16d   :  { %22907 = vmatprep.subr.mxu1 %v3313_v1  ;;  %22914 = vmatprep.subr.mxu0 %v3310_v56 }
 0x16e   :  { %22908 = vmatpush3.msra.mxu1 %v3313_v1  ;;  %22915 = vmatpush3.msra.mxu0 %v3310_v56  ;;  %v3814_v24 = vsub.f32 %v3812_v23, %v3813_v48 }
 0x16f   :  { %22909 = vmatprep.subr.mxu1 %v3320_v47  ;;  %22916 = vmatprep.subr.mxu0 %v3317_v19 }
 0x170   :  { %22910 = vmatpush3.msra.mxu1 %v3320_v47  ;;  %22911 = vmatprep.mubr.f32.mxu1 %v24682_v0  ;;  %v3815_v5 = vand.u32 4294901760, %v3814_v24 }
 0x171   :  { %22917 = vmatpush3.msra.mxu0 %v3317_v19  ;;  %22918 = vmatprep.mubr.f32.mxu0 %v24692_v18 }
 0x172   :  { %22912 = vmatmul.mubr.f32.vlgmr.msra.gmra.mxu1 %v24707_v27  ;;  %22919 = vmatmul.mubr.f32.vlgmr.msra.gmra.mxu0 %v24721_v35 }
 0x173   :  { %22921 = vmatprep.subr.mxu1 %v24990_v52  ;;  %22928 = vmatprep.subr.mxu0 %v3311_v29 }
 0x174   :  { %22922 = vmatpush3.msra.mxu1 %v24990_v52  ;;  %22929 = vmatpush3.msra.mxu0 %v3311_v29 }
 0x175   :  { %22923 = vmatprep.subr.mxu1 %v24994_v44  ;;  %22930 = vmatprep.subr.mxu0 %v3318_v61 }
 0x176   :  { %22924 = vmatpush3.msra.mxu1 %v24994_v44  ;;  %22925 = vmatprep.mubr.f32.mxu1 %v24702_v22 }
 0x177   :  { %22931 = vmatpush3.msra.mxu0 %v3318_v61  ;;  %22932 = vmatprep.mubr.f32.mxu0 %v24682_v0 }
 0x178   :  { %22926 = vmatmul.mubr.f32.vlgmr.msra.gmra.mxu1 %v24736_v42  ;;  %22933 = vmatmul.mubr.f32.vlgmr.msra.gmra.mxu0 %v24707_v27 }
 0x179   :  { %22935 = vmatprep.subr.mxu1 %v24990_v52  ;;  %22942 = vmatprep.subr.mxu0 %v25023_v58 }
 0x17a   :  { %22936 = vmatpush3.msra.mxu1 %v24990_v52  ;;  %22943 = vmatpush3.msra.mxu0 %v25023_v58 }
 0x17b   :  { %22937 = vmatprep.subr.mxu1 %v24994_v44  ;;  %22944 = vmatprep.subr.mxu0 %v25027_v59 }
 0x17c   :  { %22938 = vmatpush3.msra.mxu1 %v24994_v44  ;;  %22939 = vmatprep.mubr.f32.mxu1 %v24682_v0 }
 0x17d   :  { %22945 = vmatpush3.msra.mxu0 %v25027_v59  ;;  %22946 = vmatprep.mubr.f32.mxu0 %v24797_v2 }
 0x17e   :  { %22940 = vmatmul.mubr.f32.vlgmr.msra.gmra.mxu1 %v24707_v27  ;;  %22947 = vmatmul.mubr.f32.vlgmr.msra.gmra.mxu0 %v24815_v17 }
 0x17f   :  { %22949 = vmatprep.subr.mxu1 %v3815_v5  ;;  %22956 = vmatprep.subr.mxu0 %v3812_v23 }
 0x180   :  { %22950 = vmatpush3.msra.mxu1 %v3815_v5  ;;  %22957 = vmatpush3.msra.mxu0 %v3812_v23 }
 0x181   :  { %22951 = vmatprep.subr.mxu1 %v3822_v30  ;;  %22958 = vmatprep.subr.mxu0 %v3819_v20 }
 0x182   :  { %22952 = vmatpush3.msra.mxu1 %v3822_v30  ;;  %22953 = vmatprep.mubr.f32.mxu1 %v24766_v54 }
 0x183   :  { %22959 = vmatpush3.msra.mxu0 %v3819_v20  ;;  %22960 = vmatprep.mubr.f32.mxu0 %v24771_v4 }
 0x184   :  { %22954 = vmatmul.mubr.f32.vlgmr.msra.gmra.mxu1 %v24782_v60  ;;  %22961 = vmatmul.mubr.f32.vlgmr.msra.gmra.mxu0 %v24792_v63 }
 0x185   :  { %22963 = vmatprep.subr.mxu1 %v25023_v58  ;;  %22970 = vmatprep.subr.mxu0 %v3813_v48 }
 0x186   :  { %22964 = vmatpush3.msra.mxu1 %v25023_v58  ;;  %22971 = vmatpush3.msra.mxu0 %v3813_v48 }
 0x187   :  { %22965 = vmatprep.subr.mxu1 %v25027_v59  ;;  %22972 = vmatprep.subr.mxu0 %v3820_v26 }
 0x188   :  { %22966 = vmatpush3.msra.mxu1 %v25027_v59  ;;  %22967 = vmatprep.mubr.f32.mxu1 %v24778_v13 }
 0x189   :  { %22973 = vmatpush3.msra.mxu0 %v3820_v26  ;;  %22974 = vmatprep.mubr.f32.mxu0 %v24766_v54 }
 0x18a   :  { %22968 = vmatmul.mubr.f32.vlgmr.msra.gmra.mxu1 %v26532_v36  ;;  %22975 = vmatmul.mubr.f32.vlgmr.msra.gmra.mxu0 %v24782_v60 }
 0x18b   :  { %22977 = vmatprep.subr.mxu1 %v25023_v58  ;;  %22981 = vmatprep.mubr.f32.mxu1 %v24766_v54 }
 0x18c   :  { %22978 = vmatpush3.msra.mxu1 %v25023_v58  ;;  %22988 = vmatprep.mubr.f32.mxu0 %v4277_v33 }
 0x18d   :  { %22979 = vmatprep.subr.mxu1 %v25027_v59 }
 0x18e   :  { %22980 = vmatpush3.msra.mxu1 %v25027_v59 }
 0x18f   :  { %22982 = vmatmul.mubr.f32.vlgmr.msra.gmra.mxu1 %v24782_v60 }
 0x190   :  { %22995 = vmatprep.mubr.f32.mxu1 %v25074_v31 }
 0x208   :  { %v22822_v51 = vpop.f32.mrf.mxu0 }
 0x20a   :  { %v25084_v38 = vpop.f32.mrf.mxu0 }
 0x20d   :  { %v22836_v34 = vpop.f32.mrf.mxu0 }
 0x20f   :  { %v25086_v6 = vpop.f32.mrf.mxu0 }
 0x210   :  { %v22829_v9 = vpop.f32.mrf.mxu1 }
 0x211   :  { %v2348_v39 = vadd.f32 %v22829_v9, %v22822_v51 }
 0x212   :  { %v25088_v57 = vpop.f32.mrf.mxu1 }
 0x213   :  { %v2431_v40 = vadd.f32 %v22836_v34, %v2348_v39  ;;  %v22850_v10 = vpop.f32.mrf.mxu0 }
 0x215   :  { %v25090_v45 = vpop.f32.mrf.mxu0 }
 0x216   :  { %v22843_v14 = vpop.f32.mrf.mxu1 }
 0x217   :  { %v2514_v46 = vadd.f32 %v22843_v14, %v2431_v40 }
 0x218   :  { %v25092_v55 = vpop.f32.mrf.mxu1 }
 0x219   :  { %v2597_v37 = vadd.f32 %v22850_v10, %v2514_v46  ;;  %v22864_v15 = vpop.f32.mrf.mxu0 }
 0x21b   :  { %v25094_v49 = vpop.f32.mrf.mxu0 }
 0x21c   :  { %v22857_v41 = vpop.f32.mrf.mxu1 }
 0x21d   :  { %v2676_v52 = vadd.f32 %v22857_v41, %v2597_v37  ;;  %v4199_v41 = vld [vmem:[#allocation7 + $0x28] sm:$0xff] }
 0x21e   :  { %v25096_v25 = vpop.f32.mrf.mxu1 }
 0x21f   :  { %v2769_v44 = vadd.f32 %v22864_v15, %v2676_v52  ;;  %v22878_v53 = vpop.f32.mrf.mxu0 }
 0x221   :  { %v25098_v56 = vpop.f32.mrf.mxu0 }
 0x222   :  { %v22871_v19 = vpop.f32.mrf.mxu1 }
 0x223   :  { %v2856_v29 = vadd.f32 %v22871_v19, %v2769_v44 }
 0x224   :  { %v25100_v61 = vpop.f32.mrf.mxu1 }
 0x225   :  { %v2939_v62 = vadd.f32 %v22878_v53, %v2856_v29  ;;  %v22892_v21 = vpop.f32.mrf.mxu0 }
 0x227   :  { %v22885_v7 = vpop.f32.mrf.mxu1  ;;  %v25102_v12 = vpop.f32.mrf.mxu0 }
 0x228   :  { %v3022_v1 = vadd.f32 %v22885_v7, %v2939_v62  ;;  %26533 = vst [vmem:[#allocation12_spill] sm:$0xff] %v25102_v12  ;;  %v4204_v62 = vsel %vm72_vm0, %v4199_v41, 0 }
 0x229   :  { %v25104_v47 = vpop.f32.mrf.mxu1 }
 0x22a   :  { %26534 = vst [vmem:[#allocation13_spill] sm:$0xff] %v25104_v47  ;;  %v3105_v58 = vadd.f32 %v22892_v21, %v3022_v1 }
 0x22c   :  { %v22899_v59 = vpop.f32.mrf.mxu1  ;;  %v22906_v23 = vpop.f32.mrf.mxu0 }
 0x22d   :  { %v25106_v20 = vadd.f32 %v22899_v59, %v3105_v58  ;;  %v25111_v58 = vand.u32 4294901760, %v4204_v62 }
 0x22e   :  { %v25108_v48 = vpop.f32.mrf.mxu1  ;;  %v3266_v26 = vpop.f32.mrf.mxu0 }
 0x22f   :  { %26535 = vst [vmem:[#allocation14_spill] sm:$0xff] %v25108_v48 }
 0x232   :  { %v22913_v24 = vpop.f32.mrf.mxu1  ;;  %v22920_v3 = vpop.f32.mrf.mxu0 }
 0x233   :  { %v3364_v5 = vadd.f32 %v22913_v24, %v22906_v23 }
 0x234   :  { %v3357_v30 = vpop.f32.mrf.mxu1  ;;  %v3439_v43 = vpop.f32.mrf.mxu0 }
 0x235   :  { %v3447_v16 = vadd.f32 %v22920_v3, %v3364_v5  ;;  %v3358_v11 = vadd.f32 %v3357_v30, %v3266_v26  ;;  %v25114_v5 = vsub.f32 %v4204_v62, %v25111_v58 }
 0x237   :  { %v3440_v33 = vadd.f32 %v3439_v43, %v3358_v11 }
 0x238   :  { %v22927_v51 = vpop.f32.mrf.mxu1  ;;  %v22934_v34 = vpop.f32.mrf.mxu0 }
 0x239   :  { %v3530_v9 = vadd.f32 %v22927_v51, %v3447_v16  ;;  %v4285_v51 = vand.u32 4294901760, %v25114_v5 }
 0x23a   :  { %v3521_v39 = vpop.f32.mrf.mxu1  ;;  %v3606_v40 = vpop.f32.mrf.mxu0 }
 0x23b   :  { %v3613_v10 = vadd.f32 %v22934_v34, %v3530_v9  ;;  %v3522_v14 = vadd.f32 %v3521_v39, %v3440_v33 }
 0x23d   :  { %v3607_v46 = vadd.f32 %v3606_v40, %v3522_v14 }
 0x23e   :  { %v22941_v37 = vpop.f32.mrf.mxu1  ;;  %v22948_v15 = vpop.f32.mrf.mxu0 }
 0x23f   :  { %v3692_v52 = vadd.f32 %v22941_v37, %v3613_v10 }
 0x240   :  { %v3685_v44 = vpop.f32.mrf.mxu1  ;;  %v3768_v53 = vpop.f32.mrf.mxu0 }
 0x241   :  { %v3779_v19 = vadd.f32 %v22948_v15, %v3692_v52  ;;  %v3686_v29 = vadd.f32 %v3685_v44, %v3607_v46  ;;  %v4286_v46 = vsub.f32 %v25114_v5, %v4285_v51 }
 0x243   :  { %v3769_v21 = vadd.f32 %v3768_v53, %v3686_v29  ;;  %v4287_v53 = vand.u32 4294901760, %v4286_v46 }
 0x244   :  { %v22955_v7 = vpop.f32.mrf.mxu1  ;;  %v22962_v1 = vpop.f32.mrf.mxu0 }
 0x245   :  { %v3866_v59 = vadd.f32 %v22955_v7, %v3779_v19  ;;  %v4715_v19 = vld [vmem:[#allocation5 + $0xa8] sm:$0xff] }
 0x246   :  { %v3859_v23 = vpop.f32.mrf.mxu1  ;;  %v3941_v26 = vpop.f32.mrf.mxu0  ;;  %v25118_v7 = vand.u32 4294901760, %v4715_v19 }
 0x247   :  { %v3949_v24 = vadd.f32 %v22962_v1, %v3866_v59  ;;  %v3860_v3 = vadd.f32 %v3859_v23, %v3769_v21  ;;  %v4714_v21 = vld [vmem:[#allocation5 + $0xa0] sm:$0xff] }
 0x248   :  { %v25121_v23 = vand.u32 4294901760, %v4714_v21 }
 0x249   :  { %v3942_v30 = vadd.f32 %v3941_v26, %v3860_v3  ;;  %v4833_v3 = vsub.f32 %v4715_v19, %v25118_v7 }
 0x24a   :  { %v22969_v43 = vpop.f32.mrf.mxu1  ;;  %v22976_v16 = vpop.f32.mrf.mxu0 }
 0x24b   :  { %v4032_v11 = vadd.f32 %v22969_v43, %v3949_v24  ;;  %v4840_v43 = vsub.f32 %v4714_v21, %v25121_v23 }
 0x24c   :  { %v4023_v33 = vpop.f32.mrf.mxu1  ;;  %v4108_v39 = vpop.f32.mrf.mxu0 }
 0x24d   :  { %v4115_v34 = vadd.f32 %v22976_v16, %v4032_v11  ;;  %v4024_v9 = vadd.f32 %v4023_v33, %v3942_v30  ;;  %v4834_v16 = vand.u32 4294901760, %v4833_v3  ;;  %v4841_v11 = vand.u32 4294901760, %v4840_v43 }
 0x24f   :  { %v4109_v40 = vadd.f32 %v4108_v39, %v4024_v9  ;;  %v22983_v10 = vpop.f32.mrf.mxu1  ;;  %v4842_v33 = vsub.f32 %v4840_v43, %v4841_v11 }
 0x250   :  { %v4194_v14 = vadd.f32 %v22983_v10, %v4115_v34  ;;  %v4712_v34 = vld [vmem:[#allocation5 + $0x38] sm:$0xff] }
 0x251   :  { %v4187_v37 = vpop.f32.mrf.mxu1  ;;  %v4843_v9 = vand.u32 4294901760, %v4842_v33 }
 0x252   :  { %v4235_v15 = vand.u32 4294901760, %v4194_v14  ;;  %v4188_v41 = vadd.f32 %v4187_v37, %v4109_v40 }
 0x254   :  { %v4323_v52 = vsub.f32 %v4194_v14, %v4235_v15  ;;  %v4238_v44 = vand.u32 4294901760, %v4188_v41  ;;  %22984 = vmatprep.subr.mxu0 %v4235_v15 }
 0x255   :  { %22985 = vmatpush3.msra.mxu0 %v4235_v15 }
 0x256   :  { %v4330_v29 = vsub.f32 %v4188_v41, %v4238_v44  ;;  %22986 = vmatprep.subr.mxu0 %v4238_v44  ;;  %v4324_v62 = vand.u32 4294901760, %v4323_v52  ;;  %v5721_v41 = vld [vmem:[#allocation7 + $0x30] sm:$0xff] }
 0x257   :  { %22987 = vmatpush3.msra.mxu0 %v4238_v44 }
 0x258   :  { %22998 = vmatprep.subr.mxu0 %v4323_v52  ;;  %22989 = vmatmul.mubr.f32.vlgmr.msra.gmra.mxu0 %v4287_v53  ;;  %v4325_v1 = vsub.f32 %v4323_v52, %v4324_v62  ;;  %v4331_v59 = vand.u32 4294901760, %v4330_v29 }
 0x259   :  { %22999 = vmatpush3.msra.mxu0 %v4323_v52  ;;  %23002 = vmatprep.mubr.f32.mxu0 %v25077_v8  ;;  %v5724_v52 = vsel %vm72_vm0, %v5721_v41, 0 }
 0x25a   :  { %23000 = vmatprep.subr.mxu0 %v4330_v29  ;;  %v4326_v26 = vand.u32 4294901760, %v4325_v1  ;;  %v4332_v24 = vsub.f32 %v4330_v29, %v4331_v59 }
 0x25b   :  { %23001 = vmatpush3.msra.mxu0 %v4330_v29 }
 0x25c   :  { %22991 = vmatprep.subr.mxu1 %v4326_v26  ;;  %23012 = vmatprep.subr.mxu0 %v4324_v62  ;;  %v4333_v30 = vand.u32 4294901760, %v4332_v24 }
 0x25d   :  { %22992 = vmatpush3.msra.mxu1 %v4326_v26  ;;  %23003 = vmatmul.mubr.f32.vlgmr.msra.gmra.mxu0 %v25114_v5  ;;  %v4835_v5 = vsub.f32 %v4833_v3, %v4834_v16 }
 0x25e   :  { %23013 = vmatpush3.msra.mxu0 %v4324_v62  ;;  %22993 = vmatprep.subr.mxu1 %v4333_v30 }
 0x25f   :  { %23014 = vmatprep.subr.mxu0 %v4331_v59  ;;  %22994 = vmatpush3.msra.mxu1 %v4333_v30  ;;  %v4836_v8 = vand.u32 4294901760, %v4835_v5 }
 0x260   :  { %23015 = vmatpush3.msra.mxu0 %v4331_v59  ;;  %22996 = vmatmul.mubr.f32.vlgmr.msra.gmra.mxu1 %v25111_v58 }
 0x261   :  { %23005 = vmatprep.subr.mxu1 %v4235_v15  ;;  %23009 = vmatprep.mubr.f32.mxu1 %v4275_v32  ;;  %v4711_v32 = vld [vmem:[#allocation5 + $0x30] sm:$0xff] }
 0x262   :  { %23006 = vmatpush3.msra.mxu1 %v4235_v15  ;;  %23016 = vmatprep.mubr.f32.mxu0 %v25074_v31  ;;  %v25141_v39 = vand.u32 4294901760, %v4711_v32 }
 0x263   :  { %23007 = vmatprep.subr.mxu1 %v4238_v44  ;;  %23017 = vmatmul.mubr.f32.vlgmr.msra.gmra.mxu0 %v25111_v58 }
 0x264   :  { %23008 = vmatpush3.msra.mxu1 %v4238_v44  ;;  %23026 = vmatprep.subr.mxu0 %v25118_v7 }
 0x265   :  { %23010 = vmatmul.mubr.f32.vlgmr.msra.gmra.mxu1 %v4285_v51  ;;  %23019 = vmatprep.subr.mxu1 %v4235_v15  ;;  %v25137_v51 = vand.u32 4294901760, %v4712_v34 }
 0x266   :  { %23020 = vmatpush3.msra.mxu1 %v4235_v15  ;;  %23027 = vmatpush3.msra.mxu0 %v25118_v7 }
 0x267   :  { %23021 = vmatprep.subr.mxu1 %v4238_v44  ;;  %23028 = vmatprep.subr.mxu0 %v25121_v23 }
 0x268   :  { %23022 = vmatpush3.msra.mxu1 %v4238_v44  ;;  %23023 = vmatprep.mubr.f32.mxu1 %v25074_v31  ;;  %v5335_v31 = vsub.f32 %v4712_v34, %v25137_v51  ;;  %v25188_v44 = vand.u32 4294901760, %v5724_v52 }
 0x269   :  { %23029 = vmatpush3.msra.mxu0 %v25121_v23  ;;  %23030 = vmatprep.mubr.f32.mxu0 %v24726_v28 }
 0x26a   :  { %23024 = vmatmul.mubr.f32.vlgmr.msra.gmra.mxu1 %v25111_v58  ;;  %23031 = vmatmul.mubr.f32.vlgmr.msra.gmra.mxu0 %v24755_v50  ;;  %v5342_v58 = vsub.f32 %v4711_v32, %v25141_v39  ;;  %v5336_v40 = vand.u32 4294901760, %v5335_v31  ;;  %v25191_v53 = vsub.f32 %v5724_v52, %v25188_v44 }
 0x26b   :  { %23033 = vmatprep.subr.mxu1 %v4836_v8  ;;  %23040 = vmatprep.subr.mxu0 %v4833_v3 }
 0x26c   :  { %23034 = vmatpush3.msra.mxu1 %v4836_v8  ;;  %23041 = vmatpush3.msra.mxu0 %v4833_v3  ;;  %v5343_v10 = vand.u32 4294901760, %v5342_v58  ;;  %v5337_v14 = vsub.f32 %v5335_v31, %v5336_v40  ;;  %v5798_v19 = vand.u32 4294901760, %v25191_v53 }
 0x26d   :  { %23035 = vmatprep.subr.mxu1 %v4843_v9  ;;  %23042 = vmatprep.subr.mxu0 %v4840_v43 }
 0x26e   :  { %23036 = vmatpush3.msra.mxu1 %v4843_v9  ;;  %23037 = vmatprep.mubr.f32.mxu1 %v24682_v0  ;;  %v5344_v46 = vsub.f32 %v5342_v58, %v5343_v10  ;;  %v5338_v37 = vand.u32 4294901760, %v5337_v14  ;;  %v5799_v29 = vsub.f32 %v25191_v53, %v5798_v19 }
 0x26f   :  { %23043 = vmatpush3.msra.mxu0 %v4840_v43  ;;  %23044 = vmatprep.mubr.f32.mxu0 %v24692_v18 }
 0x270   :  { %23038 = vmatmul.mubr.f32.vlgmr.msra.gmra.mxu1 %v24707_v27  ;;  %23045 = vmatmul.mubr.f32.vlgmr.msra.gmra.mxu0 %v24721_v35  ;;  %v5345_v15 = vand.u32 4294901760, %v5344_v46  ;;  %v5800_v62 = vand.u32 4294901760, %v5799_v29 }
 0x271   :  { %23047 = vmatprep.subr.mxu1 %v25118_v7  ;;  %23054 = vmatprep.subr.mxu0 %v4834_v16 }
 0x272   :  { %23048 = vmatpush3.msra.mxu1 %v25118_v7  ;;  %23055 = vmatpush3.msra.mxu0 %v4834_v16 }
 0x273   :  { %23049 = vmatprep.subr.mxu1 %v25121_v23  ;;  %23056 = vmatprep.subr.mxu0 %v4841_v11 }
 0x274   :  { %23050 = vmatpush3.msra.mxu1 %v25121_v23  ;;  %23051 = vmatprep.mubr.f32.mxu1 %v24702_v22 }
 0x275   :  { %23057 = vmatpush3.msra.mxu0 %v4841_v11  ;;  %23058 = vmatprep.mubr.f32.mxu0 %v24682_v0 }
 0x276   :  { %23052 = vmatmul.mubr.f32.vlgmr.msra.gmra.mxu1 %v24736_v42  ;;  %23059 = vmatmul.mubr.f32.vlgmr.msra.gmra.mxu0 %v24707_v27 }
 0x277   :  { %23061 = vmatprep.subr.mxu1 %v25118_v7  ;;  %23068 = vmatprep.subr.mxu0 %v25137_v51 }
 0x278   :  { %23062 = vmatpush3.msra.mxu1 %v25118_v7  ;;  %23069 = vmatpush3.msra.mxu0 %v25137_v51 }
 0x279   :  { %23063 = vmatprep.subr.mxu1 %v25121_v23  ;;  %23070 = vmatprep.subr.mxu0 %v25141_v39 }
 0x27a   :  { %23064 = vmatpush3.msra.mxu1 %v25121_v23  ;;  %23065 = vmatprep.mubr.f32.mxu1 %v24682_v0 }
 0x27b   :  { %23071 = vmatpush3.msra.mxu0 %v25141_v39  ;;  %23072 = vmatprep.mubr.f32.mxu0 %v24797_v2 }
 0x27c   :  { %23066 = vmatmul.mubr.f32.vlgmr.msra.gmra.mxu1 %v24707_v27  ;;  %23073 = vmatmul.mubr.f32.vlgmr.msra.gmra.mxu0 %v24815_v17 }
 0x27d   :  { %23075 = vmatprep.subr.mxu1 %v5338_v37  ;;  %23082 = vmatprep.subr.mxu0 %v5335_v31 }
 0x27e   :  { %23076 = vmatpush3.msra.mxu1 %v5338_v37  ;;  %23083 = vmatpush3.msra.mxu0 %v5335_v31 }
 0x27f   :  { %23077 = vmatprep.subr.mxu1 %v5345_v15  ;;  %23084 = vmatprep.subr.mxu0 %v5342_v58 }
 0x280   :  { %23078 = vmatpush3.msra.mxu1 %v5345_v15  ;;  %23079 = vmatprep.mubr.f32.mxu1 %v24766_v54 }
 0x281   :  { %23085 = vmatpush3.msra.mxu0 %v5342_v58  ;;  %23086 = vmatprep.mubr.f32.mxu0 %v24771_v4 }
 0x282   :  { %23080 = vmatmul.mubr.f32.vlgmr.msra.gmra.mxu1 %v24782_v60  ;;  %23087 = vmatmul.mubr.f32.vlgmr.msra.gmra.mxu0 %v24792_v63 }
 0x283   :  { %23089 = vmatprep.subr.mxu1 %v25137_v51  ;;  %23096 = vmatprep.subr.mxu0 %v5336_v40 }
 0x284   :  { %23090 = vmatpush3.msra.mxu1 %v25137_v51  ;;  %23097 = vmatpush3.msra.mxu0 %v5336_v40 }
 0x285   :  { %23091 = vmatprep.subr.mxu1 %v25141_v39  ;;  %23098 = vmatprep.subr.mxu0 %v5343_v10 }
 0x286   :  { %23092 = vmatpush3.msra.mxu1 %v25141_v39  ;;  %23093 = vmatprep.mubr.f32.mxu1 %v24778_v13 }
 0x287   :  { %23099 = vmatpush3.msra.mxu0 %v5343_v10  ;;  %23100 = vmatprep.mubr.f32.mxu0 %v24766_v54 }
 0x288   :  { %23094 = vmatmul.mubr.f32.vlgmr.msra.gmra.mxu1 %v26532_v36  ;;  %23101 = vmatmul.mubr.f32.vlgmr.msra.gmra.mxu0 %v24782_v60 }
 0x289   :  { %23103 = vmatprep.subr.mxu1 %v25137_v51  ;;  %23107 = vmatprep.mubr.f32.mxu1 %v24766_v54 }
 0x28a   :  { %23104 = vmatpush3.msra.mxu1 %v25137_v51  ;;  %23114 = vmatprep.mubr.f32.mxu0 %v5800_v62 }
 0x28b   :  { %23105 = vmatprep.subr.mxu1 %v25141_v39 }
 0x28c   :  { %23106 = vmatpush3.msra.mxu1 %v25141_v39 }
 0x28d   :  { %23108 = vmatmul.mubr.f32.vlgmr.msra.gmra.mxu1 %v24782_v60 }
 0x28e   :  { %23121 = vmatprep.mubr.f32.mxu1 %v25188_v44 }
 0x318   :  { %v22990_v21 = vpop.f32.mrf.mxu0 }
 0x31a   :  { %v25198_v7 = vpop.f32.mrf.mxu0 }
 0x31d   :  { %v23004_v1 = vpop.f32.mrf.mxu0 }
 0x31f   :  { %v25200_v59 = vpop.f32.mrf.mxu0 }
 0x320   :  { %v22997_v23 = vpop.f32.mrf.mxu1 }
 0x321   :  { %v4377_v26 = vadd.f32 %v22997_v23, %v22990_v21 }
 0x322   :  { %v25202_v24 = vpop.f32.mrf.mxu1 }
 0x323   :  { %v4460_v3 = vadd.f32 %v23004_v1, %v4377_v26  ;;  %v23018_v30 = vpop.f32.mrf.mxu0 }
 0x325   :  { %v23011_v43 = vpop.f32.mrf.mxu1  ;;  %v25204_v11 = vpop.f32.mrf.mxu0 }
 0x326   :  { %v4543_v16 = vadd.f32 %v23011_v43, %v4460_v3  ;;  %26536 = vst [vmem:[#allocation15_spill] sm:$0xff] %v25204_v11 }
 0x327   :  { %v25206_v5 = vpop.f32.mrf.mxu1 }
 0x328   :  { %v4626_v33 = vadd.f32 %v23018_v30, %v4543_v16 }
 0x32a   :  { %v23025_v34 = vpop.f32.mrf.mxu1  ;;  %v23032_v8 = vpop.f32.mrf.mxu0 }
 0x32b   :  { %v4705_v32 = vadd.f32 %v23025_v34, %v4626_v33 }
 0x32c   :  { %v25208_v9 = vpop.f32.mrf.mxu1  ;;  %v4789_v51 = vpop.f32.mrf.mxu0 }
 0x32d   :  { %26537 = vst [vmem:[#allocation16_spill] sm:$0xff] %v25208_v9  ;;  %v25211_v39 = vadd.f32 %v4705_v32, %v25106_v20  ;;  %v5722_v20 = vld [vmem:[#allocation7 + $0x38] sm:$0xff] }
 0x32e   :  { %v5727_v32 = vsel %vm72_vm0, %v5722_v20, 0 }
 0x330   :  { %v23039_v31 = vpop.f32.mrf.mxu1  ;;  %v23046_v58 = vpop.f32.mrf.mxu0 }
 0x331   :  { %v4887_v40 = vadd.f32 %v23039_v31, %v23032_v8 }
 0x332   :  { %v4880_v10 = vpop.f32.mrf.mxu1  ;;  %v4962_v14 = vpop.f32.mrf.mxu0 }
 0x333   :  { %v4970_v46 = vadd.f32 %v23046_v58, %v4887_v40  ;;  %v4881_v37 = vadd.f32 %v4880_v10, %v4789_v51  ;;  %v25214_v40 = vand.u32 4294901760, %v5727_v32 }
 0x335   :  { %v4963_v15 = vadd.f32 %v4962_v14, %v4881_v37 }
 0x336   :  { %v23053_v41 = vpop.f32.mrf.mxu1  ;;  %v23060_v52 = vpop.f32.mrf.mxu0 }
 0x337   :  { %v5053_v29 = vadd.f32 %v23053_v41, %v4970_v46  ;;  %v25217_v41 = vsub.f32 %v5727_v32, %v25214_v40 }
 0x338   :  { %v5044_v62 = vpop.f32.mrf.mxu1  ;;  %v5129_v21 = vpop.f32.mrf.mxu0 }
 0x339   :  { %v5136_v1 = vadd.f32 %v23060_v52, %v5053_v29  ;;  %v5045_v23 = vadd.f32 %v5044_v62, %v4963_v15 }
 0x33b   :  { %v5130_v26 = vadd.f32 %v5129_v21, %v5045_v23  ;;  %v5808_v23 = vand.u32 4294901760, %v25217_v41 }
 0x33c   :  { %v23067_v3 = vpop.f32.mrf.mxu1  ;;  %v23074_v30 = vpop.f32.mrf.mxu0 }
 0x33d   :  { %v5215_v43 = vadd.f32 %v23067_v3, %v5136_v1 }
 0x33e   :  { %v5208_v16 = vpop.f32.mrf.mxu1  ;;  %v5291_v33 = vpop.f32.mrf.mxu0 }
 0x33f   :  { %v5302_v34 = vadd.f32 %v23074_v30, %v5215_v43  ;;  %v5209_v8 = vadd.f32 %v5208_v16, %v5130_v26 }
 0x341   :  { %v5292_v51 = vadd.f32 %v5291_v33, %v5209_v8  ;;  %v5809_v33 = vsub.f32 %v25217_v41, %v5808_v23 }
 0x342   :  { %v23081_v31 = vpop.f32.mrf.mxu1  ;;  %v23088_v58 = vpop.f32.mrf.mxu0 }
 0x343   :  { %v5389_v10 = vadd.f32 %v23081_v31, %v5302_v34 }
 0x344   :  { %v5382_v14 = vpop.f32.mrf.mxu1  ;;  %v5464_v46 = vpop.f32.mrf.mxu0 }
 0x345   :  { %v5472_v37 = vadd.f32 %v23088_v58, %v5389_v10  ;;  %v5383_v15 = vadd.f32 %v5382_v14, %v5292_v51  ;;  %v5810_v58 = vand.u32 4294901760, %v5809_v33  ;;  %v6238_v10 = vld [vmem:[#allocation5 + $0xb8] sm:$0xff]  ;;  %v6235_v33 = vld [vmem:[#allocation5 + $0x48] sm:$0xff] }
 0x347   :  { %v5465_v52 = vadd.f32 %v5464_v46, %v5383_v15  ;;  %v25221_v15 = vand.u32 4294901760, %v6238_v10 }
 0x348   :  { %v23095_v29 = vpop.f32.mrf.mxu1  ;;  %v23102_v62 = vpop.f32.mrf.mxu0 }
 0x349   :  { %v5555_v21 = vadd.f32 %v23095_v29, %v5472_v37  ;;  %v6237_v37 = vld [vmem:[#allocation5 + $0xb0] sm:$0xff] }
 0x34a   :  { %v5546_v1 = vpop.f32.mrf.mxu1  ;;  %v5631_v30 = vpop.f32.mrf.mxu0 }
 0x34b   :  { %v5638_v26 = vadd.f32 %v23102_v62, %v5555_v21  ;;  %v5547_v3 = vadd.f32 %v5546_v1, %v5465_v52  ;;  %v25224_v62 = vand.u32 4294901760, %v6237_v37 }
 0x34d   :  { %v5632_v20 = vadd.f32 %v5631_v30, %v5547_v3  ;;  %v23109_v43 = vpop.f32.mrf.mxu1  ;;  %v6363_v30 = vsub.f32 %v6237_v37, %v25224_v62 }
 0x34e   :  { %v5717_v16 = vadd.f32 %v23109_v43, %v5638_v26  ;;  %v6356_v26 = vsub.f32 %v6238_v10, %v25221_v15 }
 0x34f   :  { %v5710_v34 = vpop.f32.mrf.mxu1  ;;  %v6364_v43 = vand.u32 4294901760, %v6363_v30 }
 0x350   :  { %v5758_v8 = vand.u32 4294901760, %v5717_v16  ;;  %v5711_v51 = vadd.f32 %v5710_v34, %v5632_v20  ;;  %v6357_v20 = vand.u32 4294901760, %v6356_v26 }
 0x352   :  { %v5846_v32 = vsub.f32 %v5717_v16, %v5758_v8  ;;  %v5761_v31 = vand.u32 4294901760, %v5711_v51  ;;  %23110 = vmatprep.subr.mxu0 %v5758_v8  ;;  %v6365_v16 = vsub.f32 %v6363_v30, %v6364_v43 }
 0x353   :  { %23111 = vmatpush3.msra.mxu0 %v5758_v8 }
 0x354   :  { %v5853_v14 = vsub.f32 %v5711_v51, %v5761_v31  ;;  %23112 = vmatprep.subr.mxu0 %v5761_v31  ;;  %v5847_v46 = vand.u32 4294901760, %v5846_v32  ;;  %v6366_v34 = vand.u32 4294901760, %v6365_v16 }
 0x355   :  { %23113 = vmatpush3.msra.mxu0 %v5761_v31 }
 0x356   :  { %23124 = vmatprep.subr.mxu0 %v5846_v32  ;;  %23115 = vmatmul.mubr.f32.vlgmr.msra.gmra.mxu0 %v5810_v58  ;;  %v5848_v52 = vsub.f32 %v5846_v32, %v5847_v46  ;;  %v5854_v29 = vand.u32 4294901760, %v5853_v14 }
 0x357   :  { %23125 = vmatpush3.msra.mxu0 %v5846_v32  ;;  %23128 = vmatprep.mubr.f32.mxu0 %v25191_v53 }
 0x358   :  { %23126 = vmatprep.subr.mxu0 %v5853_v14  ;;  %v5849_v21 = vand.u32 4294901760, %v5848_v52  ;;  %v5855_v1 = vsub.f32 %v5853_v14, %v5854_v29 }
 0x359   :  { %23127 = vmatpush3.msra.mxu0 %v5853_v14 }
 0x35a   :  { %23117 = vmatprep.subr.mxu1 %v5849_v21  ;;  %23138 = vmatprep.subr.mxu0 %v5847_v46  ;;  %v5856_v3 = vand.u32 4294901760, %v5855_v1 }
 0x35b   :  { %23118 = vmatpush3.msra.mxu1 %v5849_v21  ;;  %23129 = vmatmul.mubr.f32.vlgmr.msra.gmra.mxu0 %v25217_v41  ;;  %v6358_v41 = vsub.f32 %v6356_v26, %v6357_v20 }
 0x35c   :  { %23139 = vmatpush3.msra.mxu0 %v5847_v46  ;;  %23119 = vmatprep.subr.mxu1 %v5856_v3  ;;  %v7244_v46 = vld [vmem:[#allocation7 + $0x40] sm:$0xff] }
 0x35d   :  { %23140 = vmatprep.subr.mxu0 %v5854_v29  ;;  %23120 = vmatpush3.msra.mxu1 %v5856_v3  ;;  %v6359_v53 = vand.u32 4294901760, %v6358_v41  ;;  %v7247_v37 = vsel %vm72_vm0, %v7244_v46, 0 }
 0x35e   :  { %23141 = vmatpush3.msra.mxu0 %v5854_v29  ;;  %23122 = vmatmul.mubr.f32.vlgmr.msra.gmra.mxu1 %v25214_v40 }
 0x35f   :  { %23131 = vmatprep.subr.mxu1 %v5758_v8  ;;  %23135 = vmatprep.mubr.f32.mxu1 %v5798_v19  ;;  %v6234_v19 = vld [vmem:[#allocation5 + $0x40] sm:$0xff] }
 0x360   :  { %23132 = vmatpush3.msra.mxu1 %v5758_v8  ;;  %23142 = vmatprep.mubr.f32.mxu0 %v25188_v44 }
 0x361   :  { %23133 = vmatprep.subr.mxu1 %v5761_v31  ;;  %23143 = vmatmul.mubr.f32.vlgmr.msra.gmra.mxu0 %v25214_v40 }
 0x362   :  { %23134 = vmatpush3.msra.mxu1 %v5761_v31  ;;  %23152 = vmatprep.subr.mxu0 %v25221_v15 }
 0x363   :  { %23136 = vmatmul.mubr.f32.vlgmr.msra.gmra.mxu1 %v5808_v23  ;;  %23145 = vmatprep.subr.mxu1 %v5758_v8  ;;  %v25240_v23 = vand.u32 4294901760, %v6235_v33 }
 0x364   :  { %23146 = vmatpush3.msra.mxu1 %v5758_v8  ;;  %23153 = vmatpush3.msra.mxu0 %v25221_v15  ;;  %v25244_v8 = vand.u32 4294901760, %v6234_v19 }
 0x365   :  { %23147 = vmatprep.subr.mxu1 %v5761_v31  ;;  %23154 = vmatprep.subr.mxu0 %v25224_v62 }
 0x366   :  { %23148 = vmatpush3.msra.mxu1 %v5761_v31  ;;  %23149 = vmatprep.mubr.f32.mxu1 %v25188_v44  ;;  %v6858_v44 = vsub.f32 %v6235_v33, %v25240_v23 }
 0x367   :  { %23155 = vmatpush3.msra.mxu0 %v25224_v62  ;;  %23156 = vmatprep.mubr.f32.mxu0 %v24726_v28 }
 0x368   :  { %23150 = vmatmul.mubr.f32.vlgmr.msra.gmra.mxu1 %v25214_v40  ;;  %23157 = vmatmul.mubr.f32.vlgmr.msra.gmra.mxu0 %v24755_v50  ;;  %v6865_v40 = vsub.f32 %v6234_v19, %v25244_v8  ;;  %v6859_v51 = vand.u32 4294901760, %v6858_v44 }
 0x369   :  { %23159 = vmatprep.subr.mxu1 %v6359_v53  ;;  %23166 = vmatprep.subr.mxu0 %v6356_v26 }
 0x36a   :  { %23160 = vmatpush3.msra.mxu1 %v6359_v53  ;;  %23167 = vmatpush3.msra.mxu0 %v6356_v26  ;;  %v6866_v32 = vand.u32 4294901760, %v6865_v40  ;;  %v6860_v31 = vsub.f32 %v6858_v44, %v6859_v51 }
 0x36b   :  { %23161 = vmatprep.subr.mxu1 %v6366_v34  ;;  %23168 = vmatprep.subr.mxu0 %v6363_v30 }
 0x36c   :  { %23162 = vmatpush3.msra.mxu1 %v6366_v34  ;;  %23163 = vmatprep.mubr.f32.mxu1 %v24682_v0  ;;  %v6867_v58 = vsub.f32 %v6865_v40, %v6866_v32  ;;  %v6861_v10 = vand.u32 4294901760, %v6860_v31 }
 0x36d   :  { %23169 = vmatpush3.msra.mxu0 %v6363_v30  ;;  %23170 = vmatprep.mubr.f32.mxu0 %v24692_v18 }
 0x36e   :  { %23164 = vmatmul.mubr.f32.vlgmr.msra.gmra.mxu1 %v24707_v27  ;;  %23171 = vmatmul.mubr.f32.vlgmr.msra.gmra.mxu0 %v24721_v35  ;;  %v6868_v14 = vand.u32 4294901760, %v6867_v58 }
 0x36f   :  { %23173 = vmatprep.subr.mxu1 %v25221_v15  ;;  %23180 = vmatprep.subr.mxu0 %v6357_v20 }
 0x370   :  { %23174 = vmatpush3.msra.mxu1 %v25221_v15  ;;  %23181 = vmatpush3.msra.mxu0 %v6357_v20 }
 0x371   :  { %23175 = vmatprep.subr.mxu1 %v25224_v62  ;;  %23182 = vmatprep.subr.mxu0 %v6364_v43 }
 0x372   :  { %23176 = vmatpush3.msra.mxu1 %v25224_v62  ;;  %23177 = vmatprep.mubr.f32.mxu1 %v24702_v22 }
 0x373   :  { %23183 = vmatpush3.msra.mxu0 %v6364_v43  ;;  %23184 = vmatprep.mubr.f32.mxu0 %v24682_v0 }
 0x374   :  { %23178 = vmatmul.mubr.f32.vlgmr.msra.gmra.mxu1 %v24736_v42  ;;  %23185 = vmatmul.mubr.f32.vlgmr.msra.gmra.mxu0 %v24707_v27 }
 0x375   :  { %23187 = vmatprep.subr.mxu1 %v25221_v15  ;;  %23194 = vmatprep.subr.mxu0 %v25240_v23 }
 0x376   :  { %23188 = vmatpush3.msra.mxu1 %v25221_v15  ;;  %23195 = vmatpush3.msra.mxu0 %v25240_v23  ;;  %v25291_v15 = vand.u32 4294901760, %v7247_v37 }
 0x377   :  { %23189 = vmatprep.subr.mxu1 %v25224_v62  ;;  %23196 = vmatprep.subr.mxu0 %v25244_v8 }
 0x378   :  { %23190 = vmatpush3.msra.mxu1 %v25224_v62  ;;  %23191 = vmatprep.mubr.f32.mxu1 %v24682_v0  ;;  %v25294_v52 = vsub.f32 %v7247_v37, %v25291_v15 }
 0x379   :  { %23197 = vmatpush3.msra.mxu0 %v25244_v8  ;;  %23198 = vmatprep.mubr.f32.mxu0 %v24797_v2 }
 0x37a   :  { %23192 = vmatmul.mubr.f32.vlgmr.msra.gmra.mxu1 %v24707_v27  ;;  %23199 = vmatmul.mubr.f32.vlgmr.msra.gmra.mxu0 %v24815_v17  ;;  %v26527_v29 = vand.u32 4294901760, %v25294_v52 }
 0x37b   :  { %23201 = vmatprep.subr.mxu1 %v6861_v10  ;;  %23208 = vmatprep.subr.mxu0 %v6858_v44 }
 0x37c   :  { %23202 = vmatpush3.msra.mxu1 %v6861_v10  ;;  %23209 = vmatpush3.msra.mxu0 %v6858_v44  ;;  %v7322_v62 = vsub.f32 %v25294_v52, %v26527_v29 }
 0x37d   :  { %23203 = vmatprep.subr.mxu1 %v6868_v14  ;;  %23210 = vmatprep.subr.mxu0 %v6865_v40 }
 0x37e   :  { %23204 = vmatpush3.msra.mxu1 %v6868_v14  ;;  %23205 = vmatprep.mubr.f32.mxu1 %v24766_v54  ;;  %v7323_v21 = vand.u32 4294901760, %v7322_v62 }
 0x37f   :  { %23211 = vmatpush3.msra.mxu0 %v6865_v40  ;;  %23212 = vmatprep.mubr.f32.mxu0 %v24771_v4 }
 0x380   :  { %23206 = vmatmul.mubr.f32.vlgmr.msra.gmra.mxu1 %v24782_v60  ;;  %23213 = vmatmul.mubr.f32.vlgmr.msra.gmra.mxu0 %v24792_v63 }
 0x381   :  { %23215 = vmatprep.subr.mxu1 %v25240_v23  ;;  %23222 = vmatprep.subr.mxu0 %v6859_v51 }
 0x382   :  { %23216 = vmatpush3.msra.mxu1 %v25240_v23  ;;  %23223 = vmatpush3.msra.mxu0 %v6859_v51 }
 0x383   :  { %23217 = vmatprep.subr.mxu1 %v25244_v8  ;;  %23224 = vmatprep.subr.mxu0 %v6866_v32 }
 0x384   :  { %23218 = vmatpush3.msra.mxu1 %v25244_v8  ;;  %23219 = vmatprep.mubr.f32.mxu1 %v24778_v13 }
 0x385   :  { %23225 = vmatpush3.msra.mxu0 %v6866_v32  ;;  %23226 = vmatprep.mubr.f32.mxu0 %v24766_v54 }
 0x386   :  { %23220 = vmatmul.mubr.f32.vlgmr.msra.gmra.mxu1 %v26532_v36  ;;  %23227 = vmatmul.mubr.f32.vlgmr.msra.gmra.mxu0 %v24782_v60 }
 0x387   :  { %23229 = vmatprep.subr.mxu1 %v25240_v23  ;;  %23233 = vmatprep.mubr.f32.mxu1 %v24766_v54 }
 0x388   :  { %23230 = vmatpush3.msra.mxu1 %v25240_v23  ;;  %23240 = vmatprep.mubr.f32.mxu0 %v7323_v21 }
 0x389   :  { %23231 = vmatprep.subr.mxu1 %v25244_v8 }
 0x38a   :  { %23232 = vmatpush3.msra.mxu1 %v25244_v8 }
 0x38b   :  { %23234 = vmatmul.mubr.f32.vlgmr.msra.gmra.mxu1 %v24782_v60 }
 0x38c   :  { %23247 = vmatprep.mubr.f32.mxu1 %v25291_v15 }
 0x416   :  { %v23116_v1 = vpop.f32.mrf.mxu0 }
 0x418   :  { %v25301_v26 = vpop.f32.mrf.mxu0 }
 0x41b   :  { %v23130_v3 = vpop.f32.mrf.mxu0 }
 0x41d   :  { %v25303_v30 = vpop.f32.mrf.mxu0 }
 0x41e   :  { %v23123_v20 = vpop.f32.mrf.mxu1 }
 0x41f   :  { %v5900_v43 = vadd.f32 %v23123_v20, %v23116_v1 }
 0x420   :  { %v25305_v41 = vpop.f32.mrf.mxu1 }
 0x421   :  { %v5983_v16 = vadd.f32 %v23130_v3, %v5900_v43  ;;  %v23144_v33 = vpop.f32.mrf.mxu0 }
 0x423   :  { %v23137_v53 = vpop.f32.mrf.mxu1  ;;  %v25307_v34 = vpop.f32.mrf.mxu0 }
 0x424   :  { %v6066_v19 = vadd.f32 %v23137_v53, %v5983_v16  ;;  %26538 = vst [vmem:[#allocation17_spill] sm:$0xff] %v25307_v34 }
 0x425   :  { %v25309_v23 = vpop.f32.mrf.mxu1 }
 0x426   :  { %26539 = vst [vmem:[#allocation18_spill] sm:$0xff] %v25309_v23  ;;  %v6149_v8 = vadd.f32 %v23144_v33, %v6066_v19 }
 0x428   :  { %v23151_v44 = vpop.f32.mrf.mxu1  ;;  %v23158_v40 = vpop.f32.mrf.mxu0 }
 0x429   :  { %v6228_v51 = vadd.f32 %v23151_v44, %v6149_v8 }
 0x42a   :  { %v25311_v32 = vpop.f32.mrf.mxu1  ;;  %v6312_v31 = vpop.f32.mrf.mxu0 }
 0x42b   :  { %26540 = vst [vmem:[#allocation19_spill] sm:$0xff] %v25311_v32  ;;  %v25314_v58 = vadd.f32 %v6228_v51, %v25211_v39  ;;  %v7245_v39 = vld [vmem:[#allocation7 + $0x48] sm:$0xff] }
 0x42e   :  { %v23165_v10 = vpop.f32.mrf.mxu1  ;;  %v23172_v14 = vpop.f32.mrf.mxu0 }
 0x42f   :  { %v6410_v46 = vadd.f32 %v23165_v10, %v23158_v40 }
 0x430   :  { %v6403_v37 = vpop.f32.mrf.mxu1  ;;  %v6485_v62 = vpop.f32.mrf.mxu0 }
 0x431   :  { %v6493_v21 = vadd.f32 %v23172_v14, %v6410_v46  ;;  %v6404_v1 = vadd.f32 %v6403_v37, %v6312_v31  ;;  %v7250_v14 = vsel %vm72_vm0, %v7245_v39, 0 }
 0x433   :  { %v6486_v3 = vadd.f32 %v6485_v62, %v6404_v1  ;;  %v25317_v62 = vand.u32 4294901760, %v7250_v14 }
 0x434   :  { %v23179_v20 = vpop.f32.mrf.mxu1  ;;  %v23186_v43 = vpop.f32.mrf.mxu0 }
 0x435   :  { %v6576_v16 = vadd.f32 %v23179_v20, %v6493_v21 }
 0x436   :  { %v6567_v33 = vpop.f32.mrf.mxu1  ;;  %v6652_v53 = vpop.f32.mrf.mxu0 }
 0x437   :  { %v6659_v19 = vadd.f32 %v23186_v43, %v6576_v16  ;;  %v6568_v8 = vadd.f32 %v6567_v33, %v6486_v3  ;;  %v25320_v16 = vsub.f32 %v7250_v14, %v25317_v62 }
 0x439   :  { %v6653_v44 = vadd.f32 %v6652_v53, %v6568_v8 }
 0x43a   :  { %v23193_v29 = vpop.f32.mrf.mxu1  ;;  %v23200_v32 = vpop.f32.mrf.mxu0 }
 0x43b   :  { %v6738_v51 = vadd.f32 %v23193_v29, %v6659_v19  ;;  %v7331_v19 = vand.u32 4294901760, %v25320_v16 }
 0x43c   :  { %v6731_v48 = vpop.f32.mrf.mxu1  ;;  %v6814_v9 = vpop.f32.mrf.mxu0 }
 0x43d   :  { %v6825_v40 = vadd.f32 %v23200_v32, %v6738_v51  ;;  %v6732_v10 = vadd.f32 %v6731_v48, %v6653_v44 }
 0x43f   :  { %v6815_v31 = vadd.f32 %v6814_v9, %v6732_v10  ;;  %v7332_v10 = vsub.f32 %v25320_v16, %v7331_v19 }
 0x440   :  { %v23207_v46 = vpop.f32.mrf.mxu1  ;;  %v23214_v37 = vpop.f32.mrf.mxu0 }
 0x441   :  { %v6912_v21 = vadd.f32 %v23207_v46, %v6825_v40 }
 0x442   :  { %v6905_v1 = vpop.f32.mrf.mxu1  ;;  %v6987_v20 = vpop.f32.mrf.mxu0 }
 0x443   :  { %v6995_v3 = vadd.f32 %v23214_v37, %v6912_v21  ;;  %v6906_v43 = vadd.f32 %v6905_v1, %v6815_v31  ;;  %v7333_v1 = vand.u32 4294901760, %v7332_v10  ;;  %v26541_v10 = vand.u32 4294901760, %v25294_v52 }
 0x445   :  { %v6988_v29 = vadd.f32 %v6987_v20, %v6906_v43  ;;  %v7761_v20 = vld [vmem:[#allocation5 + $0xc8] sm:$0xff] }
 0x446   :  { %v23221_v33 = vpop.f32.mrf.mxu1  ;;  %v23228_v53 = vpop.f32.mrf.mxu0 }
 0x447   :  { %v7078_v32 = vadd.f32 %v23221_v33, %v6995_v3  ;;  %v7760_v33 = vld [vmem:[#allocation5 + $0xc0] sm:$0xff] }
 0x448   :  { %v7069_v48 = vpop.f32.mrf.mxu1  ;;  %v7154_v44 = vpop.f32.mrf.mxu0 }
 0x449   :  { %v7161_v9 = vadd.f32 %v23228_v53, %v7078_v32  ;;  %v7070_v8 = vadd.f32 %v7069_v48, %v6988_v29  ;;  %v25324_v29 = vand.u32 4294901760, %v7761_v20  ;;  %v25327_v48 = vand.u32 4294901760, %v7760_v33 }
 0x44b   :  { %v7155_v39 = vadd.f32 %v7154_v44, %v7070_v8  ;;  %v23235_v51 = vpop.f32.mrf.mxu1  ;;  %v7879_v44 = vsub.f32 %v7761_v20, %v25324_v29 }
 0x44c   :  { %v7240_v40 = vadd.f32 %v23235_v51, %v7161_v9  ;;  %v7886_v51 = vsub.f32 %v7760_v33, %v25327_v48 }
 0x44d   :  { %v7233_v46 = vpop.f32.mrf.mxu1 }
 0x44e   :  { %v7281_v31 = vand.u32 4294901760, %v7240_v40  ;;  %v7234_v37 = vadd.f32 %v7233_v46, %v7155_v39  ;;  %v7887_v46 = vand.u32 4294901760, %v7886_v51 }
 0x450   :  { %v7369_v14 = vsub.f32 %v7240_v40, %v7281_v31  ;;  %v7284_v21 = vand.u32 4294901760, %v7234_v37  ;;  %23236 = vmatprep.subr.mxu0 %v7281_v31  ;;  %v7880_v40 = vand.u32 4294901760, %v7879_v44 }
 0x451   :  { %23237 = vmatpush3.msra.mxu0 %v7281_v31 }
 0x452   :  { %v7376_v3 = vsub.f32 %v7234_v37, %v7284_v21  ;;  %23238 = vmatprep.subr.mxu0 %v7284_v21  ;;  %v7370_v43 = vand.u32 4294901760, %v7369_v14  ;;  %v7888_v37 = vsub.f32 %v7886_v51, %v7887_v46 }
 0x453   :  { %23239 = vmatpush3.msra.mxu0 %v7284_v21 }
 0x454   :  { %23250 = vmatprep.subr.mxu0 %v7369_v14  ;;  %23241 = vmatmul.mubr.f32.vlgmr.msra.gmra.mxu0 %v7333_v1  ;;  %v7371_v53 = vsub.f32 %v7369_v14, %v7370_v43  ;;  %v7377_v32 = vand.u32 4294901760, %v7376_v3  ;;  %v7757_v1 = vld [vmem:[#allocation5 + $0x50] sm:$0xff]  ;;  %v7889_v20 = vand.u32 4294901760, %v7888_v37 }
 0x455   :  { %23251 = vmatpush3.msra.mxu0 %v7369_v14  ;;  %23254 = vmatprep.mubr.f32.mxu0 %v25294_v52  ;;  %v7758_v14 = vld [vmem:[#allocation5 + $0x58] sm:$0xff] }
 0x456   :  { %23252 = vmatprep.subr.mxu0 %v7376_v3  ;;  %v7372_v9 = vand.u32 4294901760, %v7371_v53  ;;  %v7378_v8 = vsub.f32 %v7376_v3, %v7377_v32 }
 0x457   :  { %23253 = vmatpush3.msra.mxu0 %v7376_v3 }
 0x458   :  { %23243 = vmatprep.subr.mxu1 %v7372_v9  ;;  %23264 = vmatprep.subr.mxu0 %v7370_v43  ;;  %v7379_v39 = vand.u32 4294901760, %v7378_v8 }
 0x459   :  { %23244 = vmatpush3.msra.mxu1 %v7372_v9  ;;  %23255 = vmatmul.mubr.f32.vlgmr.msra.gmra.mxu0 %v25320_v16  ;;  %v7881_v16 = vsub.f32 %v7879_v44, %v7880_v40 }
 0x45a   :  { %23265 = vmatpush3.msra.mxu0 %v7370_v43  ;;  %23245 = vmatprep.subr.mxu1 %v7379_v39 }
 0x45b   :  { %23266 = vmatprep.subr.mxu0 %v7377_v32  ;;  %23246 = vmatpush3.msra.mxu1 %v7379_v39  ;;  %v7882_v52 = vand.u32 4294901760, %v7881_v16 }
 0x45c   :  { %23267 = vmatpush3.msra.mxu0 %v7377_v32  ;;  %23248 = vmatmul.mubr.f32.vlgmr.msra.gmra.mxu1 %v25317_v62 }
 0x45d   :  { %23257 = vmatprep.subr.mxu1 %v7281_v31  ;;  %23261 = vmatprep.mubr.f32.mxu1 %v26541_v10 }
 0x45e   :  { %23258 = vmatpush3.msra.mxu1 %v7281_v31  ;;  %23268 = vmatprep.mubr.f32.mxu0 %v25291_v15 }
 0x45f   :  { %23259 = vmatprep.subr.mxu1 %v7284_v21  ;;  %23269 = vmatmul.mubr.f32.vlgmr.msra.gmra.mxu0 %v25317_v62 }
 0x460   :  { %23260 = vmatpush3.msra.mxu1 %v7284_v21  ;;  %23278 = vmatprep.subr.mxu0 %v25324_v29 }
 0x461   :  { %23262 = vmatmul.mubr.f32.vlgmr.msra.gmra.mxu1 %v7331_v19  ;;  %23271 = vmatprep.subr.mxu1 %v7281_v31  ;;  %v25343_v19 = vand.u32 4294901760, %v7758_v14 }
 0x462   :  { %23272 = vmatpush3.msra.mxu1 %v7281_v31  ;;  %23279 = vmatpush3.msra.mxu0 %v25324_v29  ;;  %v25347_v31 = vand.u32 4294901760, %v7757_v1 }
 0x463   :  { %23273 = vmatprep.subr.mxu1 %v7284_v21  ;;  %23280 = vmatprep.subr.mxu0 %v25327_v48 }
 0x464   :  { %23274 = vmatpush3.msra.mxu1 %v7284_v21  ;;  %23275 = vmatprep.mubr.f32.mxu1 %v25291_v15  ;;  %v8381_v15 = vsub.f32 %v7758_v14, %v25343_v19 }
 0x465   :  { %23281 = vmatpush3.msra.mxu0 %v25327_v48  ;;  %23282 = vmatprep.mubr.f32.mxu0 %v24726_v28 }
 0x466   :  { %23276 = vmatmul.mubr.f32.vlgmr.msra.gmra.mxu1 %v25317_v62  ;;  %23283 = vmatmul.mubr.f32.vlgmr.msra.gmra.mxu0 %v24755_v50  ;;  %v8388_v62 = vsub.f32 %v7757_v1, %v25347_v31  ;;  %v8382_v21 = vand.u32 4294901760, %v8381_v15 }
 0x467   :  { %23285 = vmatprep.subr.mxu1 %v7882_v52  ;;  %23292 = vmatprep.subr.mxu0 %v7879_v44 }
 0x468   :  { %23286 = vmatpush3.msra.mxu1 %v7882_v52  ;;  %23293 = vmatpush3.msra.mxu0 %v7879_v44  ;;  %v8389_v3 = vand.u32 4294901760, %v8388_v62  ;;  %v8383_v43 = vsub.f32 %v8381_v15, %v8382_v21 }
 0x469   :  { %23287 = vmatprep.subr.mxu1 %v7889_v20  ;;  %23294 = vmatprep.subr.mxu0 %v7886_v51 }
 0x46a   :  { %23288 = vmatpush3.msra.mxu1 %v7889_v20  ;;  %23289 = vmatprep.mubr.f32.mxu1 %v24682_v0  ;;  %v8390_v33 = vsub.f32 %v8388_v62, %v8389_v3  ;;  %v8384_v53 = vand.u32 4294901760, %v8383_v43 }
 0x46b   :  { %23295 = vmatpush3.msra.mxu0 %v7886_v51  ;;  %23296 = vmatprep.mubr.f32.mxu0 %v24692_v18 }
 0x46c   :  { %23290 = vmatmul.mubr.f32.vlgmr.msra.gmra.mxu1 %v24707_v27  ;;  %23297 = vmatmul.mubr.f32.vlgmr.msra.gmra.mxu0 %v24721_v35  ;;  %v8391_v32 = vand.u32 4294901760, %v8390_v33 }
 0x46d   :  { %23299 = vmatprep.subr.mxu1 %v25324_v29  ;;  %23306 = vmatprep.subr.mxu0 %v7880_v40 }
 0x46e   :  { %23300 = vmatpush3.msra.mxu1 %v25324_v29  ;;  %23307 = vmatpush3.msra.mxu0 %v7880_v40 }
 0x46f   :  { %23301 = vmatprep.subr.mxu1 %v25327_v48  ;;  %23308 = vmatprep.subr.mxu0 %v7887_v46 }
 0x470   :  { %23302 = vmatpush3.msra.mxu1 %v25327_v48  ;;  %23303 = vmatprep.mubr.f32.mxu1 %v24702_v22 }
 0x471   :  { %23309 = vmatpush3.msra.mxu0 %v7887_v46  ;;  %23310 = vmatprep.mubr.f32.mxu0 %v24682_v0 }
 0x472   :  { %23304 = vmatmul.mubr.f32.vlgmr.msra.gmra.mxu1 %v24736_v42  ;;  %23311 = vmatmul.mubr.f32.vlgmr.msra.gmra.mxu0 %v24707_v27 }
 0x473   :  { %23313 = vmatprep.subr.mxu1 %v25324_v29  ;;  %23320 = vmatprep.subr.mxu0 %v25343_v19 }
 0x474   :  { %23314 = vmatpush3.msra.mxu1 %v25324_v29  ;;  %23321 = vmatpush3.msra.mxu0 %v25343_v19  ;;  %v8767_v29 = vld [vmem:[#allocation7 + $0x50] sm:$0xff] }
 0x475   :  { %23315 = vmatprep.subr.mxu1 %v25327_v48  ;;  %23322 = vmatprep.subr.mxu0 %v25347_v31 }
 0x476   :  { %23316 = vmatpush3.msra.mxu1 %v25327_v48  ;;  %23317 = vmatprep.mubr.f32.mxu1 %v24682_v0  ;;  %v8770_v48 = vsel %vm72_vm0, %v8767_v29, 0 }
 0x477   :  { %23323 = vmatpush3.msra.mxu0 %v25347_v31  ;;  %23324 = vmatprep.mubr.f32.mxu0 %v24797_v2  ;;  %v25394_v9 = vand.u32 4294901760, %v8770_v48 }
 0x478   :  { %23318 = vmatmul.mubr.f32.vlgmr.msra.gmra.mxu1 %v24707_v27  ;;  %23325 = vmatmul.mubr.f32.vlgmr.msra.gmra.mxu0 %v24815_v17 }
 0x479   :  { %23327 = vmatprep.subr.mxu1 %v8384_v53  ;;  %23334 = vmatprep.subr.mxu0 %v8381_v15  ;;  %v25397_v8 = vsub.f32 %v8770_v48, %v25394_v9 }
 0x47a   :  { %23328 = vmatpush3.msra.mxu1 %v8384_v53  ;;  %23335 = vmatpush3.msra.mxu0 %v8381_v15 }
 0x47b   :  { %23329 = vmatprep.subr.mxu1 %v8391_v32  ;;  %23336 = vmatprep.subr.mxu0 %v8388_v62  ;;  %v26528_v44 = vand.u32 4294901760, %v25397_v8 }
 0x47c   :  { %23330 = vmatpush3.msra.mxu1 %v8391_v32  ;;  %23331 = vmatprep.mubr.f32.mxu1 %v24766_v54 }
 0x47d   :  { %23337 = vmatpush3.msra.mxu0 %v8388_v62  ;;  %23338 = vmatprep.mubr.f32.mxu0 %v24771_v4  ;;  %v8845_v39 = vsub.f32 %v25397_v8, %v26528_v44 }
 0x47e   :  { %23332 = vmatmul.mubr.f32.vlgmr.msra.gmra.mxu1 %v24782_v60  ;;  %23339 = vmatmul.mubr.f32.vlgmr.msra.gmra.mxu0 %v24792_v63 }
 0x47f   :  { %23341 = vmatprep.subr.mxu1 %v25343_v19  ;;  %23348 = vmatprep.subr.mxu0 %v8382_v21  ;;  %v8846_v51 = vand.u32 4294901760, %v8845_v39 }
 0x480   :  { %23342 = vmatpush3.msra.mxu1 %v25343_v19  ;;  %23349 = vmatpush3.msra.mxu0 %v8382_v21 }
 0x481   :  { %23343 = vmatprep.subr.mxu1 %v25347_v31  ;;  %23350 = vmatprep.subr.mxu0 %v8389_v3 }
 0x482   :  { %23344 = vmatpush3.msra.mxu1 %v25347_v31  ;;  %23345 = vmatprep.mubr.f32.mxu1 %v24778_v13 }
 0x483   :  { %23351 = vmatpush3.msra.mxu0 %v8389_v3  ;;  %23352 = vmatprep.mubr.f32.mxu0 %v24766_v54 }
 0x484   :  { %23346 = vmatmul.mubr.f32.vlgmr.msra.gmra.mxu1 %v26532_v36  ;;  %23353 = vmatmul.mubr.f32.vlgmr.msra.gmra.mxu0 %v24782_v60 }
 0x485   :  { %23355 = vmatprep.subr.mxu1 %v25343_v19  ;;  %23359 = vmatprep.mubr.f32.mxu1 %v24766_v54 }
 0x486   :  { %23356 = vmatpush3.msra.mxu1 %v25343_v19  ;;  %23366 = vmatprep.mubr.f32.mxu0 %v8846_v51 }
 0x487   :  { %23357 = vmatprep.subr.mxu1 %v25347_v31 }
 0x488   :  { %23358 = vmatpush3.msra.mxu1 %v25347_v31 }
 0x489   :  { %23360 = vmatmul.mubr.f32.vlgmr.msra.gmra.mxu1 %v24782_v60 }
 0x48a   :  { %23373 = vmatprep.mubr.f32.mxu1 %v25394_v9 }
 0x514   :  { %v23242_v40 = vpop.f32.mrf.mxu0 }
 0x516   :  { %v25404_v10 = vpop.f32.mrf.mxu0 }
 0x519   :  { %v23256_v46 = vpop.f32.mrf.mxu0 }
 0x51b   :  { %v25406_v16 = vpop.f32.mrf.mxu0 }
 0x51c   :  { %26542 = vst [vmem:[#allocation20_spill] sm:$0xff] %v25406_v16  ;;  %v23249_v37 = vpop.f32.mrf.mxu1 }
 0x51d   :  { %v7423_v14 = vadd.f32 %v23249_v37, %v23242_v40 }
 0x51e   :  { %v25408_v52 = vpop.f32.mrf.mxu1 }
 0x51f   :  { %v7506_v1 = vadd.f32 %v23256_v46, %v7423_v14  ;;  %v23270_v20 = vpop.f32.mrf.mxu0 }
 0x521   :  { %v23263_v19 = vpop.f32.mrf.mxu1  ;;  %v25410_v15 = vpop.f32.mrf.mxu0 }
 0x522   :  { %v7589_v31 = vadd.f32 %v23263_v19, %v7506_v1  ;;  %26543 = vst [vmem:[#allocation21_spill] sm:$0xff] %v25410_v15 }
 0x523   :  { %v25412_v62 = vpop.f32.mrf.mxu1 }
 0x524   :  { %26544 = vst [vmem:[#allocation22_spill] sm:$0xff] %v25412_v62  ;;  %v7672_v21 = vadd.f32 %v23270_v20, %v7589_v31 }
 0x526   :  { %v23277_v3 = vpop.f32.mrf.mxu1  ;;  %v23284_v43 = vpop.f32.mrf.mxu0 }
 0x527   :  { %v7751_v33 = vadd.f32 %v23277_v3, %v7672_v21 }
 0x528   :  { %v25414_v53 = vpop.f32.mrf.mxu1  ;;  %v7835_v32 = vpop.f32.mrf.mxu0 }
 0x529   :  { %26545 = vst [vmem:[#allocation23_spill] sm:$0xff] %v25414_v53  ;;  %v25417_v29 = vadd.f32 %v7751_v33, %v25314_v58  ;;  %v8768_v58 = vld [vmem:[#allocation7 + $0x58] sm:$0xff] }
 0x52c   :  { %v23291_v48 = vpop.f32.mrf.mxu1  ;;  %v23298_v39 = vpop.f32.mrf.mxu0 }
 0x52d   :  { %v7933_v51 = vadd.f32 %v23291_v48, %v23284_v43 }
 0x52e   :  { %v7926_v40 = vpop.f32.mrf.mxu1  ;;  %v8008_v46 = vpop.f32.mrf.mxu0 }
 0x52f   :  { %v8016_v37 = vadd.f32 %v23298_v39, %v7933_v51  ;;  %v7927_v14 = vadd.f32 %v7926_v40, %v7835_v32  ;;  %v8773_v39 = vsel %vm72_vm0, %v8768_v58, 0 }
 0x531   :  { %v8009_v1 = vadd.f32 %v8008_v46, %v7927_v14  ;;  %v25420_v46 = vand.u32 4294901760, %v8773_v39 }
 0x532   :  { %v23305_v19 = vpop.f32.mrf.mxu1  ;;  %v23312_v44 = vpop.f32.mrf.mxu0 }
 0x533   :  { %v8099_v20 = vadd.f32 %v23305_v19, %v8016_v37  ;;  %v25423_v19 = vsub.f32 %v8773_v39, %v25420_v46 }
 0x534   :  { %v8090_v31 = vpop.f32.mrf.mxu1  ;;  %v8175_v15 = vpop.f32.mrf.mxu0 }
 0x535   :  { %v8182_v21 = vadd.f32 %v23312_v44, %v8099_v20  ;;  %v8091_v3 = vadd.f32 %v8090_v31, %v8009_v1 }
 0x537   :  { %v8176_v53 = vadd.f32 %v8175_v15, %v8091_v3 }
 0x538   :  { %v23319_v34 = vpop.f32.mrf.mxu1  ;;  %v23326_v12 = vpop.f32.mrf.mxu0 }
 0x539   :  { %v8261_v33 = vadd.f32 %v23319_v34, %v8182_v21 }
 0x53a   :  { %v8254_v62 = vpop.f32.mrf.mxu1  ;;  %v8337_v11 = vpop.f32.mrf.mxu0 }
 0x53b   :  { %v8348_v43 = vadd.f32 %v23326_v12, %v8261_v33  ;;  %v8255_v48 = vadd.f32 %v8254_v62, %v8176_v53  ;;  %v8854_v53 = vand.u32 4294901760, %v25423_v19 }
 0x53d   :  { %v8338_v32 = vadd.f32 %v8337_v11, %v8255_v48  ;;  %v8855_v48 = vsub.f32 %v25423_v19, %v8854_v53 }
 0x53e   :  { %v23333_v51 = vpop.f32.mrf.mxu1  ;;  %v23340_v40 = vpop.f32.mrf.mxu0 }
 0x53f   :  { %v8435_v37 = vadd.f32 %v23333_v51, %v8348_v43 }
 0x540   :  { %v8428_v14 = vpop.f32.mrf.mxu1  ;;  %v8510_v44 = vpop.f32.mrf.mxu0 }
 0x541   :  { %v8518_v1 = vadd.f32 %v23340_v40, %v8435_v37  ;;  %v8429_v15 = vadd.f32 %v8428_v14, %v8338_v32  ;;  %v8856_v14 = vand.u32 4294901760, %v8855_v48  ;;  %v26546_v48 = vand.u32 4294901760, %v25397_v8 }
 0x543   :  { %v8511_v34 = vadd.f32 %v8510_v44, %v8429_v15  ;;  %v9284_v44 = vld [vmem:[#allocation5 + $0xd8] sm:$0xff] }
 0x544   :  { %v23347_v20 = vpop.f32.mrf.mxu1  ;;  %v23354_v31 = vpop.f32.mrf.mxu0 }
 0x545   :  { %v8601_v12 = vadd.f32 %v23347_v20, %v8518_v1  ;;  %v9283_v20 = vld [vmem:[#allocation5 + $0xd0] sm:$0xff] }
 0x546   :  { %v8592_v62 = vpop.f32.mrf.mxu1  ;;  %v8677_v3 = vpop.f32.mrf.mxu0 }
 0x547   :  { %v8684_v11 = vadd.f32 %v23354_v31, %v8601_v12  ;;  %v8593_v21 = vadd.f32 %v8592_v62, %v8511_v34  ;;  %v25427_v34 = vand.u32 4294901760, %v9284_v44  ;;  %v25430_v62 = vand.u32 4294901760, %v9283_v20 }
 0x549   :  { %v8678_v58 = vadd.f32 %v8677_v3, %v8593_v21  ;;  %v23361_v33 = vpop.f32.mrf.mxu1  ;;  %v9402_v3 = vsub.f32 %v9284_v44, %v25427_v34 }
 0x54a   :  { %v8763_v43 = vadd.f32 %v23361_v33, %v8684_v11  ;;  %v9409_v33 = vsub.f32 %v9283_v20, %v25430_v62 }
 0x54b   :  { %v8756_v51 = vpop.f32.mrf.mxu1 }
 0x54c   :  { %v8804_v32 = vand.u32 4294901760, %v8763_v43  ;;  %v8757_v40 = vadd.f32 %v8756_v51, %v8678_v58  ;;  %v9410_v51 = vand.u32 4294901760, %v9409_v33 }
 0x54e   :  { %v8892_v39 = vsub.f32 %v8763_v43, %v8804_v32  ;;  %v8807_v37 = vand.u32 4294901760, %v8757_v40  ;;  %23362 = vmatprep.subr.mxu0 %v8804_v32  ;;  %v9403_v43 = vand.u32 4294901760, %v9402_v3 }
 0x54f   :  { %23363 = vmatpush3.msra.mxu0 %v8804_v32 }
 0x550   :  { %v8899_v1 = vsub.f32 %v8757_v40, %v8807_v37  ;;  %23364 = vmatprep.subr.mxu0 %v8807_v37  ;;  %v8893_v15 = vand.u32 4294901760, %v8892_v39  ;;  %v9411_v40 = vsub.f32 %v9409_v33, %v9410_v51 }
 0x551   :  { %23365 = vmatpush3.msra.mxu0 %v8807_v37 }
 0x552   :  { %23376 = vmatprep.subr.mxu0 %v8892_v39  ;;  %23367 = vmatmul.mubr.f32.vlgmr.msra.gmra.mxu0 %v8856_v14  ;;  %v8894_v31 = vsub.f32 %v8892_v39, %v8893_v15  ;;  %v8900_v12 = vand.u32 4294901760, %v8899_v1  ;;  %v9280_v14 = vld [vmem:[#allocation5 + $0x60] sm:$0xff]  ;;  %v9412_v44 = vand.u32 4294901760, %v9411_v40 }
 0x553   :  { %23377 = vmatpush3.msra.mxu0 %v8892_v39  ;;  %23380 = vmatprep.mubr.f32.mxu0 %v25397_v8  ;;  %v9281_v39 = vld [vmem:[#allocation5 + $0x68] sm:$0xff] }
 0x554   :  { %23378 = vmatprep.subr.mxu0 %v8899_v1  ;;  %v8895_v11 = vand.u32 4294901760, %v8894_v31  ;;  %v8901_v21 = vsub.f32 %v8899_v1, %v8900_v12 }
 0x555   :  { %23379 = vmatpush3.msra.mxu0 %v8899_v1 }
 0x556   :  { %23369 = vmatprep.subr.mxu1 %v8895_v11  ;;  %23390 = vmatprep.subr.mxu0 %v8893_v15  ;;  %v8902_v58 = vand.u32 4294901760, %v8901_v21 }
 0x557   :  { %23370 = vmatpush3.msra.mxu1 %v8895_v11  ;;  %23381 = vmatmul.mubr.f32.vlgmr.msra.gmra.mxu0 %v25423_v19  ;;  %v9404_v19 = vsub.f32 %v9402_v3, %v9403_v43 }
 0x558   :  { %23391 = vmatpush3.msra.mxu0 %v8893_v15  ;;  %23371 = vmatprep.subr.mxu1 %v8902_v58 }
 0x559   :  { %23392 = vmatprep.subr.mxu0 %v8900_v12  ;;  %23372 = vmatpush3.msra.mxu1 %v8902_v58  ;;  %v9405_v8 = vand.u32 4294901760, %v9404_v19 }
 0x55a   :  { %23393 = vmatpush3.msra.mxu0 %v8900_v12  ;;  %23374 = vmatmul.mubr.f32.vlgmr.msra.gmra.mxu1 %v25420_v46 }
 0x55b   :  { %23383 = vmatprep.subr.mxu1 %v8804_v32  ;;  %23387 = vmatprep.mubr.f32.mxu1 %v26546_v48 }
 0x55c   :  { %23384 = vmatpush3.msra.mxu1 %v8804_v32  ;;  %23394 = vmatprep.mubr.f32.mxu0 %v25394_v9 }
 0x55d   :  { %23385 = vmatprep.subr.mxu1 %v8807_v37  ;;  %23395 = vmatmul.mubr.f32.vlgmr.msra.gmra.mxu0 %v25420_v46 }
 0x55e   :  { %23386 = vmatpush3.msra.mxu1 %v8807_v37  ;;  %23404 = vmatprep.subr.mxu0 %v25427_v34 }
 0x55f   :  { %23388 = vmatmul.mubr.f32.vlgmr.msra.gmra.mxu1 %v8854_v53  ;;  %23397 = vmatprep.subr.mxu1 %v8804_v32  ;;  %v25446_v53 = vand.u32 4294901760, %v9281_v39 }
 0x560   :  { %23398 = vmatpush3.msra.mxu1 %v8804_v32  ;;  %23405 = vmatpush3.msra.mxu0 %v25427_v34  ;;  %v25450_v32 = vand.u32 4294901760, %v9280_v14 }
 0x561   :  { %23399 = vmatprep.subr.mxu1 %v8807_v37  ;;  %23406 = vmatprep.subr.mxu0 %v25430_v62 }
 0x562   :  { %23400 = vmatpush3.msra.mxu1 %v8807_v37  ;;  %23401 = vmatprep.mubr.f32.mxu1 %v25394_v9  ;;  %v9904_v9 = vsub.f32 %v9281_v39, %v25446_v53 }
 0x563   :  { %23407 = vmatpush3.msra.mxu0 %v25430_v62  ;;  %23408 = vmatprep.mubr.f32.mxu0 %v24726_v28  ;;  %v9911_v28 = vsub.f32 %v9280_v14, %v25450_v32 }
 0x564   :  { %23402 = vmatmul.mubr.f32.vlgmr.msra.gmra.mxu1 %v25420_v46  ;;  %23409 = vmatmul.mubr.f32.vlgmr.msra.gmra.mxu0 %v24755_v50  ;;  %v9905_v50 = vand.u32 4294901760, %v9904_v9 }
 0x565   :  { %23411 = vmatprep.subr.mxu1 %v9405_v8  ;;  %23418 = vmatprep.subr.mxu0 %v9402_v3  ;;  %v9912_v46 = vand.u32 4294901760, %v9911_v28 }
 0x566   :  { %23412 = vmatpush3.msra.mxu1 %v9405_v8  ;;  %23419 = vmatpush3.msra.mxu0 %v9402_v3 }
 0x567   :  { %23413 = vmatprep.subr.mxu1 %v9412_v44  ;;  %23420 = vmatprep.subr.mxu0 %v9409_v33 }
 0x568   :  { %23414 = vmatpush3.msra.mxu1 %v9412_v44  ;;  %23415 = vmatprep.mubr.f32.mxu1 %v24682_v0 }
 0x569   :  { %23421 = vmatpush3.msra.mxu0 %v9409_v33  ;;  %23422 = vmatprep.mubr.f32.mxu0 %v24692_v18  ;;  %v9906_v18 = vsub.f32 %v9904_v9, %v9905_v50 }
 0x56a   :  { %23416 = vmatmul.mubr.f32.vlgmr.msra.gmra.mxu1 %v24707_v27  ;;  %23423 = vmatmul.mubr.f32.vlgmr.msra.gmra.mxu0 %v24721_v35  ;;  %v9913_v35 = vsub.f32 %v9911_v28, %v9912_v46 }
 0x56b   :  { %23425 = vmatprep.subr.mxu1 %v25427_v34  ;;  %23432 = vmatprep.subr.mxu0 %v9403_v43 }
 0x56c   :  { %23426 = vmatpush3.msra.mxu1 %v25427_v34  ;;  %23433 = vmatpush3.msra.mxu0 %v9403_v43 }
 0x56d   :  { %23427 = vmatprep.subr.mxu1 %v25430_v62  ;;  %23434 = vmatprep.subr.mxu0 %v9410_v51 }
 0x56e   :  { %23428 = vmatpush3.msra.mxu1 %v25430_v62  ;;  %23429 = vmatprep.mubr.f32.mxu1 %v24702_v22  ;;  %v9907_v22 = vand.u32 4294901760, %v9906_v18  ;;  %v10847_v18 = vld [vmem:[#allocation2 + $0x80] sm:$0xff] }
 0x56f   :  { %23435 = vmatpush3.msra.mxu0 %v9410_v51  ;;  %23436 = vmatprep.mubr.f32.mxu0 %v24682_v0 }
 0x570   :  { %23430 = vmatmul.mubr.f32.vlgmr.msra.gmra.mxu1 %v24736_v42  ;;  %23437 = vmatmul.mubr.f32.vlgmr.msra.gmra.mxu0 %v24707_v27  ;;  %v9914_v42 = vand.u32 4294901760, %v9913_v35  ;;  %v10851_v35 = vld [vmem:[#allocation2 + $0xa0] sm:$0xff] }
 0x571   :  { %23439 = vmatprep.subr.mxu1 %v25427_v34  ;;  %23446 = vmatprep.subr.mxu0 %v25446_v53 }
 0x572   :  { %23440 = vmatpush3.msra.mxu1 %v25427_v34  ;;  %23447 = vmatpush3.msra.mxu0 %v25446_v53 }
 0x573   :  { %23441 = vmatprep.subr.mxu1 %v25430_v62  ;;  %23448 = vmatprep.subr.mxu0 %v25450_v32 }
 0x574   :  { %23442 = vmatpush3.msra.mxu1 %v25430_v62  ;;  %23443 = vmatprep.mubr.f32.mxu1 %v24682_v0  ;;  %v10290_v0 = vld [vmem:[#allocation7 + $0x60] sm:$0xff] }
 0x575   :  { %23449 = vmatpush3.msra.mxu0 %v25450_v32  ;;  %23450 = vmatprep.mubr.f32.mxu0 %v24797_v2 }
 0x576   :  { %23444 = vmatmul.mubr.f32.vlgmr.msra.gmra.mxu1 %v24707_v27  ;;  %23451 = vmatmul.mubr.f32.vlgmr.msra.gmra.mxu0 %v24815_v17  ;;  %v10293_v27 = vsel %vm72_vm0, %v10290_v0, 0 }
 0x577   :  { %23453 = vmatprep.subr.mxu1 %v9907_v22  ;;  %23460 = vmatprep.subr.mxu0 %v9904_v9 }
 0x578   :  { %23454 = vmatpush3.msra.mxu1 %v9907_v22  ;;  %23461 = vmatpush3.msra.mxu0 %v9904_v9 }
 0x579   :  { %23455 = vmatprep.subr.mxu1 %v9914_v42  ;;  %23462 = vmatprep.subr.mxu0 %v9911_v28 }
 0x57a   :  { %23456 = vmatpush3.msra.mxu1 %v9914_v42  ;;  %23457 = vmatprep.mubr.f32.mxu1 %v24766_v54 }
 0x57b   :  { %23463 = vmatpush3.msra.mxu0 %v9911_v28  ;;  %23464 = vmatprep.mubr.f32.mxu0 %v24771_v4  ;;  %v25497_v4 = vand.u32 4294901760, %v10293_v27 }
 0x57c   :  { %23458 = vmatmul.mubr.f32.vlgmr.msra.gmra.mxu1 %v24782_v60  ;;  %23465 = vmatmul.mubr.f32.vlgmr.msra.gmra.mxu0 %v24792_v63 }
 0x57d   :  { %23467 = vmatprep.subr.mxu1 %v25446_v53  ;;  %23474 = vmatprep.subr.mxu0 %v9905_v50 }
 0x57e   :  { %23468 = vmatpush3.msra.mxu1 %v25446_v53  ;;  %23475 = vmatpush3.msra.mxu0 %v9905_v50 }
 0x57f   :  { %23469 = vmatprep.subr.mxu1 %v25450_v32  ;;  %23476 = vmatprep.subr.mxu0 %v9912_v46 }
 0x580   :  { %23470 = vmatpush3.msra.mxu1 %v25450_v32  ;;  %23471 = vmatprep.mubr.f32.mxu1 %v24778_v13  ;;  %v25500_v13 = vsub.f32 %v10293_v27, %v25497_v4 }
 0x581   :  { %23477 = vmatpush3.msra.mxu0 %v9912_v46  ;;  %23478 = vmatprep.mubr.f32.mxu0 %v24766_v54 }
 0x582   :  { %23472 = vmatmul.mubr.f32.vlgmr.msra.gmra.mxu1 %v26532_v36  ;;  %23479 = vmatmul.mubr.f32.vlgmr.msra.gmra.mxu0 %v24782_v60 }
 0x583   :  { %23481 = vmatprep.subr.mxu1 %v25446_v53  ;;  %23485 = vmatprep.mubr.f32.mxu1 %v24766_v54  ;;  %v26529_v54 = vand.u32 4294901760, %v25500_v13 }
 0x584   :  { %23482 = vmatpush3.msra.mxu1 %v25446_v53 }
 0x585   :  { %23483 = vmatprep.subr.mxu1 %v25450_v32  ;;  %v10368_v63 = vsub.f32 %v25500_v13, %v26529_v54 }
 0x586   :  { %23484 = vmatpush3.msra.mxu1 %v25450_v32 }
 0x587   :  { %23486 = vmatmul.mubr.f32.vlgmr.msra.gmra.mxu1 %v24782_v60  ;;  %v10369_v2 = vand.u32 4294901760, %v10368_v63  ;;  %v10291_v63 = vld [vmem:[#allocation7 + $0x68] sm:$0xff] }
 0x588   :  { %23499 = vmatprep.mubr.f32.mxu1 %v25497_v4 }
 0x589   :  { %23492 = vmatprep.mubr.f32.mxu0 %v10369_v2  ;;  %v25522_v2 = vld [vmem:[#allocation2 + $0xb0] sm:$0xff] }
 0x612   :  { %v23368_v17 = vpop.f32.mrf.mxu0 }
 0x614   :  { %v25507_v60 = vpop.f32.mrf.mxu0 }
 0x617   :  { %v23382_v36 = vpop.f32.mrf.mxu0 }
 0x619   :  { %v25509_v37 = vpop.f32.mrf.mxu0 }
 0x61a   :  { %26547 = vst [vmem:[#allocation24_spill] sm:$0xff] %v25509_v37  ;;  %v23375_v1 = vpop.f32.mrf.mxu1 }
 0x61b   :  { %v8946_v15 = vadd.f32 %v23375_v1, %v23368_v17  ;;  %v10895_v17 = vsel %vm72_vm0, %v10847_v18, -inf  ;;  %v10848_v1 = vld [vmem:[#allocation2 + $0x88] sm:$0xff] }
 0x61c   :  { %v25511_v20 = vpop.f32.mrf.mxu1 }
 0x61d   :  { %v9029_v34 = vadd.f32 %v23382_v36, %v8946_v15  ;;  %v23396_v31 = vpop.f32.mrf.mxu0  ;;  %v10897_v36 = vsel %vm72_vm0, %v10851_v35, -inf }
 0x61f   :  { %v23389_v12 = vpop.f32.mrf.mxu1  ;;  %v25513_v11 = vpop.f32.mrf.mxu0 }
 0x620   :  { %v9112_v62 = vadd.f32 %v23389_v12, %v9029_v34  ;;  %26548 = vst [vmem:[#allocation25_spill] sm:$0xff] %v25513_v11  ;;  %v10850_v34 = vld [vmem:[#allocation2 + $0x98] sm:$0xff] }
 0x621   :  { %v25515_v21 = vpop.f32.mrf.mxu1  ;;  %v25526_v12 = vld [vmem:[#allocation2 + $0xb8] sm:$0xff] }
 0x622   :  { %26549 = vst [vmem:[#allocation26_spill] sm:$0xff] %v25515_v21  ;;  %v9195_v3 = vadd.f32 %v23396_v31, %v9112_v62  ;;  %v10852_v31 = vld [vmem:[#allocation2 + $0xa8] sm:$0xff]  ;;  %v25562_v11 = vld [vmem:[#allocation2 + $0xf8] sm:$0xff]  ;;  %v10866_v21 = vsel %vm72_vm0, %v10851_v35, 0.0 }
 0x624   :  { %v23403_v58 = vpop.f32.mrf.mxu1  ;;  %v23410_v33 = vpop.f32.mrf.mxu0 }
 0x625   :  { %v9274_v43 = vadd.f32 %v23403_v58, %v9195_v3  ;;  %v10296_v58 = vsel %vm72_vm0, %v10291_v63, 0 }
 0x626   :  { %v25517_v48 = vpop.f32.mrf.mxu1  ;;  %v9358_v51 = vpop.f32.mrf.mxu0 }
 0x627   :  { %26550 = vst [vmem:[#allocation27_spill] sm:$0xff] %v25517_v48  ;;  %v25520_v19 = vadd.f32 %v9274_v43, %v25417_v29  ;;  %v10849_v29 = vld [vmem:[#allocation2 + $0x90] sm:$0xff]  ;;  %v25529_v43 = vld [vmem:[#allocation2 + $0xc0] sm:$0xff]  ;;  %v25560_v48 = vld [vmem:[#allocation2 + $0xe8] sm:$0xff] }
 0x628   :  { %v10920_v35 = vsel %vm72_vm0, %v25560_v48, -inf }
 0x629   :  { %26551 = vst [vmem:[#allocation28_spill] sm:$0xff] %v25520_v19  ;;  %v25549_v19 = vld [vmem:[#allocation2 + $0xe0] sm:$0xff] }
 0x62a   :  { %v23417_v40 = vpop.f32.mrf.mxu1  ;;  %v23424_v39 = vpop.f32.mrf.mxu0  ;;  %v10905_v37 = vsel %vm72_vm0, %v25549_v19, -inf }
 0x62b   :  { %v9456_v8 = vadd.f32 %v23417_v40, %v23410_v33  ;;  %v10898_v40 = vmax.f32 %v10895_v17, %v10897_v36  ;;  %v10901_v17 = vsel %vm72_vm0, %v25529_v43, -inf  ;;  %v10878_v36 = vsel %vm72_vm0, %v10848_v1, 0.0 }
 0x62c   :  { %v9449_v14 = vpop.f32.mrf.mxu1  ;;  %v9531_v44 = vpop.f32.mrf.mxu0 }
 0x62d   :  { %v9539_v53 = vadd.f32 %v23424_v39, %v9456_v8  ;;  %v9450_v32 = vadd.f32 %v9449_v14, %v9358_v51  ;;  %v10896_v51 = vsel %vm72_vm0, %v10849_v29, -inf  ;;  %v10899_v39 = vsel %vm72_vm0, %v25522_v2, -inf }
 0x62e   :  { %v10900_v63 = vmax.f32 %v10896_v51, %v10899_v39  ;;  %v25555_v51 = vand.u32 4294901760, %v10296_v58 }
 0x62f   :  { %v9532_v9 = vadd.f32 %v9531_v44, %v9450_v32  ;;  %v25534_v44 = vld [vmem:[#allocation2 + $0xd0] sm:$0xff]  ;;  %v10911_v32 = vsel %vm72_vm0, %v10850_v34, -inf }
 0x630   :  { %v23431_v28 = vpop.f32.mrf.mxu1  ;;  %v23438_v50 = vpop.f32.mrf.mxu0 }
 0x631   :  { %v9622_v46 = vadd.f32 %v23431_v28, %v9539_v53  ;;  %v10910_v53 = vsel %vm72_vm0, %v10848_v1, -inf  ;;  %v10914_v28 = vsel %vm72_vm0, %v25526_v12, -inf }
 0x632   :  { %v9613_v22 = vpop.f32.mrf.mxu1  ;;  %v9698_v42 = vpop.f32.mrf.mxu0 }
 0x633   :  { %v9705_v0 = vadd.f32 %v23438_v50, %v9622_v46  ;;  %v9614_v27 = vadd.f32 %v9613_v22, %v9532_v9  ;;  %v10912_v9 = vsel %vm72_vm0, %v10852_v31, -inf  ;;  %v10863_v22 = vsel %vm72_vm0, %v10847_v18, 0.0 }
 0x634   :  { %v10903_v18 = vsel %vm72_vm0, %v25534_v44, -inf }
 0x635   :  { %v9699_v15 = vadd.f32 %v9698_v42, %v9614_v27  ;;  %v10864_v42 = vsel %vm72_vm0, %v10849_v29, 0.0  ;;  %v25543_v27 = vld [vmem:[#allocation2 + $0xd8] sm:$0xff]  ;;  %v10913_v29 = vmax.f32 %v10910_v53, %v10912_v9 }
 0x636   :  { %v23445_v62 = vpop.f32.mrf.mxu1  ;;  %v23452_v3 = vpop.f32.mrf.mxu0  ;;  %v10918_v1 = vsel %vm72_vm0, %v25543_v27, -inf }
 0x637   :  { %v9784_v33 = vadd.f32 %v23445_v62, %v9705_v0  ;;  %v10856_v0 = vld [vmem:[#allocation2 + $0xc8] sm:$0xff]  ;;  %v10879_v62 = vsel %vm72_vm0, %v10850_v34, 0.0  ;;  %v10865_v34 = vadd.f32 %v10864_v42, %v10863_v22  ;;  %v10881_v22 = vsel %vm72_vm0, %v10852_v31, 0.0 }
 0x638   :  { %v9777_v8 = vpop.f32.mrf.mxu1  ;;  %v9860_v14 = vpop.f32.mrf.mxu0  ;;  %v10916_v39 = vsel %vm72_vm0, %v10856_v0, -inf  ;;  %v10880_v53 = vadd.f32 %v10879_v62, %v10878_v36 }
 0x639   :  { %v9871_v50 = vadd.f32 %v23452_v3, %v9784_v33  ;;  %v9778_v46 = vadd.f32 %v9777_v8, %v9699_v15  ;;  %v25551_v3 = vld [vmem:[#allocation2 + $0xf0] sm:$0xff]  ;;  %v10915_v15 = vmax.f32 %v10911_v32, %v10914_v28  ;;  %v10904_v28 = vmax.f32 %v10900_v63, %v10903_v18 }
 0x63a   :  { %v10907_v23 = vsel %vm72_vm0, %v25551_v3, -inf  ;;  %v10917_v42 = vmax.f32 %v10913_v29, %v10916_v39  ;;  %v10922_v63 = vsel %vm72_vm0, %v25562_v11, -inf  ;;  %v10867_v36 = vadd.f32 %v10866_v21, %v10865_v34 }
 0x63b   :  { %v9861_v54 = vadd.f32 %v9860_v14, %v9778_v46  ;;  %v10902_v46 = vmax.f32 %v10898_v40, %v10901_v17  ;;  %v10919_v17 = vmax.f32 %v10915_v15, %v10918_v1  ;;  %v10868_v18 = vsel %vm72_vm0, %v25522_v2, 0.0 }
 0x63c   :  { %v23459_v33 = vpop.f32.mrf.mxu1  ;;  %v23466_v8 = vpop.f32.mrf.mxu0  ;;  %v10882_v47 = vadd.f32 %v10881_v22, %v10880_v53  ;;  %v10908_v29 = vmax.f32 %v10904_v28, %v10907_v23  ;;  %v10921_v39 = vmax.f32 %v10917_v42, %v10920_v35  ;;  %v10869_v16 = vadd.f32 %v10868_v18, %v10867_v36 }
 0x63d   :  { %v9958_v14 = vadd.f32 %v23459_v33, %v9871_v50  ;;  %v25571_v33 = vsub.f32 %v10296_v58, %v25555_v51  ;;  %v10883_v58 = vsel %vm72_vm0, %v25526_v12, 0.0  ;;  %v10923_v1 = vmax.f32 %v10919_v17, %v10922_v63 }
 0x63e   :  { %v9951_v32 = vpop.f32.mrf.mxu1  ;;  %v10033_v9 = vpop.f32.mrf.mxu0  ;;  %v10870_v2 = vsel %vm72_vm0, %v25529_v43, 0.0  ;;  %v10884_v53 = vadd.f32 %v10883_v58, %v10882_v47  ;;  %v10885_v23 = vsel %vm72_vm0, %v10856_v0, 0.0  ;;  %v10872_v17 = vsel %vm72_vm0, %v25534_v44, 0.0 }
 0x63f   :  { %v10041_v50 = vadd.f32 %v23466_v8, %v9958_v14  ;;  %v9952_v40 = vadd.f32 %v9951_v32, %v9861_v54  ;;  %v10906_v54 = vmax.f32 %v10902_v46, %v10905_v37  ;;  %v10377_v32 = vand.u32 4294901760, %v25571_v33 }
 0x640   :  { %v10924_v12 = vmax.f32 %v10921_v39, %v10923_v1  ;;  %v10886_v35 = vadd.f32 %v10885_v23, %v10884_v53  ;;  %v10887_v0 = vsel %vm72_vm0, %v25543_v27, 0.0  ;;  %v10889_v1 = vsel %vm72_vm0, %v25560_v48, 0.0 }
 0x641   :  { %v10034_v62 = vadd.f32 %v10033_v9, %v9952_v40  ;;  %v10909_v22 = vmax.f32 %v10906_v54, %v10908_v29  ;;  %v10871_v40 = vadd.f32 %v10870_v2, %v10869_v16  ;;  %v10874_v54 = vsel %vm72_vm0, %v25549_v19, 0.0 }
 0x642   :  { %v23473_v31 = vpop.f32.mrf.mxu1  ;;  %v23480_v8 = vpop.f32.mrf.mxu0  ;;  %v10933_v36 = vsel %vm72_vm0, %v10924_v12, 0  ;;  %v10888_v29 = vadd.f32 %v10887_v0, %v10886_v35  ;;  %v10876_v48 = vsel %vm72_vm0, %v25551_v3, 0.0 }
 0x643   :  { %v10124_v15 = vadd.f32 %v23473_v31, %v10041_v50  ;;  %v10378_v50 = vsub.f32 %v25571_v33, %v10377_v32  ;;  %v10930_v63 = vsel %vm72_vm0, %v10909_v22, 0  ;;  %v10928_v31 = vld [vmem:[#allocation5 + $0x78] sm:$0xff]  ;;  %v10873_v44 = vadd.f32 %v10872_v17, %v10871_v40 }
 0x644   :  { %v10115_v14 = vpop.f32.mrf.mxu1  ;;  %v10200_v9 = vpop.f32.mrf.mxu0  ;;  %v25607_v39 = vand.u32 4294901760, %v10933_v36 }
 0x645   :  { %v10207_v21 = vadd.f32 %v23480_v8, %v10124_v15  ;;  %v10116_v34 = vadd.f32 %v10115_v14, %v10034_v62  ;;  %v10379_v16 = vand.u32 4294901760, %v10378_v50  ;;  %v25601_v8 = vand.u32 4294901760, %v10930_v63  ;;  %v10927_v15 = vld [vmem:[#allocation5 + $0x70] sm:$0xff] }
 0x646   :  { %v25612_v14 = vand.u32 4294901760, %v10928_v31  ;;  %v25615_v2 = vand.u32 4294901760, %v10927_v15 }
 0x647   :  { %v10201_v37 = vadd.f32 %v10200_v9, %v10116_v34  ;;  %v23487_v46 = vpop.f32.mrf.mxu1  ;;  %v10875_v34 = vadd.f32 %v10874_v54, %v10873_v44  ;;  %v25618_v53 = vsub.f32 %v10930_v63, %v25601_v8  ;;  %v10890_v9 = vadd.f32 %v10889_v1, %v10888_v29 }
 0x648   :  { %v10286_v28 = vadd.f32 %v23487_v46, %v10207_v21  ;;  %v10891_v46 = vsel %vm72_vm0, %v25562_v11, 0.0  ;;  %v11052_v12 = vsub.f32 %v10928_v31, %v25612_v14  ;;  %v11059_v40 = vsub.f32 %v10927_v15, %v25615_v2 }
 0x649   :  { %v10279_v42 = vpop.f32.mrf.mxu1  ;;  %v10877_v50 = vadd.f32 %v10876_v48, %v10875_v34  ;;  %v25630_v3 = vand.u32 4294901760, %v25618_v53 }
 0x64a   :  { %v25590_v43 = vand.u32 4294901760, %v10286_v28  ;;  %v10280_v47 = vadd.f32 %v10279_v42, %v10201_v37  ;;  %v25623_v37 = vsub.f32 %v10933_v36, %v25607_v39  ;;  %v10892_v42 = vadd.f32 %v10891_v46, %v10890_v9 }
 0x64b   :  { %v25636_v17 = vand.u32 4294901760, %v11052_v12  ;;  %v10893_v35 = vmul.f32 0.125, %v10877_v50  ;;  %v11005_v63 = vsub.f32 %v25618_v53, %v25630_v3  ;;  %v25644_v0 = vand.u32 4294901760, %v11059_v40 }
 0x64c   :  { %v10415_v62 = vsub.f32 %v10286_v28, %v25590_v43  ;;  %v25597_v18 = vand.u32 4294901760, %v10280_v47  ;;  %23488 = vmatprep.subr.mxu0 %v25590_v43  ;;  %v25634_v11 = vand.u32 4294901760, %v25623_v37  ;;  %v10894_v36 = vmul.f32 0.125, %v10892_v42  ;;  %v11950_v42 = vld [vmem:[#allocation5 + $0x88] sm:$0xff] }
 0x64d   :  { %23489 = vmatpush3.msra.mxu0 %v25590_v43  ;;  %v25659_v31 = vand.u32 4294901760, %v11005_v63  ;;  %v11061_v44 = vsub.f32 %v11059_v40, %v25644_v0 }
 0x64e   :  { %v10422_v27 = vsub.f32 %v10280_v47, %v25597_v18  ;;  %23490 = vmatprep.subr.mxu0 %v25597_v18  ;;  %v10416_v58 = vand.u32 4294901760, %v10415_v62  ;;  %v26552_v47 = vand.u32 4294901760, %v25500_v13  ;;  %v11441_v54 = vsel %vm72_vm0, %v10894_v36, 0 }
 0x64f   :  { %23491 = vmatpush3.msra.mxu0 %v25597_v18  ;;  %v25673_v15 = vand.u32 4294901760, %v11441_v54 }
 0x650   :  { %23502 = vmatprep.subr.mxu0 %v10415_v62  ;;  %23493 = vmatmul.mubr.f32.vlgmr.msra.gmra.mxu0 %v10379_v16  ;;  %v10417_v21 = vsub.f32 %v10415_v62, %v10416_v58  ;;  %v10423_v19 = vand.u32 4294901760, %v10422_v27  ;;  %v11438_v16 = vsel %vm72_vm0, %v10893_v35, 0  ;;  %v11949_v35 = vld [vmem:[#allocation5 + $0x80] sm:$0xff] }
 0x651   :  { %23503 = vmatpush3.msra.mxu0 %v10415_v62  ;;  %23506 = vmatprep.mubr.f32.mxu0 %v25500_v13  ;;  %v11015_v62 = vsub.f32 %v25623_v37, %v25634_v11  ;;  %v11054_v13 = vsub.f32 %v11052_v12, %v25636_v17  ;;  %v25735_v63 = vand.u32 4294901760, %v11949_v35 }
 0x652   :  { %23504 = vmatprep.subr.mxu0 %v10422_v27  ;;  %v10418_v22 = vand.u32 4294901760, %v10417_v21  ;;  %v10424_v23 = vsub.f32 %v10422_v27, %v10423_v19 }
 0x653   :  { %23505 = vmatpush3.msra.mxu0 %v10422_v27  ;;  %v25665_v29 = vand.u32 4294901760, %v11015_v62  ;;  %v10926_v27 = vld [vmem:[#allocation5 + $0x8] sm:$0xff] }
 0x654   :  { %23495 = vmatprep.subr.mxu1 %v10418_v22  ;;  %23516 = vmatprep.subr.mxu0 %v10416_v58  ;;  %v10425_v28 = vand.u32 4294901760, %v10424_v23  ;;  %v25677_v1 = vand.u32 4294901760, %v10926_v27 }
 0x655   :  { %23496 = vmatpush3.msra.mxu1 %v10418_v22  ;;  %23507 = vmatmul.mubr.f32.vlgmr.msra.gmra.mxu0 %v25571_v33  ;;  %v11055_v33 = vand.u32 4294901760, %v11054_v13 }
 0x656   :  { %23517 = vmatpush3.msra.mxu0 %v10416_v58  ;;  %23497 = vmatprep.subr.mxu1 %v10425_v28  ;;  %v10925_v58 = vld [vmem:[#allocation5] sm:$0xff] }
 0x657   :  { %23518 = vmatprep.subr.mxu0 %v10423_v19  ;;  %23498 = vmatpush3.msra.mxu1 %v10425_v28  ;;  %v25681_v21 = vand.u32 4294901760, %v10925_v58 }
 0x658   :  { %23519 = vmatpush3.msra.mxu0 %v10423_v19  ;;  %23500 = vmatmul.mubr.f32.vlgmr.msra.gmra.mxu1 %v25555_v51  ;;  %v11560_v19 = vsub.f32 %v10926_v27, %v25677_v1  ;;  %v11947_v27 = vld [vmem:[#allocation5 + $0x10] sm:$0xff] }
 0x659   :  { %23509 = vmatprep.subr.mxu1 %v25590_v43  ;;  %23513 = vmatprep.mubr.f32.mxu1 %v26552_v47  ;;  %v11567_v34 = vsub.f32 %v10925_v58, %v25681_v21  ;;  %v25731_v47 = vand.u32 4294901760, %v11950_v42 }
 0x65a   :  { %23510 = vmatpush3.msra.mxu1 %v25590_v43  ;;  %23520 = vmatprep.mubr.f32.mxu0 %v25497_v4  ;;  %v11561_v9 = vand.u32 4294901760, %v11560_v19 }
 0x65b   :  { %23511 = vmatprep.subr.mxu1 %v25597_v18  ;;  %23521 = vmatmul.mubr.f32.vlgmr.msra.gmra.mxu0 %v25555_v51  ;;  %v11568_v23 = vand.u32 4294901760, %v11567_v34 }
 0x65c   :  { %23512 = vmatpush3.msra.mxu1 %v25597_v18  ;;  %23530 = vmatprep.subr.mxu0 %v25612_v14 }
 0x65d   :  { %23514 = vmatmul.mubr.f32.vlgmr.msra.gmra.mxu1 %v10377_v32  ;;  %23523 = vmatprep.subr.mxu1 %v25590_v43  ;;  %v25669_v32 = vand.u32 4294901760, %v11438_v16  ;;  %v11569_v50 = vsub.f32 %v11567_v34, %v11568_v23 }
 0x65e   :  { %23524 = vmatpush3.msra.mxu1 %v25590_v43  ;;  %23531 = vmatpush3.msra.mxu0 %v25612_v14  ;;  %v11062_v43 = vand.u32 4294901760, %v11061_v44  ;;  %v11948_v44 = vld [vmem:[#allocation5 + $0x18] sm:$0xff] }
 0x65f   :  { %23525 = vmatprep.subr.mxu1 %v25597_v18  ;;  %23532 = vmatprep.subr.mxu0 %v25615_v2  ;;  %v25761_v58 = vand.u32 4294901760, %v11948_v44 }
 0x660   :  { %23526 = vmatpush3.msra.mxu1 %v25597_v18  ;;  %23527 = vmatprep.mubr.f32.mxu1 %v25497_v4  ;;  %v25684_v4 = vsub.f32 %v11438_v16, %v25669_v32  ;;  %v25687_v18 = vsub.f32 %v11441_v54, %v25673_v15 }
 0x661   :  { %23533 = vmatpush3.msra.mxu0 %v25615_v2  ;;  %23534 = vmatprep.mubr.f32.mxu0 %v25659_v31 }
 0x662   :  { %23528 = vmatmul.mubr.f32.vlgmr.msra.gmra.mxu1 %v25555_v51  ;;  %23535 = vmatmul.mubr.f32.vlgmr.msra.gmra.mxu0 %v25665_v29  ;;  %v25693_v51 = vand.u32 4294901760, %v25684_v4  ;;  %v25699_v48 = vand.u32 4294901760, %v25687_v18 }
 0x663   :  { %23537 = vmatprep.subr.mxu1 %v11055_v33  ;;  %23544 = vmatprep.subr.mxu0 %v11052_v12 }
 0x664   :  { %23538 = vmatpush3.msra.mxu1 %v11055_v33  ;;  %23545 = vmatpush3.msra.mxu0 %v11052_v12  ;;  %v11513_v22 = vsub.f32 %v25684_v4, %v25693_v51  ;;  %v11523_v46 = vsub.f32 %v25687_v18, %v25699_v48  ;;  %v11562_v12 = vsub.f32 %v11560_v19, %v11561_v9 }
 0x665   :  { %23539 = vmatprep.subr.mxu1 %v11062_v43  ;;  %23546 = vmatprep.subr.mxu0 %v11059_v40 }
 0x666   :  { %23540 = vmatpush3.msra.mxu1 %v11062_v43  ;;  %23541 = vmatprep.mubr.f32.mxu1 %v25601_v8  ;;  %v25719_v28 = vand.u32 4294901760, %v11513_v22  ;;  %v25765_v43 = vand.u32 4294901760, %v11947_v27 }
 0x667   :  { %23547 = vmatpush3.msra.mxu0 %v11059_v40  ;;  %23548 = vmatprep.mubr.f32.mxu0 %v25618_v53  ;;  %v25723_v40 = vand.u32 4294901760, %v11523_v46 }
 0x668   :  { %23542 = vmatmul.mubr.f32.vlgmr.msra.gmra.mxu1 %v25607_v39  ;;  %23549 = vmatmul.mubr.f32.vlgmr.msra.gmra.mxu0 %v25623_v37 }
 0x669   :  { %23551 = vmatprep.subr.mxu1 %v25612_v14  ;;  %23558 = vmatprep.subr.mxu0 %v25636_v17 }
 0x66a   :  { %23552 = vmatpush3.msra.mxu1 %v25612_v14  ;;  %23559 = vmatpush3.msra.mxu0 %v25636_v17  ;;  %v11563_v17 = vand.u32 4294901760, %v11562_v12  ;;  %v12955_v12 = vld [vmem:[#allocation7 + $0x10] sm:$0xff] }
 0x66b   :  { %23553 = vmatprep.subr.mxu1 %v25615_v2  ;;  %23560 = vmatprep.subr.mxu0 %v25644_v0 }
 0x66c   :  { %23554 = vmatpush3.msra.mxu1 %v25615_v2  ;;  %23555 = vmatprep.mubr.f32.mxu1 %v25630_v3 }
 0x66d   :  { %23561 = vmatpush3.msra.mxu0 %v25644_v0  ;;  %23562 = vmatprep.mubr.f32.mxu0 %v25601_v8  ;;  %v12075_v0 = vsub.f32 %v11949_v35, %v25735_v63 }
 0x66e   :  { %23556 = vmatmul.mubr.f32.vlgmr.msra.gmra.mxu1 %v25634_v11  ;;  %23563 = vmatmul.mubr.f32.vlgmr.msra.gmra.mxu0 %v25607_v39 }
 0x66f   :  { %23565 = vmatprep.subr.mxu1 %v25612_v14  ;;  %23572 = vmatprep.subr.mxu0 %v25677_v1  ;;  %v12076_v62 = vand.u32 4294901760, %v12075_v0 }
 0x670   :  { %23566 = vmatpush3.msra.mxu1 %v25612_v14  ;;  %23573 = vmatpush3.msra.mxu0 %v25677_v1  ;;  %v11570_v14 = vand.u32 4294901760, %v11569_v50  ;;  %v12958_v50 = vsel %vm72_vm0, %v12955_v12, 0 }
 0x671   :  { %23567 = vmatprep.subr.mxu1 %v25615_v2  ;;  %23574 = vmatprep.subr.mxu0 %v25681_v21  ;;  %v12077_v16 = vsub.f32 %v12075_v0, %v12076_v62 }
 0x672   :  { %23568 = vmatpush3.msra.mxu1 %v25615_v2  ;;  %23569 = vmatprep.mubr.f32.mxu1 %v25601_v8  ;;  %v12068_v2 = vsub.f32 %v11950_v42, %v25731_v47  ;;  %v25812_v42 = vand.u32 4294901760, %v12958_v50 }
 0x673   :  { %23575 = vmatpush3.msra.mxu0 %v25681_v21  ;;  %23576 = vmatprep.mubr.f32.mxu0 %v25719_v28  ;;  %v12078_v33 = vand.u32 4294901760, %v12077_v16  ;;  %v4371_v16 = vadd.f32 %v25202_v24, %v25198_v7 }
 0x674   :  { %23570 = vmatmul.mubr.f32.vlgmr.msra.gmra.mxu1 %v25607_v39  ;;  %23577 = vmatmul.mubr.f32.vlgmr.msra.gmra.mxu0 %v25723_v40  ;;  %v12069_v36 = vand.u32 4294901760, %v12068_v2 }
 0x675   :  { %23579 = vmatprep.subr.mxu1 %v11563_v17  ;;  %23586 = vmatprep.subr.mxu0 %v11560_v19 }
 0x676   :  { %23580 = vmatpush3.msra.mxu1 %v11563_v17  ;;  %23587 = vmatpush3.msra.mxu0 %v11560_v19  ;;  %v12070_v13 = vsub.f32 %v12068_v2, %v12069_v36  ;;  %v25815_v17 = vsub.f32 %v12958_v50, %v25812_v42  ;;  %v26563_v50 = vld [vmem:[#allocation21_spill] sm:$0xff] }
 0x677   :  { %23581 = vmatprep.subr.mxu1 %v11570_v14  ;;  %23588 = vmatprep.subr.mxu0 %v11567_v34 }
 0x678   :  { %23582 = vmatpush3.msra.mxu1 %v11570_v14  ;;  %23583 = vmatprep.mubr.f32.mxu1 %v25669_v32  ;;  %v12071_v54 = vand.u32 4294901760, %v12070_v13  ;;  %v13032_v35 = vand.u32 4294901760, %v25815_v17 }
 0x679   :  { %23589 = vmatpush3.msra.mxu0 %v11567_v34  ;;  %23590 = vmatprep.mubr.f32.mxu0 %v25684_v4 }
 0x67a   :  { %23584 = vmatmul.mubr.f32.vlgmr.msra.gmra.mxu1 %v25673_v15  ;;  %23591 = vmatmul.mubr.f32.vlgmr.msra.gmra.mxu0 %v25687_v18  ;;  %v13033_v14 = vsub.f32 %v25815_v17, %v13032_v35 }
 0x67b   :  { %23593 = vmatprep.subr.mxu1 %v25677_v1  ;;  %23600 = vmatprep.subr.mxu0 %v11561_v9 }
 0x67c   :  { %23594 = vmatpush3.msra.mxu1 %v25677_v1  ;;  %23601 = vmatpush3.msra.mxu0 %v11561_v9 }
 0x67d   :  { %23595 = vmatprep.subr.mxu1 %v25681_v21  ;;  %23602 = vmatprep.subr.mxu0 %v11568_v23 }
 0x67e   :  { %23596 = vmatpush3.msra.mxu1 %v25681_v21  ;;  %23597 = vmatprep.mubr.f32.mxu1 %v25693_v51 }
 0x67f   :  { %23603 = vmatpush3.msra.mxu0 %v11568_v23  ;;  %23604 = vmatprep.mubr.f32.mxu0 %v25669_v32 }
 0x680   :  { %23598 = vmatmul.mubr.f32.vlgmr.msra.gmra.mxu1 %v25699_v48  ;;  %23605 = vmatmul.mubr.f32.vlgmr.msra.gmra.mxu0 %v25673_v15 }
 0x681   :  { %23607 = vmatprep.subr.mxu1 %v25677_v1  ;;  %23614 = vmatprep.subr.mxu0 %v25731_v47 }
 0x682   :  { %23608 = vmatpush3.msra.mxu1 %v25677_v1  ;;  %23615 = vmatpush3.msra.mxu0 %v25731_v47  ;;  %v12570_v1 = vsub.f32 %v11948_v44, %v25761_v58 }
 0x683   :  { %23609 = vmatprep.subr.mxu1 %v25681_v21  ;;  %23616 = vmatprep.subr.mxu0 %v25735_v63 }
 0x684   :  { %23610 = vmatpush3.msra.mxu1 %v25681_v21  ;;  %23611 = vmatprep.mubr.f32.mxu1 %v25669_v32  ;;  %v12577_v21 = vsub.f32 %v11947_v27, %v25765_v43  ;;  %v12571_v19 = vand.u32 4294901760, %v12570_v1  ;;  %v26554_v27 = vld [vmem:[#allocation13_spill] sm:$0xff] }
 0x685   :  { %23617 = vmatpush3.msra.mxu0 %v25735_v63  ;;  %23618 = vmatprep.mubr.f32.mxu0 %v25659_v31 }
 0x686   :  { %23612 = vmatmul.mubr.f32.vlgmr.msra.gmra.mxu1 %v25673_v15  ;;  %23619 = vmatmul.mubr.f32.vlgmr.msra.gmra.mxu0 %v25665_v29  ;;  %v12578_v34 = vand.u32 4294901760, %v12577_v21  ;;  %v12572_v9 = vsub.f32 %v12570_v1, %v12571_v19 }
 0x687   :  { %23621 = vmatprep.subr.mxu1 %v12071_v54  ;;  %23628 = vmatprep.subr.mxu0 %v12068_v2 }
 0x688   :  { %23622 = vmatpush3.msra.mxu1 %v12071_v54  ;;  %23629 = vmatpush3.msra.mxu0 %v12068_v2  ;;  %v12579_v22 = vsub.f32 %v12577_v21, %v12578_v34  ;;  %v12573_v23 = vand.u32 4294901760, %v12572_v9  ;;  %v5894_v54 = vadd.f32 %v25305_v41, %v25301_v26  ;;  %v26555_v41 = vld [vmem:[#allocation18_spill] sm:$0xff] }
 0x689   :  { %23623 = vmatprep.subr.mxu1 %v12078_v33  ;;  %23630 = vmatprep.subr.mxu0 %v12075_v0 }
 0x68a   :  { %23624 = vmatpush3.msra.mxu1 %v12078_v33  ;;  %23625 = vmatprep.mubr.f32.mxu1 %v25601_v8  ;;  %v12580_v46 = vand.u32 4294901760, %v12579_v22  ;;  %v26556_v33 = vld [vmem:[#allocation24_spill] sm:$0xff] }
 0x68b   :  { %23631 = vmatpush3.msra.mxu0 %v12075_v0  ;;  %23632 = vmatprep.mubr.f32.mxu0 %v25618_v53 }
 0x68c   :  { %23626 = vmatmul.mubr.f32.vlgmr.msra.gmra.mxu1 %v25607_v39  ;;  %23633 = vmatmul.mubr.f32.vlgmr.msra.gmra.mxu0 %v25623_v37 }
 0x68d   :  { %23635 = vmatprep.subr.mxu1 %v25731_v47  ;;  %23642 = vmatprep.subr.mxu0 %v12069_v36 }
 0x68e   :  { %23636 = vmatpush3.msra.mxu1 %v25731_v47  ;;  %23643 = vmatpush3.msra.mxu0 %v12069_v36 }
 0x68f   :  { %23637 = vmatprep.subr.mxu1 %v25735_v63  ;;  %23644 = vmatprep.subr.mxu0 %v12076_v62 }
 0x690   :  { %23638 = vmatpush3.msra.mxu1 %v25735_v63  ;;  %23639 = vmatprep.mubr.f32.mxu1 %v25630_v3 }
 0x691   :  { %23645 = vmatpush3.msra.mxu0 %v12076_v62  ;;  %23646 = vmatprep.mubr.f32.mxu0 %v25601_v8 }
 0x692   :  { %23640 = vmatmul.mubr.f32.vlgmr.msra.gmra.mxu1 %v25634_v11  ;;  %23647 = vmatmul.mubr.f32.vlgmr.msra.gmra.mxu0 %v25607_v39 }
 0x693   :  { %23649 = vmatprep.subr.mxu1 %v25731_v47  ;;  %23656 = vmatprep.subr.mxu0 %v25761_v58 }
 0x694   :  { %23650 = vmatpush3.msra.mxu1 %v25731_v47  ;;  %23657 = vmatpush3.msra.mxu0 %v25761_v58  ;;  %v13034_v47 = vand.u32 4294901760, %v13033_v14 }
 0x695   :  { %23651 = vmatprep.subr.mxu1 %v25735_v63  ;;  %23658 = vmatprep.subr.mxu0 %v25765_v43 }
 0x696   :  { %23652 = vmatpush3.msra.mxu1 %v25735_v63  ;;  %23653 = vmatprep.mubr.f32.mxu1 %v25601_v8  ;;  %v2342_v63 = vadd.f32 %v25088_v57, %v25084_v38  ;;  %v4453_v38 = vadd.f32 %v25200_v59, %v4371_v16  ;;  %v26566_v16 = vld [vmem:[#allocation25_spill] sm:$0xff] }
 0x697   :  { %23659 = vmatpush3.msra.mxu0 %v25765_v43  ;;  %23660 = vmatprep.mubr.f32.mxu0 %v25719_v28 }
 0x698   :  { %23654 = vmatmul.mubr.f32.vlgmr.msra.gmra.mxu1 %v25607_v39  ;;  %23661 = vmatmul.mubr.f32.vlgmr.msra.gmra.mxu0 %v25723_v40  ;;  %v2424_v2 = vadd.f32 %v25086_v6, %v2342_v63  ;;  %v7417_v6 = vadd.f32 %v25408_v52, %v25404_v10  ;;  %v4535_v7 = vadd.f32 %v25206_v5, %v4453_v38  ;;  %v26557_v52 = vld [vmem:[#allocation15_spill] sm:$0xff]  ;;  %v26561_v5 = vld [vmem:[#allocation26_spill] sm:$0xff] }
 0x699   :  { %23663 = vmatprep.subr.mxu1 %v12573_v23  ;;  %23670 = vmatprep.subr.mxu0 %v12570_v1 }
 0x69a   :  { %23664 = vmatpush3.msra.mxu1 %v12573_v23  ;;  %23671 = vmatpush3.msra.mxu0 %v12570_v1  ;;  %v2506_v0 = vadd.f32 %v25092_v55, %v2424_v2  ;;  %v5976_v55 = vadd.f32 %v25303_v30, %v5894_v54 }
 0x69b   :  { %23665 = vmatprep.subr.mxu1 %v12580_v46  ;;  %23672 = vmatprep.subr.mxu0 %v12577_v21 }
 0x69c   :  { %23666 = vmatpush3.msra.mxu1 %v12580_v46  ;;  %23667 = vmatprep.mubr.f32.mxu1 %v25669_v32  ;;  %v2591_v36 = vadd.f32 %v25090_v45, %v2506_v0  ;;  %v6058_v59 = vadd.f32 %v26555_v41, %v5976_v55  ;;  %v26562_v46 = vld [vmem:[#allocation16_spill] sm:$0xff]  ;;  %v26564_v0 = vld [vmem:[#allocation14_spill] sm:$0xff] }
 0x69d   :  { %23673 = vmatpush3.msra.mxu0 %v12577_v21  ;;  %23674 = vmatprep.mubr.f32.mxu0 %v25684_v4 }
 0x69e   :  { %23668 = vmatmul.mubr.f32.vlgmr.msra.gmra.mxu1 %v25673_v15  ;;  %23675 = vmatmul.mubr.f32.vlgmr.msra.gmra.mxu0 %v25687_v18  ;;  %v2670_v62 = vadd.f32 %v25096_v25, %v2591_v36 }
 0x69f   :  { %23677 = vmatprep.subr.mxu1 %v25761_v58  ;;  %23684 = vmatprep.subr.mxu0 %v12571_v19 }
 0x6a0   :  { %23678 = vmatpush3.msra.mxu1 %v25761_v58  ;;  %23685 = vmatpush3.msra.mxu0 %v12571_v19  ;;  %v2759_v13 = vadd.f32 %v25094_v49, %v2670_v62  ;;  %v8940_v49 = vadd.f32 %v25511_v20, %v25507_v60  ;;  %v26559_v19 = vld [vmem:[#allocation12_spill] sm:$0xff]  ;;  %v26560_v20 = vld [vmem:[#allocation17_spill] sm:$0xff]  ;;  %v26565_v62 = vld [vmem:[#allocation19_spill] sm:$0xff] }
 0x6a1   :  { %23679 = vmatprep.subr.mxu1 %v25765_v43  ;;  %23686 = vmatprep.subr.mxu0 %v12578_v34 }
 0x6a2   :  { %23680 = vmatpush3.msra.mxu1 %v25765_v43  ;;  %23681 = vmatprep.mubr.f32.mxu1 %v25693_v51  ;;  %v2850_v44 = vadd.f32 %v25100_v61, %v2759_v13  ;;  %v26553_v61 = vld [vmem:[#allocation20_spill] sm:$0xff] }
 0x6a3   :  { %23687 = vmatpush3.msra.mxu0 %v12578_v34  ;;  %23688 = vmatprep.mubr.f32.mxu0 %v25669_v32  ;;  %v7499_v24 = vadd.f32 %v26553_v61, %v7417_v6  ;;  %v6143_v34 = vadd.f32 %v26560_v20, %v6058_v59 }
 0x6a4   :  { %23682 = vmatmul.mubr.f32.vlgmr.msra.gmra.mxu1 %v25699_v48  ;;  %23689 = vmatmul.mubr.f32.vlgmr.msra.gmra.mxu0 %v25673_v15  ;;  %v2932_v45 = vadd.f32 %v25098_v56, %v2850_v44  ;;  %v26558_v56 = vld [vmem:[#allocation22_spill] sm:$0xff] }
 0x6a5   :  { %23691 = vmatprep.subr.mxu1 %v25761_v58  ;;  %23695 = vmatprep.mubr.f32.mxu1 %v25669_v32  ;;  %v7581_v1 = vadd.f32 %v26558_v56, %v7499_v24  ;;  %v6222_v13 = vadd.f32 %v26565_v62, %v6143_v34 }
 0x6a6   :  { %23692 = vmatpush3.msra.mxu1 %v25761_v58  ;;  %23702 = vmatprep.mubr.f32.mxu0 %v13034_v47  ;;  %v3014_v26 = vadd.f32 %v26554_v27, %v2932_v45  ;;  %v9022_v58 = vadd.f32 %v26556_v33, %v8940_v49 }
 0x6a7   :  { %23693 = vmatprep.subr.mxu1 %v25765_v43  ;;  %v7666_v14 = vadd.f32 %v26563_v50, %v7581_v1  ;;  %v26569_v1 = vld [vmem:[#allocation28_spill] sm:$0xff] }
 0x6a8   :  { %23694 = vmatpush3.msra.mxu1 %v25765_v43  ;;  %v4620_v43 = vadd.f32 %v26557_v52, %v4535_v7  ;;  %v3099_v60 = vadd.f32 %v26559_v19, %v3014_v26  ;;  %v9104_v9 = vadd.f32 %v26561_v5, %v9022_v58  ;;  %v26568_v26 = vld [vmem:[#allocation27_spill] sm:$0xff] }
 0x6a9   :  { %23696 = vmatmul.mubr.f32.vlgmr.msra.gmra.mxu1 %v25673_v15 }
 0x6aa   :  { %23709 = vmatprep.mubr.f32.mxu1 %v25812_v42  ;;  %v4699_v12 = vadd.f32 %v26562_v46, %v4620_v43  ;;  %v3178_v36 = vadd.f32 %v26564_v0, %v3099_v60  ;;  %v9189_v44 = vadd.f32 %v26566_v16, %v9104_v9 }
 0x6ac   :  { %v4708_v55 = vadd.f32 %v4699_v12, %v3178_v36 }
 0x6ae   :  { %v6231_v27 = vadd.f32 %v6222_v13, %v4708_v55 }
 0x710   :  { %v23494_v57 = vpop.f32.mrf.mxu0 }
 0x712   :  { %v10371_v25 = vpop.f32.mrf.mxu0 }
 0x715   :  { %v23508_v10 = vpop.f32.mrf.mxu0 }
 0x717   :  { %v10544_v30 = vpop.f32.mrf.mxu0 }
 0x718   :  { %v23501_v21 = vpop.f32.mrf.mxu1 }
 0x719   :  { %v10469_v22 = vadd.f32 %v23501_v21, %v23494_v57  ;;  %v26567_v57 = vld [vmem:[#allocation23_spill] sm:$0xff] }
 0x71a   :  { %v10462_v23 = vpop.f32.mrf.mxu1  ;;  %v7745_v49 = vadd.f32 %v26567_v57, %v7666_v14 }
 0x71b   :  { %v10552_v47 = vadd.f32 %v23508_v10, %v10469_v22  ;;  %v10463_v63 = vadd.f32 %v10462_v23, %v10371_v25  ;;  %v23522_v2 = vpop.f32.mrf.mxu0  ;;  %v9268_v25 = vadd.f32 %v26568_v26, %v9189_v44 }
 0x71c   :  { %v7754_v58 = vadd.f32 %v7745_v49, %v6231_v27  ;;  %v24434_v27 = vld [vmem:[#allocation2 + $0x8] sm:$0xff] }
 0x71d   :  { %v10545_v54 = vadd.f32 %v10544_v30, %v10463_v63  ;;  %v23515_v38 = vpop.f32.mrf.mxu1  ;;  %v10711_v45 = vpop.f32.mrf.mxu0 }
 0x71e   :  { %v10635_v6 = vadd.f32 %v23515_v38, %v10552_v47  ;;  %v9277_v56 = vadd.f32 %v9268_v25, %v7754_v58  ;;  %v24435_v25 = vld [vmem:[#allocation2 + $0x18] sm:$0xff] }
 0x71f   :  { %v10626_v7 = vpop.f32.mrf.mxu1 }
 0x720   :  { %v10718_v61 = vadd.f32 %v23522_v2, %v10635_v6  ;;  %v10627_v24 = vadd.f32 %v10626_v7, %v10545_v54 }
 0x722   :  { %v10712_v41 = vadd.f32 %v10711_v45, %v10627_v24  ;;  %v23529_v59 = vpop.f32.mrf.mxu1  ;;  %v23536_v33 = vpop.f32.mrf.mxu0 }
 0x723   :  { %v10797_v10 = vadd.f32 %v23529_v59, %v10718_v61  ;;  %v24436_v59 = vld [vmem:[#allocation2 + $0x28] sm:$0xff] }
 0x724   :  { %v10790_v52 = vpop.f32.mrf.mxu1  ;;  %v25858_v43 = vpop.f32.mrf.mxu0 }
 0x725   :  { %v10801_v30 = vadd.f32 %v10797_v10, %v26569_v1  ;;  %v10791_v21 = vadd.f32 %v10790_v52, %v10712_v41  ;;  %v24437_v10 = vld [vmem:[#allocation2 + $0x38] sm:$0xff]  ;;  %v24438_v1 = vld [vmem:[#allocation2 + $0x48] sm:$0xff] }
 0x727   :  { %v21637_v19 = vmul.f32 -1.442695, %v10801_v30  ;;  %v10800_v60 = vadd.f32 %v10791_v21, %v9277_v56  ;;  %v24439_v21 = vld [vmem:[#allocation2 + $0x58] sm:$0xff] }
 0x728   :  { %v23543_v20 = vpop.f32.mrf.mxu1  ;;  %v25861_v34 = vpop.f32.mrf.mxu0 }
 0x729   :  { %24418 = vpow2.f32 %v21637_v19  ;;  %v21636_v5 = vmul.f32 -1.442695, %v10800_v60  ;;  %v11106_v7 = vadd.f32 %v23543_v20, %v23536_v33  ;;  %v24440_v60 = vld [vmem:[#allocation2 + $0x68] sm:$0xff] }
 0x72a   :  { %v25863_v9 = vpop.f32.mrf.mxu1  ;;  %v25865_v22 = vpop.f32.mrf.mxu0 }
 0x72b   :  { %24420 = vpow2.f32 %v21636_v5 }
 0x72e   :  { %v25867_v23 = vpop.f32.mrf.mxu1  ;;  %v25869_v46 = vpop.f32.mrf.mxu0 }
 0x730   :  { %v25871_v12 = vpop.f32.mrf.mxu1  ;;  %v25873_v50 = vpop.f32.mrf.mxu0 }
 0x734   :  { %v25875_v14 = vpop.f32.mrf.mxu1  ;;  %v25877_v47 = vpop.f32.mrf.mxu0 }
 0x736   :  { %v24419_v63 = vpop.eup %24418  ;;  %v25879_v2 = vpop.f32.mrf.mxu1 }
 0x737   :  { %v25881_v0 = vpop.f32.mrf.mxu0  ;;  %v10809_v36 = vadd.f32 1.0, %v24419_v63  ;;  %v24441_v63 = vld [vmem:[#allocation2 + $0x78] sm:$0xff] }
 0x738   :  { %v24421_v62 = vpop.eup %24420 }
 0x739   :  { %24422 = vrcp.f32 %v10809_v36  ;;  %v10808_v13 = vadd.f32 1.0, %v24421_v62  ;;  %v24442_v62 = vld [vmem:[#allocation2] sm:$0xff] }
 0x73a   :  { %v25883_v16 = vpop.f32.mrf.mxu1  ;;  %v25885_v44 = vpop.f32.mrf.mxu0 }
 0x73b   :  { %24424 = vrcp.f32 %v10808_v13 }
 0x73c   :  { %v25887_v54 = vpop.f32.mrf.mxu1  ;;  %v25889_v38 = vpop.f32.mrf.mxu0 }
 0x740   :  { %v25891_v6 = vpop.f32.mrf.mxu1  ;;  %v25893_v45 = vpop.f32.mrf.mxu0 }
 0x742   :  { %v25895_v55 = vpop.f32.mrf.mxu1  ;;  %v25897_v57 = vpop.f32.mrf.mxu0 }
 0x746   :  { %v24423_v49 = vpop.eup %24422  ;;  %v25899_v61 = vpop.f32.mrf.mxu1 }
 0x747   :  { %v23620_v24 = vpop.f32.mrf.mxu0  ;;  %v10815_v26 = vmul.f32 %v24434_v27, %v24423_v49  ;;  %v10817_v41 = vmul.f32 %v24435_v25, %v24423_v49  ;;  %v10819_v58 = vmul.f32 %v24436_v59, %v24423_v49  ;;  %v10821_v52 = vmul.f32 %v24437_v10, %v24423_v49  ;;  %v24443_v27 = vld [vmem:[#allocation2 + $0x10] sm:$0xff]  ;;  %v24444_v59 = vld [vmem:[#allocation2 + $0x20] sm:$0xff] }
 0x748   :  { %v24425_v56 = vpop.eup %24424  ;;  %v10823_v30 = vmul.f32 %v24438_v1, %v24423_v49  ;;  %v10825_v19 = vmul.f32 %v24439_v21, %v24423_v49  ;;  %v10827_v5 = vmul.f32 %v24440_v60, %v24423_v49  ;;  %v10829_v33 = vmul.f32 %v24441_v63, %v24423_v49  ;;  %v25901_v20 = vpop.f32.mrf.mxu1  ;;  %v24445_v1 = vld [vmem:[#allocation2 + $0x30] sm:$0xff]  ;;  %v24446_v49 = vld [vmem:[#allocation2 + $0x40] sm:$0xff] }
 0x749   :  { %v12024_v36 = vpop.f32.mrf.mxu0  ;;  %10831 = vst.msk [vmem:[#allocation8 + $0x8] sm:$0xff] %vm72_vm0, %v10815_v26  ;;  %10833 = vst.msk [vmem:[#allocation8 + $0x18] sm:$0xff] %vm72_vm0, %v10817_v41  ;;  %v10814_v13 = vmul.f32 %v24442_v62, %v24425_v56  ;;  %v10816_v25 = vmul.f32 %v24443_v27, %v24425_v56  ;;  %v10818_v10 = vmul.f32 %v24444_v59, %v24425_v56  ;;  %v24447_v41 = vld [vmem:[#allocation2 + $0x50] sm:$0xff] }
 0x74a   :  { %10835 = vst.msk [vmem:[#allocation8 + $0x28] sm:$0xff] %vm72_vm0, %v10819_v58  ;;  %10837 = vst.msk [vmem:[#allocation8 + $0x38] sm:$0xff] %vm72_vm0, %v10821_v52  ;;  %v10820_v21 = vmul.f32 %v24445_v1, %v24425_v56  ;;  %v10822_v26 = vmul.f32 %v24446_v49, %v24425_v56  ;;  %v10824_v58 = vmul.f32 %v24447_v41, %v24425_v56  ;;  %v24448_v52 = vld [vmem:[#allocation2 + $0x60] sm:$0xff]  ;;  %v24449_v63 = vld [vmem:[#allocation2 + $0x70] sm:$0xff] }
 0x74b   :  { %10839 = vst.msk [vmem:[#allocation8 + $0x48] sm:$0xff] %vm72_vm0, %v10823_v30  ;;  %10841 = vst.msk [vmem:[#allocation8 + $0x58] sm:$0xff] %vm72_vm0, %v10825_v19  ;;  %v10826_v60 = vmul.f32 %v24448_v52, %v24425_v56  ;;  %v10828_v62 = vmul.f32 %v24449_v63, %v24425_v56  ;;  %v11100_v30 = vadd.f32 %v25863_v9, %v25858_v43 }
 0x74c   :  { %10843 = vst.msk [vmem:[#allocation8 + $0x68] sm:$0xff] %vm72_vm0, %v10827_v5  ;;  %10845 = vst.msk [vmem:[#allocation8 + $0x78] sm:$0xff] %vm72_vm0, %v10829_v33  ;;  %v23627_v56 = vpop.f32.mrf.mxu1  ;;  %v23634_v19 = vpop.f32.mrf.mxu0  ;;  %v11189_v5 = vadd.f32 %v25861_v34, %v11106_v7 }
 0x74d   :  { %10830 = vst.msk [vmem:[#allocation8] sm:$0xff] %vm72_vm0, %v10814_v13  ;;  %10832 = vst.msk [vmem:[#allocation8 + $0x10] sm:$0xff] %vm72_vm0, %v10816_v25  ;;  %v12122_v33 = vadd.f32 %v23627_v56, %v23620_v24  ;;  %v11182_v25 = vadd.f32 %v25865_v22, %v11100_v30 }
 0x74e   :  { %10834 = vst.msk [vmem:[#allocation8 + $0x20] sm:$0xff] %vm72_vm0, %v10818_v10  ;;  %10836 = vst.msk [vmem:[#allocation8 + $0x30] sm:$0xff] %vm72_vm0, %v10820_v21  ;;  %v12115_v13 = vpop.f32.mrf.mxu1  ;;  %v12197_v27 = vpop.f32.mrf.mxu0  ;;  %v11272_v43 = vadd.f32 %v25867_v23, %v11189_v5 }
 0x74f   :  { %10838 = vst.msk [vmem:[#allocation8 + $0x40] sm:$0xff] %vm72_vm0, %v10822_v26  ;;  %10840 = vst.msk [vmem:[#allocation8 + $0x50] sm:$0xff] %vm72_vm0, %v10824_v58  ;;  %v12205_v59 = vadd.f32 %v23634_v19, %v12122_v33  ;;  %v12116_v10 = vadd.f32 %v12115_v13, %v12024_v36  ;;  %v11264_v49 = vadd.f32 %v25871_v12, %v11182_v25  ;;  %v12956_v36 = vld [vmem:[#allocation7 + $0x18] sm:$0xff] }
 0x750   :  { %10842 = vst.msk [vmem:[#allocation8 + $0x60] sm:$0xff] %vm72_vm0, %v10826_v60  ;;  %10844 = vst.msk [vmem:[#allocation8 + $0x70] sm:$0xff] %vm72_vm0, %v10828_v62  ;;  %v11355_v52 = vadd.f32 %v25869_v46, %v11272_v43  ;;  %v12961_v33 = vsel %vm72_vm0, %v12956_v36, 0 }
 0x751   :  { %v12198_v9 = vadd.f32 %v12197_v27, %v12116_v10  ;;  %v11349_v24 = vadd.f32 %v25873_v50, %v11264_v49  ;;  %v25931_v25 = vand.u32 4294901760, %v12961_v33 }
 0x752   :  { %v23641_v1 = vpop.f32.mrf.mxu1  ;;  %v23648_v21 = vpop.f32.mrf.mxu0  ;;  %v11434_v23 = vadd.f32 %v25875_v14, %v11355_v52 }
 0x753   :  { %v12288_v26 = vadd.f32 %v23641_v1, %v12205_v59  ;;  %v11428_v12 = vadd.f32 %v25879_v2, %v11349_v24 }
 0x754   :  { %v12279_v41 = vpop.f32.mrf.mxu1  ;;  %v12364_v58 = vpop.f32.mrf.mxu0  ;;  %v11527_v46 = vadd.f32 %v25877_v47, %v11434_v23 }
 0x755   :  { %v12371_v34 = vadd.f32 %v23648_v21, %v12288_v26  ;;  %v12280_v7 = vadd.f32 %v12279_v41, %v12198_v9  ;;  %v11517_v59 = vadd.f32 %v25881_v0, %v11428_v12  ;;  %v25936_v21 = vsub.f32 %v12961_v33, %v25931_v25 }
 0x756   :  { %v11614_v9 = vadd.f32 %v25883_v16, %v11527_v46 }
 0x757   :  { %v12365_v60 = vadd.f32 %v12364_v58, %v12280_v7  ;;  %v11608_v49 = vadd.f32 %v25887_v54, %v11517_v59  ;;  %v13042_v0 = vand.u32 4294901760, %v25936_v21  ;;  %v11946_v54 = vld [vmem:[#allocation7 + $0x8] sm:$0xff] }
 0x758   :  { %v23655_v22 = vpop.f32.mrf.mxu1  ;;  %v23662_v63 = vpop.f32.mrf.mxu0  ;;  %v11697_v58 = vadd.f32 %v25885_v44, %v11614_v9 }
 0x759   :  { %v12450_v62 = vadd.f32 %v23655_v22, %v12371_v34  ;;  %v11690_v7 = vadd.f32 %v25889_v38, %v11608_v49  ;;  %v13043_v44 = vsub.f32 %v25936_v21, %v13042_v0 }
 0x75a   :  { %v12443_v30 = vpop.f32.mrf.mxu1  ;;  %v12526_v56 = vpop.f32.mrf.mxu0 }
 0x75b   :  { %v12537_v19 = vadd.f32 %v23662_v63, %v12450_v62  ;;  %v12444_v5 = vadd.f32 %v12443_v30, %v12365_v60  ;;  %v11945_v60 = vld [vmem:[#allocation7] sm:$0xff]  ;;  %v11780_v63 = vadd.f32 %v25891_v6, %v11697_v58 }
 0x75c   :  { %v13466_v30 = vsel %vm72_vm0, %v11945_v60, 0 }
 0x75d   :  { %v12527_v13 = vadd.f32 %v12526_v56, %v12444_v5  ;;  %v11772_v56 = vadd.f32 %v25895_v55, %v11690_v7  ;;  %v13469_v5 = vsel %vm72_vm0, %v11946_v54, 0  ;;  %v11863_v6 = vadd.f32 %v25893_v45, %v11780_v63  ;;  %v13976_v63 = vld [vmem:[#allocation5 + $0x98] sm:$0xff] }
 0x75e   :  { %v23669_v27 = vpop.f32.mrf.mxu1  ;;  %v23676_v50 = vpop.f32.mrf.mxu0  ;;  %v25952_v33 = vand.u32 4294901760, %v13466_v30  ;;  %v25960_v55 = vand.u32 4294901760, %v13469_v5 }
 0x75f   :  { %v12624_v10 = vadd.f32 %v23669_v27, %v12537_v19  ;;  %v13044_v27 = vand.u32 4294901760, %v13043_v44 }
 0x760   :  { %v12617_v14 = vpop.f32.mrf.mxu1  ;;  %v12699_v43 = vpop.f32.mrf.mxu0 }
 0x761   :  { %v12707_v1 = vadd.f32 %v23676_v50, %v12624_v10  ;;  %v12618_v2 = vadd.f32 %v12617_v14, %v12527_v13  ;;  %v11857_v50 = vadd.f32 %v25897_v57, %v11772_v56  ;;  %v11942_v10 = vadd.f32 %v25899_v61, %v11863_v6 }
 0x762   :  { %v25967_v14 = vsub.f32 %v13466_v30, %v25952_v33 }
 0x763   :  { %v12700_v47 = vadd.f32 %v12699_v43, %v12618_v2  ;;  %v11936_v9 = vadd.f32 %v25901_v20, %v11857_v50  ;;  %v25974_v49 = vand.u32 4294901760, %v11942_v10 }
 0x764   :  { %v23683_v26 = vpop.f32.mrf.mxu1  ;;  %v23690_v41 = vpop.f32.mrf.mxu0 }
 0x765   :  { %v12790_v52 = vadd.f32 %v23683_v26, %v12707_v1  ;;  %v25972_v1 = vsub.f32 %v13469_v5, %v25960_v55  ;;  %v13588_v58 = vsub.f32 %v11942_v10, %v25974_v49 }
 0x766   :  { %v12781_v34 = vpop.f32.mrf.mxu1  ;;  %v12866_v22 = vpop.f32.mrf.mxu0 }
 0x767   :  { %v12873_v24 = vadd.f32 %v23690_v41, %v12790_v52  ;;  %v12782_v16 = vadd.f32 %v12781_v34, %v12700_v47  ;;  %v13540_v47 = vand.u32 4294901760, %v25967_v14  ;;  %v25977_v41 = vand.u32 4294901760, %v11936_v9 }
 0x768   :  { %v13550_v20 = vand.u32 4294901760, %v25972_v1 }
 0x769   :  { %v12867_v36 = vadd.f32 %v12866_v22, %v12782_v16  ;;  %v23697_v23 = vpop.f32.mrf.mxu1  ;;  %v13541_v52 = vsub.f32 %v25967_v14, %v13540_v47  ;;  %v13595_v34 = vsub.f32 %v11936_v9, %v25977_v41  ;;  %v13589_v16 = vand.u32 4294901760, %v13588_v58 }
 0x76a   :  { %v12952_v62 = vadd.f32 %v23697_v23, %v12873_v24  ;;  %v13551_v7 = vsub.f32 %v25972_v1, %v13550_v20  ;;  %v13975_v23 = vld [vmem:[#allocation5 + $0x90] sm:$0xff] }
 0x76b   :  { %v12945_v12 = vpop.f32.mrf.mxu1  ;;  %v13542_v24 = vand.u32 4294901760, %v13541_v52  ;;  %v13596_v22 = vand.u32 4294901760, %v13595_v34 }
 0x76c   :  { %v25948_v38 = vand.u32 4294901760, %v12952_v62  ;;  %v12946_v19 = vadd.f32 %v12945_v12, %v12867_v36  ;;  %v13552_v60 = vand.u32 4294901760, %v13551_v7  ;;  %v13590_v36 = vsub.f32 %v13588_v58, %v13589_v16  ;;  %v13974_v12 = vld [vmem:[#allocation5 + $0x28] sm:$0xff] }
 0x76d   :  { %v26040_v6 = vand.u32 4294901760, %v13974_v12 }
 0x76e   :  { %v13080_v46 = vsub.f32 %v12952_v62, %v25948_v38  ;;  %v25955_v13 = vand.u32 4294901760, %v12946_v19  ;;  %23698 = vmatprep.subr.mxu0 %v25948_v38 }
 0x76f   :  { %23699 = vmatpush3.msra.mxu0 %v25948_v38 }
 0x770   :  { %v13087_v59 = vsub.f32 %v12946_v19, %v25955_v13  ;;  %23700 = vmatprep.subr.mxu0 %v25955_v13  ;;  %v13081_v45 = vand.u32 4294901760, %v13080_v46  ;;  %v13973_v19 = vld [vmem:[#allocation5 + $0x20] sm:$0xff] }
 0x771   :  { %23701 = vmatpush3.msra.mxu0 %v25955_v13 }
 0x772   :  { %23712 = vmatprep.subr.mxu0 %v13080_v46  ;;  %23703 = vmatmul.mubr.f32.vlgmr.msra.gmra.mxu0 %v13044_v27  ;;  %v13082_v43 = vsub.f32 %v13080_v46, %v13081_v45  ;;  %v13088_v57 = vand.u32 4294901760, %v13087_v59 }
 0x773   :  { %23713 = vmatpush3.msra.mxu0 %v13080_v46  ;;  %23716 = vmatprep.mubr.f32.mxu0 %v25815_v17  ;;  %v13597_v17 = vsub.f32 %v13595_v34, %v13596_v22  ;;  %v26044_v46 = vand.u32 4294901760, %v13973_v19 }
 0x774   :  { %23714 = vmatprep.subr.mxu0 %v13087_v59  ;;  %v13083_v2 = vand.u32 4294901760, %v13082_v43  ;;  %v13089_v61 = vsub.f32 %v13087_v59, %v13088_v57 }
 0x775   :  { %23715 = vmatpush3.msra.mxu0 %v13087_v59  ;;  %v13598_v54 = vand.u32 4294901760, %v13597_v17 }
 0x776   :  { %23705 = vmatprep.subr.mxu1 %v13083_v2  ;;  %23726 = vmatprep.subr.mxu0 %v13081_v45  ;;  %v13090_v26 = vand.u32 4294901760, %v13089_v61 }
 0x777   :  { %23706 = vmatpush3.msra.mxu1 %v13083_v2  ;;  %23717 = vmatmul.mubr.f32.vlgmr.msra.gmra.mxu0 %v25936_v21  ;;  %v13591_v21 = vand.u32 4294901760, %v13590_v36 }
 0x778   :  { %23727 = vmatpush3.msra.mxu0 %v13081_v45  ;;  %23707 = vmatprep.subr.mxu1 %v13090_v26 }
 0x779   :  { %23728 = vmatprep.subr.mxu0 %v13088_v57  ;;  %23708 = vmatpush3.msra.mxu1 %v13090_v26 }
 0x77a   :  { %23729 = vmatpush3.msra.mxu0 %v13088_v57  ;;  %23710 = vmatmul.mubr.f32.vlgmr.msra.gmra.mxu1 %v25931_v25 }
 0x77b   :  { %23719 = vmatprep.subr.mxu1 %v25948_v38  ;;  %23730 = vmatprep.mubr.f32.mxu0 %v25812_v42 }
 0x77c   :  { %23740 = vmatprep.subr.mxu0 %v25974_v49  ;;  %23720 = vmatpush3.msra.mxu1 %v25948_v38 }
 0x77d   :  { %23731 = vmatmul.mubr.f32.vlgmr.msra.gmra.mxu0 %v25931_v25  ;;  %23721 = vmatprep.subr.mxu1 %v25955_v13 }
 0x77e   :  { %23741 = vmatpush3.msra.mxu0 %v25974_v49  ;;  %23722 = vmatpush3.msra.mxu1 %v25955_v13 }
 0x77f   :  { %23742 = vmatprep.subr.mxu0 %v25977_v41  ;;  %23723 = vmatprep.mubr.f32.mxu1 %v13032_v35  ;;  %v26007_v35 = vand.u32 4294901760, %v13976_v63 }
 0x780   :  { %23743 = vmatpush3.msra.mxu0 %v25977_v41  ;;  %23724 = vmatmul.mubr.f32.vlgmr.msra.gmra.mxu1 %v13042_v0  ;;  %v26011_v0 = vand.u32 4294901760, %v13975_v23 }
 0x781   :  { %23733 = vmatprep.subr.mxu1 %v25948_v38  ;;  %23744 = vmatprep.mubr.f32.mxu0 %v13542_v24  ;;  %v14094_v62 = vsub.f32 %v13976_v63, %v26007_v35 }
 0x782   :  { %23754 = vmatprep.subr.mxu0 %v13588_v58  ;;  %23734 = vmatpush3.msra.mxu1 %v25948_v38  ;;  %v14101_v44 = vsub.f32 %v13975_v23, %v26011_v0 }
 0x783   :  { %23745 = vmatmul.mubr.f32.vlgmr.msra.gmra.mxu0 %v13552_v60  ;;  %23735 = vmatprep.subr.mxu1 %v25955_v13 }
 0x784   :  { %23755 = vmatpush3.msra.mxu0 %v13588_v58  ;;  %23736 = vmatpush3.msra.mxu1 %v25955_v13  ;;  %v14603_v13 = vsub.f32 %v13973_v19, %v26044_v46 }
 0x785   :  { %23756 = vmatprep.subr.mxu0 %v13595_v34  ;;  %23737 = vmatprep.mubr.f32.mxu1 %v25812_v42  ;;  %v14095_v42 = vand.u32 4294901760, %v14094_v62 }
 0x786   :  { %23757 = vmatpush3.msra.mxu0 %v13595_v34  ;;  %23738 = vmatmul.mubr.f32.vlgmr.msra.gmra.mxu1 %v25931_v25  ;;  %v14102_v25 = vand.u32 4294901760, %v14101_v44  ;;  %v14604_v50 = vand.u32 4294901760, %v14603_v13 }
 0x787   :  { %23747 = vmatprep.subr.mxu1 %v13591_v21  ;;  %23758 = vmatprep.mubr.f32.mxu0 %v25967_v14  ;;  %v14096_v30 = vsub.f32 %v14094_v62, %v14095_v42  ;;  %v14981_v14 = vld [vmem:[#allocation7 + $0x20] sm:$0xff] }
 0x788   :  { %23768 = vmatprep.subr.mxu0 %v13589_v16  ;;  %23748 = vmatpush3.msra.mxu1 %v13591_v21  ;;  %v14103_v56 = vsub.f32 %v14101_v44, %v14102_v25  ;;  %v14605_v59 = vsub.f32 %v14603_v13, %v14604_v50  ;;  %v14984_v43 = vsel %vm72_vm0, %v14981_v14, 0 }
 0x789   :  { %23759 = vmatmul.mubr.f32.vlgmr.msra.gmra.mxu0 %v25972_v1  ;;  %23749 = vmatprep.subr.mxu1 %v13598_v54  ;;  %v14097_v38 = vand.u32 4294901760, %v14096_v30  ;;  %v26091_v57 = vand.u32 4294901760, %v14984_v43 }
 0x78a   :  { %23769 = vmatpush3.msra.mxu0 %v13589_v16  ;;  %23750 = vmatpush3.msra.mxu1 %v13598_v54  ;;  %v14104_v5 = vand.u32 4294901760, %v14103_v56  ;;  %v14606_v10 = vand.u32 4294901760, %v14605_v59 }
 0x78b   :  { %23770 = vmatprep.subr.mxu0 %v13596_v22  ;;  %23751 = vmatprep.mubr.f32.mxu1 %v25952_v33  ;;  %v26094_v9 = vsub.f32 %v14984_v43, %v26091_v57 }
 0x78c   :  { %23771 = vmatpush3.msra.mxu0 %v13596_v22  ;;  %23752 = vmatmul.mubr.f32.vlgmr.msra.gmra.mxu1 %v25960_v55 }
 0x78d   :  { %23761 = vmatprep.subr.mxu1 %v25974_v49  ;;  %23765 = vmatprep.mubr.f32.mxu1 %v13540_v47  ;;  %v15058_v1 = vand.u32 4294901760, %v26094_v9 }
 0x78e   :  { %23762 = vmatpush3.msra.mxu1 %v25974_v49  ;;  %23772 = vmatprep.mubr.f32.mxu0 %v25952_v33 }
 0x78f   :  { %23763 = vmatprep.subr.mxu1 %v25977_v41  ;;  %23773 = vmatmul.mubr.f32.vlgmr.msra.gmra.mxu0 %v25960_v55  ;;  %v15059_v2 = vsub.f32 %v26094_v9, %v15058_v1 }
 0x790   :  { %23764 = vmatpush3.msra.mxu1 %v25977_v41  ;;  %23782 = vmatprep.subr.mxu0 %v26007_v35 }
 0x791   :  { %23766 = vmatmul.mubr.f32.vlgmr.msra.gmra.mxu1 %v13550_v20  ;;  %23775 = vmatprep.subr.mxu1 %v25974_v49  ;;  %v15060_v61 = vand.u32 4294901760, %v15059_v2 }
 0x792   :  { %23776 = vmatpush3.msra.mxu1 %v25974_v49  ;;  %23783 = vmatpush3.msra.mxu0 %v26007_v35 }
 0x793   :  { %23777 = vmatprep.subr.mxu1 %v25977_v41  ;;  %23784 = vmatprep.subr.mxu0 %v26011_v0 }
 0x794   :  { %23778 = vmatpush3.msra.mxu1 %v25977_v41  ;;  %23779 = vmatprep.mubr.f32.mxu1 %v25952_v33  ;;  %v14596_v33 = vsub.f32 %v13974_v12, %v26040_v6 }
 0x795   :  { %23785 = vmatpush3.msra.mxu0 %v26011_v0  ;;  %23786 = vmatprep.mubr.f32.mxu0 %v25659_v31 }
 0x796   :  { %23780 = vmatmul.mubr.f32.vlgmr.msra.gmra.mxu1 %v25960_v55  ;;  %23787 = vmatmul.mubr.f32.vlgmr.msra.gmra.mxu0 %v25665_v29  ;;  %v14597_v27 = vand.u32 4294901760, %v14596_v33 }
 0x797   :  { %23789 = vmatprep.subr.mxu1 %v14097_v38  ;;  %23796 = vmatprep.subr.mxu0 %v14094_v62 }
 0x798   :  { %23790 = vmatpush3.msra.mxu1 %v14097_v38  ;;  %23797 = vmatpush3.msra.mxu0 %v14094_v62  ;;  %v14598_v55 = vsub.f32 %v14596_v33, %v14597_v27 }
 0x799   :  { %23791 = vmatprep.subr.mxu1 %v14104_v5  ;;  %23798 = vmatprep.subr.mxu0 %v14101_v44 }
 0x79a   :  { %23792 = vmatpush3.msra.mxu1 %v14104_v5  ;;  %23793 = vmatprep.mubr.f32.mxu1 %v25601_v8  ;;  %v14599_v45 = vand.u32 4294901760, %v14598_v55 }
 0x79b   :  { %23799 = vmatpush3.msra.mxu0 %v14101_v44  ;;  %23800 = vmatprep.mubr.f32.mxu0 %v25618_v53 }
 0x79c   :  { %23794 = vmatmul.mubr.f32.vlgmr.msra.gmra.mxu1 %v25607_v39  ;;  %23801 = vmatmul.mubr.f32.vlgmr.msra.gmra.mxu0 %v25623_v37 }
 0x79d   :  { %23803 = vmatprep.subr.mxu1 %v26007_v35  ;;  %23810 = vmatprep.subr.mxu0 %v14095_v42 }
 0x79e   :  { %23804 = vmatpush3.msra.mxu1 %v26007_v35  ;;  %23811 = vmatpush3.msra.mxu0 %v14095_v42 }
 0x79f   :  { %23805 = vmatprep.subr.mxu1 %v26011_v0  ;;  %23812 = vmatprep.subr.mxu0 %v14102_v25 }
 0x7a0   :  { %23806 = vmatpush3.msra.mxu1 %v26011_v0  ;;  %23807 = vmatprep.mubr.f32.mxu1 %v25630_v3 }
 0x7a1   :  { %23813 = vmatpush3.msra.mxu0 %v14102_v25  ;;  %23814 = vmatprep.mubr.f32.mxu0 %v25601_v8 }
 0x7a2   :  { %23808 = vmatmul.mubr.f32.vlgmr.msra.gmra.mxu1 %v25634_v11  ;;  %23815 = vmatmul.mubr.f32.vlgmr.msra.gmra.mxu0 %v25607_v39 }
 0x7a3   :  { %23817 = vmatprep.subr.mxu1 %v26007_v35  ;;  %23824 = vmatprep.subr.mxu0 %v26040_v6 }
 0x7a4   :  { %23818 = vmatpush3.msra.mxu1 %v26007_v35  ;;  %23825 = vmatpush3.msra.mxu0 %v26040_v6 }
 0x7a5   :  { %23819 = vmatprep.subr.mxu1 %v26011_v0  ;;  %23826 = vmatprep.subr.mxu0 %v26044_v46 }
 0x7a6   :  { %23820 = vmatpush3.msra.mxu1 %v26011_v0  ;;  %23821 = vmatprep.mubr.f32.mxu1 %v25601_v8 }
 0x7a7   :  { %23827 = vmatpush3.msra.mxu0 %v26044_v46  ;;  %23828 = vmatprep.mubr.f32.mxu0 %v25719_v28 }
 0x7a8   :  { %23822 = vmatmul.mubr.f32.vlgmr.msra.gmra.mxu1 %v25607_v39  ;;  %23829 = vmatmul.mubr.f32.vlgmr.msra.gmra.mxu0 %v25723_v40 }
 0x7a9   :  { %23831 = vmatprep.subr.mxu1 %v14599_v45  ;;  %23838 = vmatprep.subr.mxu0 %v14596_v33 }
 0x7aa   :  { %23832 = vmatpush3.msra.mxu1 %v14599_v45  ;;  %23839 = vmatpush3.msra.mxu0 %v14596_v33 }
 0x7ab   :  { %23833 = vmatprep.subr.mxu1 %v14606_v10  ;;  %23840 = vmatprep.subr.mxu0 %v14603_v13 }
 0x7ac   :  { %23834 = vmatpush3.msra.mxu1 %v14606_v10  ;;  %23835 = vmatprep.mubr.f32.mxu1 %v25669_v32 }
 0x7ad   :  { %23841 = vmatpush3.msra.mxu0 %v14603_v13  ;;  %23842 = vmatprep.mubr.f32.mxu0 %v25684_v4 }
 0x7ae   :  { %23836 = vmatmul.mubr.f32.vlgmr.msra.gmra.mxu1 %v25673_v15  ;;  %23843 = vmatmul.mubr.f32.vlgmr.msra.gmra.mxu0 %v25687_v18 }
 0x7af   :  { %23845 = vmatprep.subr.mxu1 %v26040_v6  ;;  %23852 = vmatprep.subr.mxu0 %v14597_v27 }
 0x7b0   :  { %23846 = vmatpush3.msra.mxu1 %v26040_v6  ;;  %23853 = vmatpush3.msra.mxu0 %v14597_v27 }
 0x7b1   :  { %23847 = vmatprep.subr.mxu1 %v26044_v46  ;;  %23854 = vmatprep.subr.mxu0 %v14604_v50 }
 0x7b2   :  { %23848 = vmatpush3.msra.mxu1 %v26044_v46  ;;  %23849 = vmatprep.mubr.f32.mxu1 %v25693_v51 }
 0x7b3   :  { %23855 = vmatpush3.msra.mxu0 %v14604_v50  ;;  %23856 = vmatprep.mubr.f32.mxu0 %v25669_v32 }
 0x7b4   :  { %23850 = vmatmul.mubr.f32.vlgmr.msra.gmra.mxu1 %v25699_v48  ;;  %23857 = vmatmul.mubr.f32.vlgmr.msra.gmra.mxu0 %v25673_v15 }
 0x7b5   :  { %23859 = vmatprep.subr.mxu1 %v26040_v6  ;;  %23863 = vmatprep.mubr.f32.mxu1 %v25669_v32 }
 0x7b6   :  { %23860 = vmatpush3.msra.mxu1 %v26040_v6  ;;  %23870 = vmatprep.mubr.f32.mxu0 %v15060_v61 }
 0x7b7   :  { %23861 = vmatprep.subr.mxu1 %v26044_v46 }
 0x7b8   :  { %23862 = vmatpush3.msra.mxu1 %v26044_v46 }
 0x7b9   :  { %23864 = vmatmul.mubr.f32.vlgmr.msra.gmra.mxu1 %v25673_v15 }
 0x7ba   :  { %23877 = vmatprep.mubr.f32.mxu1 %v26091_v57 }
 0x832   :  { %v23704_v49 = vpop.f32.mrf.mxu0 }
 0x834   :  { %v13036_v47 = vpop.f32.mrf.mxu0 }
 0x837   :  { %v23718_v26 = vpop.f32.mrf.mxu0 }
 0x839   :  { %v13209_v41 = vpop.f32.mrf.mxu0 }
 0x83a   :  { %v23711_v20 = vpop.f32.mrf.mxu1 }
 0x83b   :  { %v13134_v58 = vadd.f32 %v23711_v20, %v23704_v49 }
 0x83c   :  { %v13127_v52 = vpop.f32.mrf.mxu1 }
 0x83d   :  { %v13217_v34 = vadd.f32 %v23718_v26, %v13134_v58  ;;  %v13128_v7 = vadd.f32 %v13127_v52, %v13036_v47  ;;  %v23732_v24 = vpop.f32.mrf.mxu0 }
 0x83f   :  { %v13210_v16 = vadd.f32 %v13209_v41, %v13128_v7  ;;  %v13376_v60 = vpop.f32.mrf.mxu0 }
 0x840   :  { %v23725_v22 = vpop.f32.mrf.mxu1 }
 0x841   :  { %v13300_v63 = vadd.f32 %v23725_v22, %v13217_v34 }
 0x842   :  { %v13291_v36 = vpop.f32.mrf.mxu1 }
 0x843   :  { %v13383_v23 = vadd.f32 %v23732_v24, %v13300_v63  ;;  %v13292_v17 = vadd.f32 %v13291_v36, %v13210_v16  ;;  %v23746_v35 = vpop.f32.mrf.mxu0 }
 0x845   :  { %v13377_v21 = vadd.f32 %v13376_v60, %v13292_v17  ;;  %v13544_v0 = vpop.f32.mrf.mxu0 }
 0x846   :  { %v23739_v54 = vpop.f32.mrf.mxu1 }
 0x847   :  { %v13462_v62 = vadd.f32 %v23739_v54, %v13383_v23 }
 0x848   :  { %v13455_v44 = vpop.f32.mrf.mxu1 }
 0x849   :  { %v13555_v42 = vadd.f32 %v23746_v35, %v13462_v62  ;;  %v13456_v25 = vadd.f32 %v13455_v44, %v13377_v21  ;;  %v23760_v30 = vpop.f32.mrf.mxu0  ;;  %v14982_v62 = vld [vmem:[#allocation7 + $0x28] sm:$0xff] }
 0x84b   :  { %v13545_v56 = vadd.f32 %v13544_v0, %v13456_v25  ;;  %v13717_v12 = vpop.f32.mrf.mxu0 }
 0x84c   :  { %v23753_v38 = vpop.f32.mrf.mxu1 }
 0x84d   :  { %v13642_v19 = vadd.f32 %v23753_v38, %v13555_v42 }
 0x84e   :  { %v13635_v5 = vpop.f32.mrf.mxu1 }
 0x84f   :  { %v13725_v6 = vadd.f32 %v23760_v30, %v13642_v19  ;;  %v13636_v46 = vadd.f32 %v13635_v5, %v13545_v56  ;;  %v23774_v33 = vpop.f32.mrf.mxu0 }
 0x851   :  { %v13718_v13 = vadd.f32 %v13717_v12, %v13636_v46  ;;  %v23767_v27 = vpop.f32.mrf.mxu1  ;;  %v13884_v55 = vpop.f32.mrf.mxu0  ;;  %v14987_v12 = vsel %vm72_vm0, %v14982_v62, 0 }
 0x852   :  { %v13808_v50 = vadd.f32 %v23767_v27, %v13725_v6  ;;  %v26106_v6 = vand.u32 4294901760, %v14987_v12 }
 0x853   :  { %v13799_v59 = vpop.f32.mrf.mxu1 }
 0x854   :  { %v13891_v45 = vadd.f32 %v23774_v33, %v13808_v50  ;;  %v13800_v10 = vadd.f32 %v13799_v59, %v13718_v13 }
 0x856   :  { %v13885_v14 = vadd.f32 %v13884_v55, %v13800_v10  ;;  %v23781_v43 = vpop.f32.mrf.mxu1  ;;  %v23788_v2 = vpop.f32.mrf.mxu0  ;;  %v26109_v55 = vsub.f32 %v14987_v12, %v26106_v6 }
 0x857   :  { %v26101_v61 = vadd.f32 %v23781_v43, %v13891_v45 }
 0x858   :  { %v13963_v49 = vpop.f32.mrf.mxu1  ;;  %v14050_v47 = vpop.f32.mrf.mxu0 }
 0x859   :  { %v26103_v26 = vadd.f32 %v13963_v49, %v13885_v14 }
 0x85c   :  { %v23795_v41 = vpop.f32.mrf.mxu1  ;;  %v23802_v20 = vpop.f32.mrf.mxu0 }
 0x85d   :  { %v14148_v58 = vadd.f32 %v23795_v41, %v23788_v2  ;;  %v15068_v2 = vand.u32 4294901760, %v26109_v55 }
 0x85e   :  { %v14141_v52 = vpop.f32.mrf.mxu1  ;;  %v14223_v34 = vpop.f32.mrf.mxu0 }
 0x85f   :  { %v14231_v7 = vadd.f32 %v23802_v20, %v14148_v58  ;;  %v14142_v24 = vadd.f32 %v14141_v52, %v14050_v47 }
 0x861   :  { %v14224_v16 = vadd.f32 %v14223_v34, %v14142_v24  ;;  %v15069_v34 = vsub.f32 %v26109_v55, %v15068_v2 }
 0x862   :  { %v23809_v60 = vpop.f32.mrf.mxu1  ;;  %v23816_v22 = vpop.f32.mrf.mxu0 }
 0x863   :  { %v14314_v63 = vadd.f32 %v23809_v60, %v14231_v7 }
 0x864   :  { %v14305_v36 = vpop.f32.mrf.mxu1  ;;  %v14390_v23 = vpop.f32.mrf.mxu0 }
 0x865   :  { %v14397_v17 = vadd.f32 %v23816_v22, %v14314_v63  ;;  %v14306_v35 = vadd.f32 %v14305_v36, %v14224_v16  ;;  %v15070_v63 = vand.u32 4294901760, %v15069_v34  ;;  %v15496_v36 = vld [vmem:[#allocation5 + $0xa8] sm:$0xff] }
 0x867   :  { %v14391_v21 = vadd.f32 %v14390_v23, %v14306_v35  ;;  %v15495_v35 = vld [vmem:[#allocation5 + $0xa0] sm:$0xff] }
 0x868   :  { %v23823_v0 = vpop.f32.mrf.mxu1  ;;  %v23830_v54 = vpop.f32.mrf.mxu0  ;;  %v26116_v62 = vand.u32 4294901760, %v15495_v35 }
 0x869   :  { %v14476_v44 = vadd.f32 %v23823_v0, %v14397_v17 }
 0x86a   :  { %v14469_v42 = vpop.f32.mrf.mxu1  ;;  %v14552_v25 = vpop.f32.mrf.mxu0 }
 0x86b   :  { %v14563_v30 = vadd.f32 %v23830_v54, %v14476_v44  ;;  %v14470_v56 = vadd.f32 %v14469_v42, %v14391_v21  ;;  %v26113_v21 = vand.u32 4294901760, %v15496_v36 }
 0x86d   :  { %v14553_v38 = vadd.f32 %v14552_v25, %v14470_v56  ;;  %v15614_v25 = vsub.f32 %v15496_v36, %v26113_v21  ;;  %v15621_v56 = vsub.f32 %v15495_v35, %v26116_v62 }
 0x86e   :  { %v23837_v19 = vpop.f32.mrf.mxu1  ;;  %v23844_v5 = vpop.f32.mrf.mxu0 }
 0x86f   :  { %v14650_v46 = vadd.f32 %v23837_v19, %v14563_v30  ;;  %v15615_v12 = vand.u32 4294901760, %v15614_v25 }
 0x870   :  { %v14643_v33 = vpop.f32.mrf.mxu1  ;;  %v14725_v13 = vpop.f32.mrf.mxu0 }
 0x871   :  { %v14733_v27 = vadd.f32 %v23844_v5, %v14650_v46  ;;  %v14644_v50 = vadd.f32 %v14643_v33, %v14553_v38  ;;  %v15622_v38 = vand.u32 4294901760, %v15621_v56  ;;  %v15616_v19 = vsub.f32 %v15614_v25, %v15615_v12  ;;  %v15494_v46 = vld [vmem:[#allocation5 + $0x38] sm:$0xff] }
 0x873   :  { %v14726_v59 = vadd.f32 %v14725_v13, %v14644_v50  ;;  %v15623_v5 = vsub.f32 %v15621_v56, %v15622_v38  ;;  %v26132_v13 = vand.u32 4294901760, %v15494_v46 }
 0x874   :  { %v23851_v45 = vpop.f32.mrf.mxu1  ;;  %v23858_v10 = vpop.f32.mrf.mxu0 }
 0x875   :  { %v14816_v14 = vadd.f32 %v23851_v45, %v14733_v27  ;;  %v15624_v33 = vand.u32 4294901760, %v15623_v5 }
 0x876   :  { %v14807_v43 = vpop.f32.mrf.mxu1  ;;  %v14892_v41 = vpop.f32.mrf.mxu0 }
 0x877   :  { %v14899_v49 = vadd.f32 %v23858_v10, %v14816_v14  ;;  %v14808_v47 = vadd.f32 %v14807_v43, %v14726_v59  ;;  %v16501_v43 = vld [vmem:[#allocation7 + $0x30] sm:$0xff] }
 0x879   :  { %v14893_v20 = vadd.f32 %v14892_v41, %v14808_v47  ;;  %v23865_v58 = vpop.f32.mrf.mxu1 }
 0x87a   :  { %v14978_v52 = vadd.f32 %v23865_v58, %v14899_v49 }
 0x87b   :  { %v14971_v7 = vpop.f32.mrf.mxu1 }
 0x87c   :  { %v15018_v24 = vand.u32 4294901760, %v14978_v52  ;;  %v14972_v16 = vadd.f32 %v14971_v7, %v14893_v20 }
 0x87e   :  { %v15106_v60 = vsub.f32 %v14978_v52, %v15018_v24  ;;  %v15021_v22 = vand.u32 4294901760, %v14972_v16  ;;  %23866 = vmatprep.subr.mxu0 %v15018_v24 }
 0x87f   :  { %23867 = vmatpush3.msra.mxu0 %v15018_v24 }
 0x880   :  { %v15113_v23 = vsub.f32 %v14972_v16, %v15021_v22  ;;  %23868 = vmatprep.subr.mxu0 %v15021_v22  ;;  %v15107_v17 = vand.u32 4294901760, %v15106_v60 }
 0x881   :  { %23869 = vmatpush3.msra.mxu0 %v15021_v22 }
 0x882   :  { %23880 = vmatprep.subr.mxu0 %v15106_v60  ;;  %23871 = vmatmul.mubr.f32.vlgmr.msra.gmra.mxu0 %v15070_v63  ;;  %v15108_v0 = vsub.f32 %v15106_v60, %v15107_v17  ;;  %v15114_v54 = vand.u32 4294901760, %v15113_v23 }
 0x883   :  { %23881 = vmatpush3.msra.mxu0 %v15106_v60  ;;  %23884 = vmatprep.mubr.f32.mxu0 %v26094_v9  ;;  %v15617_v9 = vand.u32 4294901760, %v15616_v19 }
 0x884   :  { %23882 = vmatprep.subr.mxu0 %v15113_v23  ;;  %v15109_v44 = vand.u32 4294901760, %v15108_v0  ;;  %v15115_v42 = vsub.f32 %v15113_v23, %v15114_v54 }
 0x885   :  { %23883 = vmatpush3.msra.mxu0 %v15113_v23 }
 0x886   :  { %23873 = vmatprep.subr.mxu1 %v15109_v44  ;;  %23894 = vmatprep.subr.mxu0 %v15107_v17  ;;  %v15116_v30 = vand.u32 4294901760, %v15115_v42 }
 0x887   :  { %23874 = vmatpush3.msra.mxu1 %v15109_v44  ;;  %23885 = vmatmul.mubr.f32.vlgmr.msra.gmra.mxu0 %v26109_v55 }
 0x888   :  { %23895 = vmatpush3.msra.mxu0 %v15107_v17  ;;  %23875 = vmatprep.subr.mxu1 %v15116_v30 }
 0x889   :  { %23896 = vmatprep.subr.mxu0 %v15114_v54  ;;  %23876 = vmatpush3.msra.mxu1 %v15116_v30 }
 0x88a   :  { %23897 = vmatpush3.msra.mxu0 %v15114_v54  ;;  %23878 = vmatmul.mubr.f32.vlgmr.msra.gmra.mxu1 %v26106_v6 }
 0x88b   :  { %23887 = vmatprep.subr.mxu1 %v15018_v24  ;;  %23891 = vmatprep.mubr.f32.mxu1 %v15058_v1  ;;  %v15493_v1 = vld [vmem:[#allocation5 + $0x30] sm:$0xff] }
 0x88c   :  { %23888 = vmatpush3.msra.mxu1 %v15018_v24  ;;  %23898 = vmatprep.mubr.f32.mxu0 %v26091_v57  ;;  %v26136_v27 = vand.u32 4294901760, %v15493_v1 }
 0x88d   :  { %23889 = vmatprep.subr.mxu1 %v15021_v22  ;;  %23899 = vmatmul.mubr.f32.vlgmr.msra.gmra.mxu0 %v26106_v6 }
 0x88e   :  { %23890 = vmatpush3.msra.mxu1 %v15021_v22  ;;  %23908 = vmatprep.subr.mxu0 %v26113_v21 }
 0x88f   :  { %23892 = vmatmul.mubr.f32.vlgmr.msra.gmra.mxu1 %v15068_v2  ;;  %23901 = vmatprep.subr.mxu1 %v15018_v24  ;;  %v16504_v2 = vsel %vm72_vm0, %v16501_v43, 0 }
 0x890   :  { %23902 = vmatpush3.msra.mxu1 %v15018_v24  ;;  %23909 = vmatpush3.msra.mxu0 %v26113_v21  ;;  %v26183_v49 = vand.u32 4294901760, %v16504_v2 }
 0x891   :  { %23903 = vmatprep.subr.mxu1 %v15021_v22  ;;  %23910 = vmatprep.subr.mxu0 %v26116_v62 }
 0x892   :  { %23904 = vmatpush3.msra.mxu1 %v15021_v22  ;;  %23905 = vmatprep.mubr.f32.mxu1 %v26091_v57  ;;  %v16116_v57 = vsub.f32 %v15494_v46, %v26132_v13  ;;  %v26186_v47 = vsub.f32 %v16504_v2, %v26183_v49 }
 0x893   :  { %23911 = vmatpush3.msra.mxu0 %v26116_v62  ;;  %23912 = vmatprep.mubr.f32.mxu0 %v25659_v31 }
 0x894   :  { %23906 = vmatmul.mubr.f32.vlgmr.msra.gmra.mxu1 %v26106_v6  ;;  %23913 = vmatmul.mubr.f32.vlgmr.msra.gmra.mxu0 %v25665_v29  ;;  %v16123_v6 = vsub.f32 %v15493_v1, %v26136_v27  ;;  %v16117_v50 = vand.u32 4294901760, %v16116_v57  ;;  %v16578_v41 = vand.u32 4294901760, %v26186_v47 }
 0x895   :  { %23915 = vmatprep.subr.mxu1 %v15617_v9  ;;  %23922 = vmatprep.subr.mxu0 %v15614_v25 }
 0x896   :  { %23916 = vmatpush3.msra.mxu1 %v15617_v9  ;;  %23923 = vmatpush3.msra.mxu0 %v15614_v25  ;;  %v16124_v55 = vand.u32 4294901760, %v16123_v6  ;;  %v16118_v59 = vsub.f32 %v16116_v57, %v16117_v50  ;;  %v16579_v20 = vsub.f32 %v26186_v47, %v16578_v41 }
 0x897   :  { %23917 = vmatprep.subr.mxu1 %v15624_v33  ;;  %23924 = vmatprep.subr.mxu0 %v15621_v56 }
 0x898   :  { %23918 = vmatpush3.msra.mxu1 %v15624_v33  ;;  %23919 = vmatprep.mubr.f32.mxu1 %v25601_v8  ;;  %v16125_v45 = vsub.f32 %v16123_v6, %v16124_v55  ;;  %v16119_v10 = vand.u32 4294901760, %v16118_v59  ;;  %v16580_v58 = vand.u32 4294901760, %v16579_v20 }
 0x899   :  { %23925 = vmatpush3.msra.mxu0 %v15621_v56  ;;  %23926 = vmatprep.mubr.f32.mxu0 %v25618_v53 }
 0x89a   :  { %23920 = vmatmul.mubr.f32.vlgmr.msra.gmra.mxu1 %v25607_v39  ;;  %23927 = vmatmul.mubr.f32.vlgmr.msra.gmra.mxu0 %v25623_v37  ;;  %v16126_v14 = vand.u32 4294901760, %v16125_v45 }
 0x89b   :  { %23929 = vmatprep.subr.mxu1 %v26113_v21  ;;  %23936 = vmatprep.subr.mxu0 %v15615_v12 }
 0x89c   :  { %23930 = vmatpush3.msra.mxu1 %v26113_v21  ;;  %23937 = vmatpush3.msra.mxu0 %v15615_v12 }
 0x89d   :  { %23931 = vmatprep.subr.mxu1 %v26116_v62  ;;  %23938 = vmatprep.subr.mxu0 %v15622_v38 }
 0x89e   :  { %23932 = vmatpush3.msra.mxu1 %v26116_v62  ;;  %23933 = vmatprep.mubr.f32.mxu1 %v25630_v3 }
 0x89f   :  { %23939 = vmatpush3.msra.mxu0 %v15622_v38  ;;  %23940 = vmatprep.mubr.f32.mxu0 %v25601_v8 }
 0x8a0   :  { %23934 = vmatmul.mubr.f32.vlgmr.msra.gmra.mxu1 %v25634_v11  ;;  %23941 = vmatmul.mubr.f32.vlgmr.msra.gmra.mxu0 %v25607_v39 }
 0x8a1   :  { %23943 = vmatprep.subr.mxu1 %v26113_v21  ;;  %23950 = vmatprep.subr.mxu0 %v26132_v13 }
 0x8a2   :  { %23944 = vmatpush3.msra.mxu1 %v26113_v21  ;;  %23951 = vmatpush3.msra.mxu0 %v26132_v13 }
 0x8a3   :  { %23945 = vmatprep.subr.mxu1 %v26116_v62  ;;  %23952 = vmatprep.subr.mxu0 %v26136_v27 }
 0x8a4   :  { %23946 = vmatpush3.msra.mxu1 %v26116_v62  ;;  %23947 = vmatprep.mubr.f32.mxu1 %v25601_v8 }
 0x8a5   :  { %23953 = vmatpush3.msra.mxu0 %v26136_v27  ;;  %23954 = vmatprep.mubr.f32.mxu0 %v25719_v28 }
 0x8a6   :  { %23948 = vmatmul.mubr.f32.vlgmr.msra.gmra.mxu1 %v25607_v39  ;;  %23955 = vmatmul.mubr.f32.vlgmr.msra.gmra.mxu0 %v25723_v40 }
 0x8a7   :  { %23957 = vmatprep.subr.mxu1 %v16119_v10  ;;  %23964 = vmatprep.subr.mxu0 %v16116_v57 }
 0x8a8   :  { %23958 = vmatpush3.msra.mxu1 %v16119_v10  ;;  %23965 = vmatpush3.msra.mxu0 %v16116_v57 }
 0x8a9   :  { %23959 = vmatprep.subr.mxu1 %v16126_v14  ;;  %23966 = vmatprep.subr.mxu0 %v16123_v6 }
 0x8aa   :  { %23960 = vmatpush3.msra.mxu1 %v16126_v14  ;;  %23961 = vmatprep.mubr.f32.mxu1 %v25669_v32 }
 0x8ab   :  { %23967 = vmatpush3.msra.mxu0 %v16123_v6  ;;  %23968 = vmatprep.mubr.f32.mxu0 %v25684_v4 }
 0x8ac   :  { %23962 = vmatmul.mubr.f32.vlgmr.msra.gmra.mxu1 %v25673_v15  ;;  %23969 = vmatmul.mubr.f32.vlgmr.msra.gmra.mxu0 %v25687_v18 }
 0x8ad   :  { %23971 = vmatprep.subr.mxu1 %v26132_v13  ;;  %23978 = vmatprep.subr.mxu0 %v16117_v50 }
 0x8ae   :  { %23972 = vmatpush3.msra.mxu1 %v26132_v13  ;;  %23979 = vmatpush3.msra.mxu0 %v16117_v50 }
 0x8af   :  { %23973 = vmatprep.subr.mxu1 %v26136_v27  ;;  %23980 = vmatprep.subr.mxu0 %v16124_v55 }
 0x8b0   :  { %23974 = vmatpush3.msra.mxu1 %v26136_v27  ;;  %23975 = vmatprep.mubr.f32.mxu1 %v25693_v51 }
 0x8b1   :  { %23981 = vmatpush3.msra.mxu0 %v16124_v55  ;;  %23982 = vmatprep.mubr.f32.mxu0 %v25669_v32 }
 0x8b2   :  { %23976 = vmatmul.mubr.f32.vlgmr.msra.gmra.mxu1 %v25699_v48  ;;  %23983 = vmatmul.mubr.f32.vlgmr.msra.gmra.mxu0 %v25673_v15 }
 0x8b3   :  { %23985 = vmatprep.subr.mxu1 %v26132_v13  ;;  %23989 = vmatprep.mubr.f32.mxu1 %v25669_v32 }
 0x8b4   :  { %23986 = vmatpush3.msra.mxu1 %v26132_v13  ;;  %23996 = vmatprep.mubr.f32.mxu0 %v16580_v58 }
 0x8b5   :  { %23987 = vmatprep.subr.mxu1 %v26136_v27 }
 0x8b6   :  { %23988 = vmatpush3.msra.mxu1 %v26136_v27 }
 0x8b7   :  { %23990 = vmatmul.mubr.f32.vlgmr.msra.gmra.mxu1 %v25673_v15 }
 0x8b8   :  { %24003 = vmatprep.mubr.f32.mxu1 %v26183_v49 }
 0x942   :  { %v23872_v52 = vpop.f32.mrf.mxu0 }
 0x944   :  { %v15062_v34 = vpop.f32.mrf.mxu0 }
 0x947   :  { %v23886_v7 = vpop.f32.mrf.mxu0 }
 0x949   :  { %v15235_v24 = vpop.f32.mrf.mxu0 }
 0x94a   :  { %v23879_v16 = vpop.f32.mrf.mxu1 }
 0x94b   :  { %v15160_v60 = vadd.f32 %v23879_v16, %v23872_v52 }
 0x94c   :  { %v15153_v22 = vpop.f32.mrf.mxu1 }
 0x94d   :  { %v15243_v63 = vadd.f32 %v23886_v7, %v15160_v60  ;;  %v15154_v36 = vadd.f32 %v15153_v22, %v15062_v34  ;;  %v23900_v23 = vpop.f32.mrf.mxu0 }
 0x94f   :  { %v15236_v17 = vadd.f32 %v15235_v24, %v15154_v36  ;;  %v23893_v35 = vpop.f32.mrf.mxu1  ;;  %v15402_v0 = vpop.f32.mrf.mxu0 }
 0x950   :  { %v15326_v21 = vadd.f32 %v23893_v35, %v15243_v63 }
 0x951   :  { %v15317_v54 = vpop.f32.mrf.mxu1 }
 0x952   :  { %v15409_v62 = vadd.f32 %v23900_v23, %v15326_v21  ;;  %v15318_v44 = vadd.f32 %v15317_v54, %v15236_v17 }
 0x954   :  { %v15403_v42 = vadd.f32 %v15402_v0, %v15318_v44  ;;  %v23907_v25 = vpop.f32.mrf.mxu1  ;;  %v23914_v30 = vpop.f32.mrf.mxu0 }
 0x955   :  { %v15488_v56 = vadd.f32 %v23907_v25, %v15409_v62 }
 0x956   :  { %v15481_v12 = vpop.f32.mrf.mxu1  ;;  %v15570_v38 = vpop.f32.mrf.mxu0 }
 0x957   :  { %v26194_v19 = vadd.f32 %v15488_v56, %v26101_v61  ;;  %v15482_v5 = vadd.f32 %v15481_v12, %v15403_v42 }
 0x959   :  { %v26197_v46 = vadd.f32 %v15482_v5, %v26103_v26  ;;  %v16502_v26 = vld [vmem:[#allocation7 + $0x38] sm:$0xff] }
 0x95a   :  { %v23921_v9 = vpop.f32.mrf.mxu1  ;;  %v23928_v1 = vpop.f32.mrf.mxu0  ;;  %v16507_v60 = vsel %vm72_vm0, %v16502_v26, 0 }
 0x95b   :  { %v15668_v33 = vadd.f32 %v23921_v9, %v23914_v30  ;;  %v26200_v23 = vand.u32 4294901760, %v16507_v60 }
 0x95c   :  { %v15661_v13 = vpop.f32.mrf.mxu1  ;;  %v15743_v27 = vpop.f32.mrf.mxu0 }
 0x95d   :  { %v15751_v57 = vadd.f32 %v23928_v1, %v15668_v33  ;;  %v15662_v6 = vadd.f32 %v15661_v13, %v15570_v38  ;;  %v26203_v62 = vsub.f32 %v16507_v60, %v26200_v23 }
 0x95f   :  { %v15744_v50 = vadd.f32 %v15743_v27, %v15662_v6  ;;  %v16588_v12 = vand.u32 4294901760, %v26203_v62 }
 0x960   :  { %v23935_v55 = vpop.f32.mrf.mxu1  ;;  %v23942_v59 = vpop.f32.mrf.mxu0 }
 0x961   :  { %v15834_v45 = vadd.f32 %v23935_v55, %v15751_v57  ;;  %v16589_v27 = vsub.f32 %v26203_v62, %v16588_v12 }
 0x962   :  { %v15825_v10 = vpop.f32.mrf.mxu1  ;;  %v15910_v14 = vpop.f32.mrf.mxu0 }
 0x963   :  { %v15917_v43 = vadd.f32 %v23942_v59, %v15834_v45  ;;  %v15826_v61 = vadd.f32 %v15825_v10, %v15744_v50  ;;  %v16590_v45 = vand.u32 4294901760, %v16589_v27  ;;  %v17016_v10 = vld [vmem:[#allocation5 + $0xb8] sm:$0xff] }
 0x965   :  { %v15911_v2 = vadd.f32 %v15910_v14, %v15826_v61  ;;  %v17015_v61 = vld [vmem:[#allocation5 + $0xb0] sm:$0xff] }
 0x966   :  { %v23949_v20 = vpop.f32.mrf.mxu1  ;;  %v23956_v58 = vpop.f32.mrf.mxu0  ;;  %v26210_v26 = vand.u32 4294901760, %v17015_v61 }
 0x967   :  { %v15996_v52 = vadd.f32 %v23949_v20, %v15917_v43 }
 0x968   :  { %v15989_v34 = vpop.f32.mrf.mxu1  ;;  %v16072_v7 = vpop.f32.mrf.mxu0 }
 0x969   :  { %v16083_v24 = vadd.f32 %v23956_v58, %v15996_v52  ;;  %v15990_v16 = vadd.f32 %v15989_v34, %v15911_v2  ;;  %v26207_v2 = vand.u32 4294901760, %v17016_v10 }
 0x96b   :  { %v16073_v22 = vadd.f32 %v16072_v7, %v15990_v16  ;;  %v17134_v7 = vsub.f32 %v17016_v10, %v26207_v2  ;;  %v17141_v16 = vsub.f32 %v17015_v61, %v26210_v26 }
 0x96c   :  { %v23963_v63 = vpop.f32.mrf.mxu1  ;;  %v23970_v36 = vpop.f32.mrf.mxu0 }
 0x96d   :  { %v16170_v17 = vadd.f32 %v23963_v63, %v16083_v24  ;;  %v17135_v60 = vand.u32 4294901760, %v17134_v7 }
 0x96e   :  { %v16163_v35 = vpop.f32.mrf.mxu1  ;;  %v16245_v21 = vpop.f32.mrf.mxu0 }
 0x96f   :  { %v16253_v0 = vadd.f32 %v23970_v36, %v16170_v17  ;;  %v16164_v54 = vadd.f32 %v16163_v35, %v16073_v22  ;;  %v17142_v22 = vand.u32 4294901760, %v17141_v16  ;;  %v17136_v63 = vsub.f32 %v17134_v7, %v17135_v60  ;;  %v17014_v17 = vld [vmem:[#allocation5 + $0x48] sm:$0xff] }
 0x971   :  { %v16246_v44 = vadd.f32 %v16245_v21, %v16164_v54  ;;  %v17143_v36 = vsub.f32 %v17141_v16, %v17142_v22  ;;  %v26226_v21 = vand.u32 4294901760, %v17014_v17 }
 0x972   :  { %v23977_v42 = vpop.f32.mrf.mxu1  ;;  %v23984_v25 = vpop.f32.mrf.mxu0 }
 0x973   :  { %v16336_v30 = vadd.f32 %v23977_v42, %v16253_v0  ;;  %v17144_v35 = vand.u32 4294901760, %v17143_v36 }
 0x974   :  { %v16327_v56 = vpop.f32.mrf.mxu1  ;;  %v16412_v9 = vpop.f32.mrf.mxu0 }
 0x975   :  { %v16419_v38 = vadd.f32 %v23984_v25, %v16336_v30  ;;  %v16328_v5 = vadd.f32 %v16327_v56, %v16246_v44  ;;  %v18021_v56 = vld [vmem:[#allocation7 + $0x40] sm:$0xff] }
 0x977   :  { %v16413_v1 = vadd.f32 %v16412_v9, %v16328_v5  ;;  %v23991_v33 = vpop.f32.mrf.mxu1 }
 0x978   :  { %v16498_v13 = vadd.f32 %v23991_v33, %v16419_v38 }
 0x979   :  { %v16491_v57 = vpop.f32.mrf.mxu1 }
 0x97a   :  { %v16538_v6 = vand.u32 4294901760, %v16498_v13  ;;  %v16492_v50 = vadd.f32 %v16491_v57, %v16413_v1 }
 0x97c   :  { %v16626_v55 = vsub.f32 %v16498_v13, %v16538_v6  ;;  %v16541_v59 = vand.u32 4294901760, %v16492_v50  ;;  %23992 = vmatprep.subr.mxu0 %v16538_v6 }
 0x97d   :  { %23993 = vmatpush3.msra.mxu0 %v16538_v6 }
 0x97e   :  { %v16633_v14 = vsub.f32 %v16492_v50, %v16541_v59  ;;  %23994 = vmatprep.subr.mxu0 %v16541_v59  ;;  %v16627_v43 = vand.u32 4294901760, %v16626_v55 }
 0x97f   :  { %23995 = vmatpush3.msra.mxu0 %v16541_v59 }
 0x980   :  { %24006 = vmatprep.subr.mxu0 %v16626_v55  ;;  %23997 = vmatmul.mubr.f32.vlgmr.msra.gmra.mxu0 %v16590_v45  ;;  %v16628_v20 = vsub.f32 %v16626_v55, %v16627_v43  ;;  %v16634_v58 = vand.u32 4294901760, %v16633_v14 }
 0x981   :  { %24007 = vmatpush3.msra.mxu0 %v16626_v55  ;;  %24010 = vmatprep.mubr.f32.mxu0 %v26186_v47  ;;  %v17137_v47 = vand.u32 4294901760, %v17136_v63 }
 0x982   :  { %24008 = vmatprep.subr.mxu0 %v16633_v14  ;;  %v16629_v52 = vand.u32 4294901760, %v16628_v20  ;;  %v16635_v34 = vsub.f32 %v16633_v14, %v16634_v58 }
 0x983   :  { %24009 = vmatpush3.msra.mxu0 %v16633_v14 }
 0x984   :  { %23999 = vmatprep.subr.mxu1 %v16629_v52  ;;  %24020 = vmatprep.subr.mxu0 %v16627_v43  ;;  %v16636_v24 = vand.u32 4294901760, %v16635_v34 }
 0x985   :  { %24000 = vmatpush3.msra.mxu1 %v16629_v52  ;;  %24011 = vmatmul.mubr.f32.vlgmr.msra.gmra.mxu0 %v26203_v62 }
 0x986   :  { %24021 = vmatpush3.msra.mxu0 %v16627_v43  ;;  %24001 = vmatprep.subr.mxu1 %v16636_v24 }
 0x987   :  { %24022 = vmatprep.subr.mxu0 %v16634_v58  ;;  %24002 = vmatpush3.msra.mxu1 %v16636_v24 }
 0x988   :  { %24023 = vmatpush3.msra.mxu0 %v16634_v58  ;;  %24004 = vmatmul.mubr.f32.vlgmr.msra.gmra.mxu1 %v26200_v23 }
 0x989   :  { %24013 = vmatprep.subr.mxu1 %v16538_v6  ;;  %24017 = vmatprep.mubr.f32.mxu1 %v16578_v41  ;;  %v17013_v41 = vld [vmem:[#allocation5 + $0x40] sm:$0xff] }
 0x98a   :  { %24014 = vmatpush3.msra.mxu1 %v16538_v6  ;;  %24024 = vmatprep.mubr.f32.mxu0 %v26183_v49  ;;  %v26230_v0 = vand.u32 4294901760, %v17013_v41 }
 0x98b   :  { %24015 = vmatprep.subr.mxu1 %v16541_v59  ;;  %24025 = vmatmul.mubr.f32.vlgmr.msra.gmra.mxu0 %v26200_v23 }
 0x98c   :  { %24016 = vmatpush3.msra.mxu1 %v16541_v59  ;;  %24034 = vmatprep.subr.mxu0 %v26207_v2 }
 0x98d   :  { %24018 = vmatmul.mubr.f32.vlgmr.msra.gmra.mxu1 %v16588_v12  ;;  %24027 = vmatprep.subr.mxu1 %v16538_v6  ;;  %v18024_v12 = vsel %vm72_vm0, %v18021_v56, 0 }
 0x98e   :  { %24028 = vmatpush3.msra.mxu1 %v16538_v6  ;;  %24035 = vmatpush3.msra.mxu0 %v26207_v2  ;;  %v26277_v38 = vand.u32 4294901760, %v18024_v12 }
 0x98f   :  { %24029 = vmatprep.subr.mxu1 %v16541_v59  ;;  %24036 = vmatprep.subr.mxu0 %v26210_v26 }
 0x990   :  { %24030 = vmatpush3.msra.mxu1 %v16541_v59  ;;  %24031 = vmatprep.mubr.f32.mxu1 %v26183_v49  ;;  %v17636_v49 = vsub.f32 %v17014_v17, %v26226_v21  ;;  %v26280_v5 = vsub.f32 %v18024_v12, %v26277_v38 }
 0x991   :  { %24037 = vmatpush3.msra.mxu0 %v26210_v26  ;;  %24038 = vmatprep.mubr.f32.mxu0 %v25659_v31 }
 0x992   :  { %24032 = vmatmul.mubr.f32.vlgmr.msra.gmra.mxu1 %v26200_v23  ;;  %24039 = vmatmul.mubr.f32.vlgmr.msra.gmra.mxu0 %v25665_v29  ;;  %v17643_v23 = vsub.f32 %v17013_v41, %v26230_v0  ;;  %v17637_v54 = vand.u32 4294901760, %v17636_v49  ;;  %v18098_v9 = vand.u32 4294901760, %v26280_v5 }
 0x993   :  { %24041 = vmatprep.subr.mxu1 %v17137_v47  ;;  %24048 = vmatprep.subr.mxu0 %v17134_v7 }
 0x994   :  { %24042 = vmatpush3.msra.mxu1 %v17137_v47  ;;  %24049 = vmatpush3.msra.mxu0 %v17134_v7  ;;  %v17644_v62 = vand.u32 4294901760, %v17643_v23  ;;  %v17638_v44 = vsub.f32 %v17636_v49, %v17637_v54  ;;  %v18099_v1 = vsub.f32 %v26280_v5, %v18098_v9 }
 0x995   :  { %24043 = vmatprep.subr.mxu1 %v17144_v35  ;;  %24050 = vmatprep.subr.mxu0 %v17141_v16 }
 0x996   :  { %24044 = vmatpush3.msra.mxu1 %v17144_v35  ;;  %24045 = vmatprep.mubr.f32.mxu1 %v25601_v8  ;;  %v17645_v42 = vsub.f32 %v17643_v23, %v17644_v62  ;;  %v17639_v25 = vand.u32 4294901760, %v17638_v44  ;;  %v18100_v33 = vand.u32 4294901760, %v18099_v1 }
 0x997   :  { %24051 = vmatpush3.msra.mxu0 %v17141_v16  ;;  %24052 = vmatprep.mubr.f32.mxu0 %v25618_v53 }
 0x998   :  { %24046 = vmatmul.mubr.f32.vlgmr.msra.gmra.mxu1 %v25607_v39  ;;  %24053 = vmatmul.mubr.f32.vlgmr.msra.gmra.mxu0 %v25623_v37  ;;  %v17646_v30 = vand.u32 4294901760, %v17645_v42 }
 0x999   :  { %24055 = vmatprep.subr.mxu1 %v26207_v2  ;;  %24062 = vmatprep.subr.mxu0 %v17135_v60 }
 0x99a   :  { %24056 = vmatpush3.msra.mxu1 %v26207_v2  ;;  %24063 = vmatpush3.msra.mxu0 %v17135_v60 }
 0x99b   :  { %24057 = vmatprep.subr.mxu1 %v26210_v26  ;;  %24064 = vmatprep.subr.mxu0 %v17142_v22 }
 0x99c   :  { %24058 = vmatpush3.msra.mxu1 %v26210_v26  ;;  %24059 = vmatprep.mubr.f32.mxu1 %v25630_v3 }
 0x99d   :  { %24065 = vmatpush3.msra.mxu0 %v17142_v22  ;;  %24066 = vmatprep.mubr.f32.mxu0 %v25601_v8 }
 0x99e   :  { %24060 = vmatmul.mubr.f32.vlgmr.msra.gmra.mxu1 %v25634_v11  ;;  %24067 = vmatmul.mubr.f32.vlgmr.msra.gmra.mxu0 %v25607_v39 }
 0x99f   :  { %24069 = vmatprep.subr.mxu1 %v26207_v2  ;;  %24076 = vmatprep.subr.mxu0 %v26226_v21 }
 0x9a0   :  { %24070 = vmatpush3.msra.mxu1 %v26207_v2  ;;  %24077 = vmatpush3.msra.mxu0 %v26226_v21 }
 0x9a1   :  { %24071 = vmatprep.subr.mxu1 %v26210_v26  ;;  %24078 = vmatprep.subr.mxu0 %v26230_v0 }
 0x9a2   :  { %24072 = vmatpush3.msra.mxu1 %v26210_v26  ;;  %24073 = vmatprep.mubr.f32.mxu1 %v25601_v8 }
 0x9a3   :  { %24079 = vmatpush3.msra.mxu0 %v26230_v0  ;;  %24080 = vmatprep.mubr.f32.mxu0 %v25719_v28 }
 0x9a4   :  { %24074 = vmatmul.mubr.f32.vlgmr.msra.gmra.mxu1 %v25607_v39  ;;  %24081 = vmatmul.mubr.f32.vlgmr.msra.gmra.mxu0 %v25723_v40 }
 0x9a5   :  { %24083 = vmatprep.subr.mxu1 %v17639_v25  ;;  %24090 = vmatprep.subr.mxu0 %v17636_v49 }
 0x9a6   :  { %24084 = vmatpush3.msra.mxu1 %v17639_v25  ;;  %24091 = vmatpush3.msra.mxu0 %v17636_v49 }
 0x9a7   :  { %24085 = vmatprep.subr.mxu1 %v17646_v30  ;;  %24092 = vmatprep.subr.mxu0 %v17643_v23 }
 0x9a8   :  { %24086 = vmatpush3.msra.mxu1 %v17646_v30  ;;  %24087 = vmatprep.mubr.f32.mxu1 %v25669_v32 }
 0x9a9   :  { %24093 = vmatpush3.msra.mxu0 %v17643_v23  ;;  %24094 = vmatprep.mubr.f32.mxu0 %v25684_v4 }
 0x9aa   :  { %24088 = vmatmul.mubr.f32.vlgmr.msra.gmra.mxu1 %v25673_v15  ;;  %24095 = vmatmul.mubr.f32.vlgmr.msra.gmra.mxu0 %v25687_v18 }
 0x9ab   :  { %24097 = vmatprep.subr.mxu1 %v26226_v21  ;;  %24104 = vmatprep.subr.mxu0 %v17637_v54 }
 0x9ac   :  { %24098 = vmatpush3.msra.mxu1 %v26226_v21  ;;  %24105 = vmatpush3.msra.mxu0 %v17637_v54 }
 0x9ad   :  { %24099 = vmatprep.subr.mxu1 %v26230_v0  ;;  %24106 = vmatprep.subr.mxu0 %v17644_v62 }
 0x9ae   :  { %24100 = vmatpush3.msra.mxu1 %v26230_v0  ;;  %24101 = vmatprep.mubr.f32.mxu1 %v25693_v51 }
 0x9af   :  { %24107 = vmatpush3.msra.mxu0 %v17644_v62  ;;  %24108 = vmatprep.mubr.f32.mxu0 %v25669_v32 }
 0x9b0   :  { %24102 = vmatmul.mubr.f32.vlgmr.msra.gmra.mxu1 %v25699_v48  ;;  %24109 = vmatmul.mubr.f32.vlgmr.msra.gmra.mxu0 %v25673_v15 }
 0x9b1   :  { %24111 = vmatprep.subr.mxu1 %v26226_v21  ;;  %24115 = vmatprep.mubr.f32.mxu1 %v25669_v32 }
 0x9b2   :  { %24112 = vmatpush3.msra.mxu1 %v26226_v21  ;;  %24122 = vmatprep.mubr.f32.mxu0 %v18100_v33 }
 0x9b3   :  { %24113 = vmatprep.subr.mxu1 %v26230_v0 }
 0x9b4   :  { %24114 = vmatpush3.msra.mxu1 %v26230_v0 }
 0x9b5   :  { %24116 = vmatmul.mubr.f32.vlgmr.msra.gmra.mxu1 %v25673_v15 }
 0x9b6   :  { %24129 = vmatprep.mubr.f32.mxu1 %v26277_v38 }
 0xa40   :  { %v23998_v13 = vpop.f32.mrf.mxu0 }
 0xa42   :  { %v16582_v27 = vpop.f32.mrf.mxu0 }
 0xa45   :  { %v24012_v57 = vpop.f32.mrf.mxu0 }
 0xa47   :  { %v16755_v6 = vpop.f32.mrf.mxu0 }
 0xa48   :  { %v24005_v50 = vpop.f32.mrf.mxu1 }
 0xa49   :  { %v16680_v55 = vadd.f32 %v24005_v50, %v23998_v13 }
 0xa4a   :  { %v16673_v59 = vpop.f32.mrf.mxu1 }
 0xa4b   :  { %v16763_v45 = vadd.f32 %v24012_v57, %v16680_v55  ;;  %v16674_v10 = vadd.f32 %v16673_v59, %v16582_v27  ;;  %v24026_v14 = vpop.f32.mrf.mxu0 }
 0xa4d   :  { %v16756_v43 = vadd.f32 %v16755_v6, %v16674_v10  ;;  %v24019_v61 = vpop.f32.mrf.mxu1  ;;  %v16922_v20 = vpop.f32.mrf.mxu0 }
 0xa4e   :  { %v16846_v2 = vadd.f32 %v24019_v61, %v16763_v45 }
 0xa4f   :  { %v16837_v58 = vpop.f32.mrf.mxu1 }
 0xa50   :  { %v16929_v26 = vadd.f32 %v24026_v14, %v16846_v2  ;;  %v16838_v52 = vadd.f32 %v16837_v58, %v16756_v43 }
 0xa52   :  { %v16923_v34 = vadd.f32 %v16922_v20, %v16838_v52  ;;  %v24033_v7 = vpop.f32.mrf.mxu1  ;;  %v24040_v24 = vpop.f32.mrf.mxu0 }
 0xa53   :  { %v17008_v16 = vadd.f32 %v24033_v7, %v16929_v26 }
 0xa54   :  { %v17001_v60 = vpop.f32.mrf.mxu1  ;;  %v17090_v22 = vpop.f32.mrf.mxu0 }
 0xa55   :  { %v26288_v63 = vadd.f32 %v17008_v16, %v26194_v19  ;;  %v17002_v36 = vadd.f32 %v17001_v60, %v16923_v34 }
 0xa57   :  { %v26291_v17 = vadd.f32 %v17002_v36, %v26197_v46  ;;  %v18022_v46 = vld [vmem:[#allocation7 + $0x48] sm:$0xff] }
 0xa58   :  { %v24047_v47 = vpop.f32.mrf.mxu1  ;;  %v24054_v41 = vpop.f32.mrf.mxu0  ;;  %v18027_v55 = vsel %vm72_vm0, %v18022_v46, 0 }
 0xa59   :  { %v17188_v35 = vadd.f32 %v24047_v47, %v24040_v24  ;;  %v26294_v14 = vand.u32 4294901760, %v18027_v55 }
 0xa5a   :  { %v17181_v21 = vpop.f32.mrf.mxu1  ;;  %v17263_v0 = vpop.f32.mrf.mxu0 }
 0xa5b   :  { %v17271_v49 = vadd.f32 %v24054_v41, %v17188_v35  ;;  %v17182_v23 = vadd.f32 %v17181_v21, %v17090_v22  ;;  %v26297_v26 = vsub.f32 %v18027_v55, %v26294_v14 }
 0xa5d   :  { %v17264_v54 = vadd.f32 %v17263_v0, %v17182_v23  ;;  %v18108_v60 = vand.u32 4294901760, %v26297_v26 }
 0xa5e   :  { %v24061_v62 = vpop.f32.mrf.mxu1  ;;  %v24068_v44 = vpop.f32.mrf.mxu0 }
 0xa5f   :  { %v17354_v42 = vadd.f32 %v24061_v62, %v17271_v49  ;;  %v18109_v0 = vsub.f32 %v26297_v26, %v18108_v60 }
 0xa60   :  { %v17345_v25 = vpop.f32.mrf.mxu1  ;;  %v17430_v30 = vpop.f32.mrf.mxu0 }
 0xa61   :  { %v17437_v56 = vadd.f32 %v24068_v44, %v17354_v42  ;;  %v17346_v19 = vadd.f32 %v17345_v25, %v17264_v54  ;;  %v18110_v42 = vand.u32 4294901760, %v18109_v0  ;;  %v18536_v25 = vld [vmem:[#allocation5 + $0xc8] sm:$0xff] }
 0xa63   :  { %v17431_v12 = vadd.f32 %v17430_v30, %v17346_v19  ;;  %v18535_v19 = vld [vmem:[#allocation5 + $0xc0] sm:$0xff] }
 0xa64   :  { %v24075_v1 = vpop.f32.mrf.mxu1  ;;  %v24082_v33 = vpop.f32.mrf.mxu0  ;;  %v26304_v46 = vand.u32 4294901760, %v18535_v19 }
 0xa65   :  { %v17516_v13 = vadd.f32 %v24075_v1, %v17437_v56 }
 0xa66   :  { %v17509_v27 = vpop.f32.mrf.mxu1  ;;  %v17592_v57 = vpop.f32.mrf.mxu0 }
 0xa67   :  { %v17603_v6 = vadd.f32 %v24082_v33, %v17516_v13  ;;  %v17510_v50 = vadd.f32 %v17509_v27, %v17431_v12  ;;  %v26301_v12 = vand.u32 4294901760, %v18536_v25 }
 0xa69   :  { %v17593_v59 = vadd.f32 %v17592_v57, %v17510_v50  ;;  %v18654_v57 = vsub.f32 %v18536_v25, %v26301_v12  ;;  %v18661_v50 = vsub.f32 %v18535_v19, %v26304_v46 }
 0xa6a   :  { %v24089_v45 = vpop.f32.mrf.mxu1  ;;  %v24096_v10 = vpop.f32.mrf.mxu0 }
 0xa6b   :  { %v17690_v43 = vadd.f32 %v24089_v45, %v17603_v6  ;;  %v18655_v55 = vand.u32 4294901760, %v18654_v57 }
 0xa6c   :  { %v17683_v61 = vpop.f32.mrf.mxu1  ;;  %v17765_v2 = vpop.f32.mrf.mxu0 }
 0xa6d   :  { %v17773_v20 = vadd.f32 %v24096_v10, %v17690_v43  ;;  %v17684_v58 = vadd.f32 %v17683_v61, %v17593_v59  ;;  %v18662_v59 = vand.u32 4294901760, %v18661_v50  ;;  %v18656_v45 = vsub.f32 %v18654_v57, %v18655_v55  ;;  %v18534_v43 = vld [vmem:[#allocation5 + $0x58] sm:$0xff] }
 0xa6f   :  { %v17766_v52 = vadd.f32 %v17765_v2, %v17684_v58  ;;  %v18663_v10 = vsub.f32 %v18661_v50, %v18662_v59  ;;  %v26320_v2 = vand.u32 4294901760, %v18534_v43 }
 0xa70   :  { %v24103_v34 = vpop.f32.mrf.mxu1  ;;  %v24110_v7 = vpop.f32.mrf.mxu0 }
 0xa71   :  { %v17856_v24 = vadd.f32 %v24103_v34, %v17773_v20  ;;  %v18664_v61 = vand.u32 4294901760, %v18663_v10 }
 0xa72   :  { %v17847_v16 = vpop.f32.mrf.mxu1  ;;  %v17932_v47 = vpop.f32.mrf.mxu0 }
 0xa73   :  { %v17939_v22 = vadd.f32 %v24110_v7, %v17856_v24  ;;  %v17848_v36 = vadd.f32 %v17847_v16, %v17766_v52  ;;  %v19541_v16 = vld [vmem:[#allocation7 + $0x50] sm:$0xff] }
 0xa75   :  { %v17933_v41 = vadd.f32 %v17932_v47, %v17848_v36  ;;  %v24117_v35 = vpop.f32.mrf.mxu1 }
 0xa76   :  { %v18018_v21 = vadd.f32 %v24117_v35, %v17939_v22 }
 0xa77   :  { %v18011_v49 = vpop.f32.mrf.mxu1 }
 0xa78   :  { %v18058_v23 = vand.u32 4294901760, %v18018_v21  ;;  %v18012_v54 = vadd.f32 %v18011_v49, %v17933_v41 }
 0xa7a   :  { %v18146_v62 = vsub.f32 %v18018_v21, %v18058_v23  ;;  %v18061_v44 = vand.u32 4294901760, %v18012_v54  ;;  %24118 = vmatprep.subr.mxu0 %v18058_v23 }
 0xa7b   :  { %24119 = vmatpush3.msra.mxu0 %v18058_v23 }
 0xa7c   :  { %v18153_v30 = vsub.f32 %v18012_v54, %v18061_v44  ;;  %24120 = vmatprep.subr.mxu0 %v18061_v44  ;;  %v18147_v56 = vand.u32 4294901760, %v18146_v62 }
 0xa7d   :  { %24121 = vmatpush3.msra.mxu0 %v18061_v44 }
 0xa7e   :  { %24132 = vmatprep.subr.mxu0 %v18146_v62  ;;  %24123 = vmatmul.mubr.f32.vlgmr.msra.gmra.mxu0 %v18110_v42  ;;  %v18148_v1 = vsub.f32 %v18146_v62, %v18147_v56  ;;  %v18154_v33 = vand.u32 4294901760, %v18153_v30 }
 0xa7f   :  { %24133 = vmatpush3.msra.mxu0 %v18146_v62  ;;  %24136 = vmatprep.mubr.f32.mxu0 %v26280_v5  ;;  %v18657_v5 = vand.u32 4294901760, %v18656_v45 }
 0xa80   :  { %24134 = vmatprep.subr.mxu0 %v18153_v30  ;;  %v18149_v13 = vand.u32 4294901760, %v18148_v1  ;;  %v18155_v27 = vsub.f32 %v18153_v30, %v18154_v33 }
 0xa81   :  { %24135 = vmatpush3.msra.mxu0 %v18153_v30 }
 0xa82   :  { %24125 = vmatprep.subr.mxu1 %v18149_v13  ;;  %24146 = vmatprep.subr.mxu0 %v18147_v56  ;;  %v18156_v6 = vand.u32 4294901760, %v18155_v27 }
 0xa83   :  { %24126 = vmatpush3.msra.mxu1 %v18149_v13  ;;  %24137 = vmatmul.mubr.f32.vlgmr.msra.gmra.mxu0 %v26297_v26 }
 0xa84   :  { %24147 = vmatpush3.msra.mxu0 %v18147_v56  ;;  %24127 = vmatprep.subr.mxu1 %v18156_v6 }
 0xa85   :  { %24148 = vmatprep.subr.mxu0 %v18154_v33  ;;  %24128 = vmatpush3.msra.mxu1 %v18156_v6 }
 0xa86   :  { %24149 = vmatpush3.msra.mxu0 %v18154_v33  ;;  %24130 = vmatmul.mubr.f32.vlgmr.msra.gmra.mxu1 %v26294_v14 }
 0xa87   :  { %24139 = vmatprep.subr.mxu1 %v18058_v23  ;;  %24143 = vmatprep.mubr.f32.mxu1 %v18098_v9  ;;  %v18533_v9 = vld [vmem:[#allocation5 + $0x50] sm:$0xff] }
 0xa88   :  { %24140 = vmatpush3.msra.mxu1 %v18058_v23  ;;  %24150 = vmatprep.mubr.f32.mxu0 %v26277_v38  ;;  %v26324_v20 = vand.u32 4294901760, %v18533_v9 }
 0xa89   :  { %24141 = vmatprep.subr.mxu1 %v18061_v44  ;;  %24151 = vmatmul.mubr.f32.vlgmr.msra.gmra.mxu0 %v26294_v14 }
 0xa8a   :  { %24142 = vmatpush3.msra.mxu1 %v18061_v44  ;;  %24160 = vmatprep.subr.mxu0 %v26301_v12 }
 0xa8b   :  { %24144 = vmatmul.mubr.f32.vlgmr.msra.gmra.mxu1 %v18108_v60  ;;  %24153 = vmatprep.subr.mxu1 %v18058_v23  ;;  %v19544_v60 = vsel %vm72_vm0, %v19541_v16, 0 }
 0xa8c   :  { %24154 = vmatpush3.msra.mxu1 %v18058_v23  ;;  %24161 = vmatpush3.msra.mxu0 %v26301_v12  ;;  %v26371_v22 = vand.u32 4294901760, %v19544_v60 }
 0xa8d   :  { %24155 = vmatprep.subr.mxu1 %v18061_v44  ;;  %24162 = vmatprep.subr.mxu0 %v26304_v46 }
 0xa8e   :  { %24156 = vmatpush3.msra.mxu1 %v18061_v44  ;;  %24157 = vmatprep.mubr.f32.mxu1 %v26277_v38  ;;  %v19156_v38 = vsub.f32 %v18534_v43, %v26320_v2  ;;  %v26374_v36 = vsub.f32 %v19544_v60, %v26371_v22 }
 0xa8f   :  { %24163 = vmatpush3.msra.mxu0 %v26304_v46  ;;  %24164 = vmatprep.mubr.f32.mxu0 %v25659_v31 }
 0xa90   :  { %24158 = vmatmul.mubr.f32.vlgmr.msra.gmra.mxu1 %v26294_v14  ;;  %24165 = vmatmul.mubr.f32.vlgmr.msra.gmra.mxu0 %v25665_v29  ;;  %v19163_v14 = vsub.f32 %v18533_v9, %v26324_v20  ;;  %v19157_v58 = vand.u32 4294901760, %v19156_v38  ;;  %v19618_v47 = vand.u32 4294901760, %v26374_v36 }
 0xa91   :  { %24167 = vmatprep.subr.mxu1 %v18657_v5  ;;  %24174 = vmatprep.subr.mxu0 %v18654_v57 }
 0xa92   :  { %24168 = vmatpush3.msra.mxu1 %v18657_v5  ;;  %24175 = vmatpush3.msra.mxu0 %v18654_v57  ;;  %v19164_v26 = vand.u32 4294901760, %v19163_v14  ;;  %v19158_v52 = vsub.f32 %v19156_v38, %v19157_v58  ;;  %v19619_v41 = vsub.f32 %v26374_v36, %v19618_v47 }
 0xa93   :  { %24169 = vmatprep.subr.mxu1 %v18664_v61  ;;  %24176 = vmatprep.subr.mxu0 %v18661_v50 }
 0xa94   :  { %24170 = vmatpush3.msra.mxu1 %v18664_v61  ;;  %24171 = vmatprep.mubr.f32.mxu1 %v25601_v8  ;;  %v19165_v34 = vsub.f32 %v19163_v14, %v19164_v26  ;;  %v19159_v7 = vand.u32 4294901760, %v19158_v52  ;;  %v19620_v35 = vand.u32 4294901760, %v19619_v41 }
 0xa95   :  { %24177 = vmatpush3.msra.mxu0 %v18661_v50  ;;  %24178 = vmatprep.mubr.f32.mxu0 %v25618_v53 }
 0xa96   :  { %24172 = vmatmul.mubr.f32.vlgmr.msra.gmra.mxu1 %v25607_v39  ;;  %24179 = vmatmul.mubr.f32.vlgmr.msra.gmra.mxu0 %v25623_v37  ;;  %v19166_v24 = vand.u32 4294901760, %v19165_v34 }
 0xa97   :  { %24181 = vmatprep.subr.mxu1 %v26301_v12  ;;  %24188 = vmatprep.subr.mxu0 %v18655_v55 }
 0xa98   :  { %24182 = vmatpush3.msra.mxu1 %v26301_v12  ;;  %24189 = vmatpush3.msra.mxu0 %v18655_v55 }
 0xa99   :  { %24183 = vmatprep.subr.mxu1 %v26304_v46  ;;  %24190 = vmatprep.subr.mxu0 %v18662_v59 }
 0xa9a   :  { %24184 = vmatpush3.msra.mxu1 %v26304_v46  ;;  %24185 = vmatprep.mubr.f32.mxu1 %v25630_v3 }
 0xa9b   :  { %24191 = vmatpush3.msra.mxu0 %v18662_v59  ;;  %24192 = vmatprep.mubr.f32.mxu0 %v25601_v8 }
 0xa9c   :  { %24186 = vmatmul.mubr.f32.vlgmr.msra.gmra.mxu1 %v25634_v11  ;;  %24193 = vmatmul.mubr.f32.vlgmr.msra.gmra.mxu0 %v25607_v39 }
 0xa9d   :  { %24195 = vmatprep.subr.mxu1 %v26301_v12  ;;  %24202 = vmatprep.subr.mxu0 %v26320_v2 }
 0xa9e   :  { %24196 = vmatpush3.msra.mxu1 %v26301_v12  ;;  %24203 = vmatpush3.msra.mxu0 %v26320_v2 }
 0xa9f   :  { %24197 = vmatprep.subr.mxu1 %v26304_v46  ;;  %24204 = vmatprep.subr.mxu0 %v26324_v20 }
 0xaa0   :  { %24198 = vmatpush3.msra.mxu1 %v26304_v46  ;;  %24199 = vmatprep.mubr.f32.mxu1 %v25601_v8 }
 0xaa1   :  { %24205 = vmatpush3.msra.mxu0 %v26324_v20  ;;  %24206 = vmatprep.mubr.f32.mxu0 %v25719_v28 }
 0xaa2   :  { %24200 = vmatmul.mubr.f32.vlgmr.msra.gmra.mxu1 %v25607_v39  ;;  %24207 = vmatmul.mubr.f32.vlgmr.msra.gmra.mxu0 %v25723_v40 }
 0xaa3   :  { %24209 = vmatprep.subr.mxu1 %v19159_v7  ;;  %24216 = vmatprep.subr.mxu0 %v19156_v38 }
 0xaa4   :  { %24210 = vmatpush3.msra.mxu1 %v19159_v7  ;;  %24217 = vmatpush3.msra.mxu0 %v19156_v38 }
 0xaa5   :  { %24211 = vmatprep.subr.mxu1 %v19166_v24  ;;  %24218 = vmatprep.subr.mxu0 %v19163_v14 }
 0xaa6   :  { %24212 = vmatpush3.msra.mxu1 %v19166_v24  ;;  %24213 = vmatprep.mubr.f32.mxu1 %v25669_v32 }
 0xaa7   :  { %24219 = vmatpush3.msra.mxu0 %v19163_v14  ;;  %24220 = vmatprep.mubr.f32.mxu0 %v25684_v4 }
 0xaa8   :  { %24214 = vmatmul.mubr.f32.vlgmr.msra.gmra.mxu1 %v25673_v15  ;;  %24221 = vmatmul.mubr.f32.vlgmr.msra.gmra.mxu0 %v25687_v18 }
 0xaa9   :  { %24223 = vmatprep.subr.mxu1 %v26320_v2  ;;  %24230 = vmatprep.subr.mxu0 %v19157_v58 }
 0xaaa   :  { %24224 = vmatpush3.msra.mxu1 %v26320_v2  ;;  %24231 = vmatpush3.msra.mxu0 %v19157_v58 }
 0xaab   :  { %24225 = vmatprep.subr.mxu1 %v26324_v20  ;;  %24232 = vmatprep.subr.mxu0 %v19164_v26 }
 0xaac   :  { %24226 = vmatpush3.msra.mxu1 %v26324_v20  ;;  %24227 = vmatprep.mubr.f32.mxu1 %v25693_v51 }
 0xaad   :  { %24233 = vmatpush3.msra.mxu0 %v19164_v26  ;;  %24234 = vmatprep.mubr.f32.mxu0 %v25669_v32 }
 0xaae   :  { %24228 = vmatmul.mubr.f32.vlgmr.msra.gmra.mxu1 %v25699_v48  ;;  %24235 = vmatmul.mubr.f32.vlgmr.msra.gmra.mxu0 %v25673_v15 }
 0xaaf   :  { %24237 = vmatprep.subr.mxu1 %v26320_v2  ;;  %24241 = vmatprep.mubr.f32.mxu1 %v25669_v32 }
 0xab0   :  { %24238 = vmatpush3.msra.mxu1 %v26320_v2  ;;  %24248 = vmatprep.mubr.f32.mxu0 %v19620_v35 }
 0xab1   :  { %24239 = vmatprep.subr.mxu1 %v26324_v20 }
 0xab2   :  { %24240 = vmatpush3.msra.mxu1 %v26324_v20 }
 0xab3   :  { %24242 = vmatmul.mubr.f32.vlgmr.msra.gmra.mxu1 %v25673_v15 }
 0xab4   :  { %24255 = vmatprep.mubr.f32.mxu1 %v26371_v22 }
 0xb3e   :  { %v24124_v21 = vpop.f32.mrf.mxu0 }
 0xb40   :  { %v18102_v0 = vpop.f32.mrf.mxu0 }
 0xb43   :  { %v24138_v49 = vpop.f32.mrf.mxu0 }
 0xb45   :  { %v18275_v23 = vpop.f32.mrf.mxu0 }
 0xb46   :  { %v24131_v54 = vpop.f32.mrf.mxu1 }
 0xb47   :  { %v18200_v62 = vadd.f32 %v24131_v54, %v24124_v21 }
 0xb48   :  { %v18193_v44 = vpop.f32.mrf.mxu1 }
 0xb49   :  { %v18283_v42 = vadd.f32 %v24138_v49, %v18200_v62  ;;  %v18194_v25 = vadd.f32 %v18193_v44, %v18102_v0  ;;  %v24152_v30 = vpop.f32.mrf.mxu0 }
 0xb4b   :  { %v18276_v56 = vadd.f32 %v18275_v23, %v18194_v25  ;;  %v24145_v19 = vpop.f32.mrf.mxu1  ;;  %v18442_v1 = vpop.f32.mrf.mxu0 }
 0xb4c   :  { %v18366_v12 = vadd.f32 %v24145_v19, %v18283_v42 }
 0xb4d   :  { %v18357_v33 = vpop.f32.mrf.mxu1 }
 0xb4e   :  { %v18449_v46 = vadd.f32 %v24152_v30, %v18366_v12  ;;  %v18358_v13 = vadd.f32 %v18357_v33, %v18276_v56 }
 0xb50   :  { %v18443_v27 = vadd.f32 %v18442_v1, %v18358_v13  ;;  %v24159_v57 = vpop.f32.mrf.mxu1  ;;  %v24166_v6 = vpop.f32.mrf.mxu0 }
 0xb51   :  { %v18528_v50 = vadd.f32 %v24159_v57, %v18449_v46 }
 0xb52   :  { %v18521_v55 = vpop.f32.mrf.mxu1  ;;  %v18610_v59 = vpop.f32.mrf.mxu0 }
 0xb53   :  { %v26382_v45 = vadd.f32 %v18528_v50, %v26288_v63  ;;  %v18522_v10 = vadd.f32 %v18521_v55, %v18443_v27 }
 0xb55   :  { %v26385_v43 = vadd.f32 %v18522_v10, %v26291_v17  ;;  %v19542_v17 = vld [vmem:[#allocation7 + $0x58] sm:$0xff] }
 0xb56   :  { %v24173_v5 = vpop.f32.mrf.mxu1  ;;  %v24180_v9 = vpop.f32.mrf.mxu0  ;;  %v19547_v62 = vsel %vm72_vm0, %v19542_v17, 0 }
 0xb57   :  { %v18708_v61 = vadd.f32 %v24173_v5, %v24166_v6  ;;  %v26388_v30 = vand.u32 4294901760, %v19547_v62 }
 0xb58   :  { %v18701_v2 = vpop.f32.mrf.mxu1  ;;  %v18783_v20 = vpop.f32.mrf.mxu0 }
 0xb59   :  { %v18791_v38 = vadd.f32 %v24180_v9, %v18708_v61  ;;  %v18702_v14 = vadd.f32 %v18701_v2, %v18610_v59  ;;  %v26391_v46 = vsub.f32 %v19547_v62, %v26388_v30 }
 0xb5b   :  { %v18784_v58 = vadd.f32 %v18783_v20, %v18702_v14  ;;  %v19628_v55 = vand.u32 4294901760, %v26391_v46 }
 0xb5c   :  { %v24187_v26 = vpop.f32.mrf.mxu1  ;;  %v24194_v52 = vpop.f32.mrf.mxu0 }
 0xb5d   :  { %v18874_v34 = vadd.f32 %v24187_v26, %v18791_v38  ;;  %v19629_v20 = vsub.f32 %v26391_v46, %v19628_v55 }
 0xb5e   :  { %v18865_v7 = vpop.f32.mrf.mxu1  ;;  %v18950_v24 = vpop.f32.mrf.mxu0 }
 0xb5f   :  { %v18957_v16 = vadd.f32 %v24194_v52, %v18874_v34  ;;  %v18866_v63 = vadd.f32 %v18865_v7, %v18784_v58  ;;  %v19630_v34 = vand.u32 4294901760, %v19629_v20  ;;  %v20056_v7 = vld [vmem:[#allocation5 + $0xd8] sm:$0xff] }
 0xb61   :  { %v18951_v60 = vadd.f32 %v18950_v24, %v18866_v63  ;;  %v20055_v63 = vld [vmem:[#allocation5 + $0xd0] sm:$0xff] }
 0xb62   :  { %v24201_v41 = vpop.f32.mrf.mxu1  ;;  %v24208_v35 = vpop.f32.mrf.mxu0  ;;  %v26398_v17 = vand.u32 4294901760, %v20055_v63 }
 0xb63   :  { %v19036_v21 = vadd.f32 %v24201_v41, %v18957_v16 }
 0xb64   :  { %v19029_v0 = vpop.f32.mrf.mxu1  ;;  %v19112_v49 = vpop.f32.mrf.mxu0 }
 0xb65   :  { %v19123_v23 = vadd.f32 %v24208_v35, %v19036_v21  ;;  %v19030_v54 = vadd.f32 %v19029_v0, %v18951_v60  ;;  %v26395_v60 = vand.u32 4294901760, %v20056_v7 }
 0xb67   :  { %v19113_v44 = vadd.f32 %v19112_v49, %v19030_v54  ;;  %v20174_v49 = vsub.f32 %v20056_v7, %v26395_v60  ;;  %v20181_v54 = vsub.f32 %v20055_v63, %v26398_v17 }
 0xb68   :  { %v24215_v42 = vpop.f32.mrf.mxu1  ;;  %v24222_v25 = vpop.f32.mrf.mxu0 }
 0xb69   :  { %v19210_v56 = vadd.f32 %v24215_v42, %v19123_v23  ;;  %v20175_v62 = vand.u32 4294901760, %v20174_v49 }
 0xb6a   :  { %v19203_v19 = vpop.f32.mrf.mxu1  ;;  %v19285_v12 = vpop.f32.mrf.mxu0 }
 0xb6b   :  { %v19293_v1 = vadd.f32 %v24222_v25, %v19210_v56  ;;  %v19204_v33 = vadd.f32 %v19203_v19, %v19113_v44  ;;  %v20182_v44 = vand.u32 4294901760, %v20181_v54  ;;  %v20176_v42 = vsub.f32 %v20174_v49, %v20175_v62  ;;  %v20054_v56 = vld [vmem:[#allocation5 + $0x68] sm:$0xff] }
 0xb6d   :  { %v19286_v13 = vadd.f32 %v19285_v12, %v19204_v33  ;;  %v20183_v25 = vsub.f32 %v20181_v54, %v20182_v44  ;;  %v26414_v12 = vand.u32 4294901760, %v20054_v56 }
 0xb6e   :  { %v24229_v27 = vpop.f32.mrf.mxu1  ;;  %v24236_v57 = vpop.f32.mrf.mxu0 }
 0xb6f   :  { %v19376_v6 = vadd.f32 %v24229_v27, %v19293_v1  ;;  %v20184_v19 = vand.u32 4294901760, %v20183_v25 }
 0xb70   :  { %v19367_v50 = vpop.f32.mrf.mxu1  ;;  %v19452_v5 = vpop.f32.mrf.mxu0 }
 0xb71   :  { %v19459_v59 = vadd.f32 %v24236_v57, %v19376_v6  ;;  %v19368_v10 = vadd.f32 %v19367_v50, %v19286_v13 }
 0xb73   :  { %v19453_v9 = vadd.f32 %v19452_v5, %v19368_v10  ;;  %v24243_v61 = vpop.f32.mrf.mxu1 }
 0xb74   :  { %v19538_v2 = vadd.f32 %v24243_v61, %v19459_v59 }
 0xb75   :  { %v19531_v38 = vpop.f32.mrf.mxu1 }
 0xb76   :  { %v19578_v14 = vand.u32 4294901760, %v19538_v2  ;;  %v19532_v58 = vadd.f32 %v19531_v38, %v19453_v9 }
 0xb78   :  { %v19666_v26 = vsub.f32 %v19538_v2, %v19578_v14  ;;  %v19581_v52 = vand.u32 4294901760, %v19532_v58  ;;  %24244 = vmatprep.subr.mxu0 %v19578_v14 }
 0xb79   :  { %24245 = vmatpush3.msra.mxu0 %v19578_v14 }
 0xb7a   :  { %v19673_v24 = vsub.f32 %v19532_v58, %v19581_v52  ;;  %24246 = vmatprep.subr.mxu0 %v19581_v52  ;;  %v19667_v16 = vand.u32 4294901760, %v19666_v26 }
 0xb7b   :  { %24247 = vmatpush3.msra.mxu0 %v19581_v52 }
 0xb7c   :  { %24258 = vmatprep.subr.mxu0 %v19666_v26  ;;  %24249 = vmatmul.mubr.f32.vlgmr.msra.gmra.mxu0 %v19630_v34  ;;  %v19668_v41 = vsub.f32 %v19666_v26, %v19667_v16  ;;  %v19674_v35 = vand.u32 4294901760, %v19673_v24 }
 0xb7d   :  { %24259 = vmatpush3.msra.mxu0 %v19666_v26  ;;  %24262 = vmatprep.mubr.f32.mxu0 %v26374_v36  ;;  %v20177_v36 = vand.u32 4294901760, %v20176_v42 }
 0xb7e   :  { %24260 = vmatprep.subr.mxu0 %v19673_v24  ;;  %v19669_v21 = vand.u32 4294901760, %v19668_v41  ;;  %v19675_v0 = vsub.f32 %v19673_v24, %v19674_v35 }
 0xb7f   :  { %24261 = vmatpush3.msra.mxu0 %v19673_v24 }
 0xb80   :  { %24251 = vmatprep.subr.mxu1 %v19669_v21  ;;  %24272 = vmatprep.subr.mxu0 %v19667_v16  ;;  %v19676_v23 = vand.u32 4294901760, %v19675_v0 }
 0xb81   :  { %24252 = vmatpush3.msra.mxu1 %v19669_v21  ;;  %24263 = vmatmul.mubr.f32.vlgmr.msra.gmra.mxu0 %v26391_v46 }
 0xb82   :  { %24273 = vmatpush3.msra.mxu0 %v19667_v16  ;;  %24253 = vmatprep.subr.mxu1 %v19676_v23 }
 0xb83   :  { %24274 = vmatprep.subr.mxu0 %v19674_v35  ;;  %24254 = vmatpush3.msra.mxu1 %v19676_v23 }
 0xb84   :  { %24275 = vmatpush3.msra.mxu0 %v19674_v35  ;;  %24256 = vmatmul.mubr.f32.vlgmr.msra.gmra.mxu1 %v26388_v30 }
 0xb85   :  { %24265 = vmatprep.subr.mxu1 %v19578_v14  ;;  %24269 = vmatprep.mubr.f32.mxu1 %v19618_v47  ;;  %v20053_v47 = vld [vmem:[#allocation5 + $0x60] sm:$0xff] }
 0xb86   :  { %24266 = vmatpush3.msra.mxu1 %v19578_v14  ;;  %24276 = vmatprep.mubr.f32.mxu0 %v26371_v22  ;;  %v26418_v1 = vand.u32 4294901760, %v20053_v47 }
 0xb87   :  { %24267 = vmatprep.subr.mxu1 %v19581_v52  ;;  %24277 = vmatmul.mubr.f32.vlgmr.msra.gmra.mxu0 %v26388_v30 }
 0xb88   :  { %24268 = vmatpush3.msra.mxu1 %v19581_v52  ;;  %24286 = vmatprep.subr.mxu0 %v26395_v60 }
 0xb89   :  { %24270 = vmatmul.mubr.f32.vlgmr.msra.gmra.mxu1 %v19628_v55  ;;  %24279 = vmatprep.subr.mxu1 %v19578_v14 }
 0xb8a   :  { %24280 = vmatpush3.msra.mxu1 %v19578_v14  ;;  %24287 = vmatpush3.msra.mxu0 %v26395_v60 }
 0xb8b   :  { %24281 = vmatprep.subr.mxu1 %v19581_v52  ;;  %24288 = vmatprep.subr.mxu0 %v26398_v17 }
 0xb8c   :  { %24282 = vmatpush3.msra.mxu1 %v19581_v52  ;;  %24283 = vmatprep.mubr.f32.mxu1 %v26371_v22  ;;  %v20676_v22 = vsub.f32 %v20054_v56, %v26414_v12 }
 0xb8d   :  { %24289 = vmatpush3.msra.mxu0 %v26398_v17  ;;  %24290 = vmatprep.mubr.f32.mxu0 %v25659_v31  ;;  %v20683_v31 = vsub.f32 %v20053_v47, %v26418_v1 }
 0xb8e   :  { %24284 = vmatmul.mubr.f32.vlgmr.msra.gmra.mxu1 %v26388_v30  ;;  %24291 = vmatmul.mubr.f32.vlgmr.msra.gmra.mxu0 %v25665_v29  ;;  %v20677_v29 = vand.u32 4294901760, %v20676_v22 }
 0xb8f   :  { %24293 = vmatprep.subr.mxu1 %v20177_v36  ;;  %24300 = vmatprep.subr.mxu0 %v20174_v49  ;;  %v20684_v30 = vand.u32 4294901760, %v20683_v31 }
 0xb90   :  { %24294 = vmatpush3.msra.mxu1 %v20177_v36  ;;  %24301 = vmatpush3.msra.mxu0 %v20174_v49 }
 0xb91   :  { %24295 = vmatprep.subr.mxu1 %v20184_v19  ;;  %24302 = vmatprep.subr.mxu0 %v20181_v54 }
 0xb92   :  { %24296 = vmatpush3.msra.mxu1 %v20184_v19  ;;  %24297 = vmatprep.mubr.f32.mxu1 %v25601_v8 }
 0xb93   :  { %24303 = vmatpush3.msra.mxu0 %v20181_v54  ;;  %24304 = vmatprep.mubr.f32.mxu0 %v25618_v53  ;;  %v20678_v53 = vsub.f32 %v20676_v22, %v20677_v29 }
 0xb94   :  { %24298 = vmatmul.mubr.f32.vlgmr.msra.gmra.mxu1 %v25607_v39  ;;  %24305 = vmatmul.mubr.f32.vlgmr.msra.gmra.mxu0 %v25623_v37  ;;  %v20685_v37 = vsub.f32 %v20683_v31, %v20684_v30 }
 0xb95   :  { %24307 = vmatprep.subr.mxu1 %v26395_v60  ;;  %24314 = vmatprep.subr.mxu0 %v20175_v62 }
 0xb96   :  { %24308 = vmatpush3.msra.mxu1 %v26395_v60  ;;  %24315 = vmatpush3.msra.mxu0 %v20175_v62 }
 0xb97   :  { %24309 = vmatprep.subr.mxu1 %v26398_v17  ;;  %24316 = vmatprep.subr.mxu0 %v20182_v44 }
 0xb98   :  { %24310 = vmatpush3.msra.mxu1 %v26398_v17  ;;  %24311 = vmatprep.mubr.f32.mxu1 %v25630_v3  ;;  %v20679_v3 = vand.u32 4294901760, %v20678_v53 }
 0xb99   :  { %24317 = vmatpush3.msra.mxu0 %v20182_v44  ;;  %24318 = vmatprep.mubr.f32.mxu0 %v25601_v8 }
 0xb9a   :  { %24312 = vmatmul.mubr.f32.vlgmr.msra.gmra.mxu1 %v25634_v11  ;;  %24319 = vmatmul.mubr.f32.vlgmr.msra.gmra.mxu0 %v25607_v39  ;;  %v20686_v11 = vand.u32 4294901760, %v20685_v37 }
 0xb9b   :  { %24321 = vmatprep.subr.mxu1 %v26395_v60  ;;  %24328 = vmatprep.subr.mxu0 %v26414_v12 }
 0xb9c   :  { %24322 = vmatpush3.msra.mxu1 %v26395_v60  ;;  %24329 = vmatpush3.msra.mxu0 %v26414_v12 }
 0xb9d   :  { %24323 = vmatprep.subr.mxu1 %v26398_v17  ;;  %24330 = vmatprep.subr.mxu0 %v26418_v1 }
 0xb9e   :  { %24324 = vmatpush3.msra.mxu1 %v26398_v17  ;;  %24325 = vmatprep.mubr.f32.mxu1 %v25601_v8  ;;  %v21061_v8 = vld [vmem:[#allocation7 + $0x60] sm:$0xff] }
 0xb9f   :  { %24331 = vmatpush3.msra.mxu0 %v26418_v1  ;;  %24332 = vmatprep.mubr.f32.mxu0 %v25719_v28 }
 0xba0   :  { %24326 = vmatmul.mubr.f32.vlgmr.msra.gmra.mxu1 %v25607_v39  ;;  %24333 = vmatmul.mubr.f32.vlgmr.msra.gmra.mxu0 %v25723_v40  ;;  %v21064_v39 = vsel %vm72_vm0, %v21061_v8, 0 }
 0xba1   :  { %24335 = vmatprep.subr.mxu1 %v20679_v3  ;;  %24342 = vmatprep.subr.mxu0 %v20676_v22 }
 0xba2   :  { %24336 = vmatpush3.msra.mxu1 %v20679_v3  ;;  %24343 = vmatpush3.msra.mxu0 %v20676_v22 }
 0xba3   :  { %24337 = vmatprep.subr.mxu1 %v20686_v11  ;;  %24344 = vmatprep.subr.mxu0 %v20683_v31 }
 0xba4   :  { %24338 = vmatpush3.msra.mxu1 %v20686_v11  ;;  %24339 = vmatprep.mubr.f32.mxu1 %v25669_v32 }
 0xba5   :  { %24345 = vmatpush3.msra.mxu0 %v20683_v31  ;;  %24346 = vmatprep.mubr.f32.mxu0 %v25684_v4  ;;  %v26465_v4 = vand.u32 4294901760, %v21064_v39 }
 0xba6   :  { %24340 = vmatmul.mubr.f32.vlgmr.msra.gmra.mxu1 %v25673_v15  ;;  %24347 = vmatmul.mubr.f32.vlgmr.msra.gmra.mxu0 %v25687_v18 }
 0xba7   :  { %24349 = vmatprep.subr.mxu1 %v26414_v12  ;;  %24356 = vmatprep.subr.mxu0 %v20677_v29  ;;  %v26468_v18 = vsub.f32 %v21064_v39, %v26465_v4 }
 0xba8   :  { %24350 = vmatpush3.msra.mxu1 %v26414_v12  ;;  %24357 = vmatpush3.msra.mxu0 %v20677_v29 }
 0xba9   :  { %24351 = vmatprep.subr.mxu1 %v26418_v1  ;;  %24358 = vmatprep.subr.mxu0 %v20684_v30 }
 0xbaa   :  { %24352 = vmatpush3.msra.mxu1 %v26418_v1  ;;  %24353 = vmatprep.mubr.f32.mxu1 %v25693_v51 }
 0xbab   :  { %24359 = vmatpush3.msra.mxu0 %v20684_v30  ;;  %24360 = vmatprep.mubr.f32.mxu0 %v25669_v32 }
 0xbac   :  { %24354 = vmatmul.mubr.f32.vlgmr.msra.gmra.mxu1 %v25699_v48  ;;  %24361 = vmatmul.mubr.f32.vlgmr.msra.gmra.mxu0 %v25673_v15 }
 0xbad   :  { %24363 = vmatprep.subr.mxu1 %v26414_v12  ;;  %24367 = vmatprep.mubr.f32.mxu1 %v25669_v32  ;;  %v21138_v32 = vand.u32 4294901760, %v26468_v18 }
 0xbae   :  { %24364 = vmatpush3.msra.mxu1 %v26414_v12 }
 0xbaf   :  { %24365 = vmatprep.subr.mxu1 %v26418_v1  ;;  %v21139_v51 = vsub.f32 %v26468_v18, %v21138_v32 }
 0xbb0   :  { %24366 = vmatpush3.msra.mxu1 %v26418_v1 }
 0xbb1   :  { %24368 = vmatmul.mubr.f32.vlgmr.msra.gmra.mxu1 %v25673_v15  ;;  %v21140_v48 = vand.u32 4294901760, %v21139_v51 }
 0xbb2   :  { %24381 = vmatprep.mubr.f32.mxu1 %v26465_v4 }
 0xbb3   :  { %24374 = vmatprep.mubr.f32.mxu0 %v21140_v48 }
 0xc3c   :  { %v24250_v28 = vpop.f32.mrf.mxu0 }
 0xc3e   :  { %v19622_v15 = vpop.f32.mrf.mxu0 }
 0xc41   :  { %v24264_v40 = vpop.f32.mrf.mxu0 }
 0xc43   :  { %v19795_v33 = vpop.f32.mrf.mxu0 }
 0xc44   :  { %v24257_v46 = vpop.f32.mrf.mxu1 }
 0xc45   :  { %v19720_v13 = vadd.f32 %v24257_v46, %v24250_v28 }
 0xc46   :  { %v19713_v27 = vpop.f32.mrf.mxu1 }
 0xc47   :  { %v19803_v57 = vadd.f32 %v24264_v40, %v19720_v13  ;;  %v19714_v6 = vadd.f32 %v19713_v27, %v19622_v15  ;;  %v24278_v50 = vpop.f32.mrf.mxu0 }
 0xc49   :  { %v19796_v55 = vadd.f32 %v19795_v33, %v19714_v6  ;;  %v24271_v59 = vpop.f32.mrf.mxu1  ;;  %v19962_v5 = vpop.f32.mrf.mxu0 }
 0xc4a   :  { %v19886_v10 = vadd.f32 %v24271_v59, %v19803_v57 }
 0xc4b   :  { %v19877_v9 = vpop.f32.mrf.mxu1 }
 0xc4c   :  { %v19969_v61 = vadd.f32 %v24278_v50, %v19886_v10  ;;  %v19878_v2 = vadd.f32 %v19877_v9, %v19796_v55 }
 0xc4e   :  { %v19963_v20 = vadd.f32 %v19962_v5, %v19878_v2  ;;  %v24285_v38 = vpop.f32.mrf.mxu1  ;;  %v24292_v14 = vpop.f32.mrf.mxu0 }
 0xc4f   :  { %v20048_v58 = vadd.f32 %v24285_v38, %v19969_v61 }
 0xc50   :  { %v20041_v26 = vpop.f32.mrf.mxu1  ;;  %v20130_v52 = vpop.f32.mrf.mxu0 }
 0xc51   :  { %v26476_v34 = vadd.f32 %v20048_v58, %v26382_v45  ;;  %v20042_v7 = vadd.f32 %v20041_v26, %v19963_v20 }
 0xc53   :  { %v26479_v24 = vadd.f32 %v20042_v7, %v26385_v43  ;;  %v21062_v43 = vld [vmem:[#allocation7 + $0x68] sm:$0xff] }
 0xc54   :  { %v24299_v16 = vpop.f32.mrf.mxu1  ;;  %v24306_v63 = vpop.f32.mrf.mxu0  ;;  %v21067_v31 = vsel %vm72_vm0, %v21062_v43, 0 }
 0xc55   :  { %v20228_v60 = vadd.f32 %v24299_v16, %v24292_v14  ;;  %v26482_v37 = vand.u32 4294901760, %v21067_v31 }
 0xc56   :  { %v20221_v41 = vpop.f32.mrf.mxu1  ;;  %v20303_v35 = vpop.f32.mrf.mxu0 }
 0xc57   :  { %v20311_v17 = vadd.f32 %v24306_v63, %v20228_v60  ;;  %v20222_v21 = vadd.f32 %v20221_v41, %v20130_v52  ;;  %v21147_v48 = vsub.f32 %v21067_v31, %v26482_v37 }
 0xc59   :  { %v20304_v0 = vadd.f32 %v20303_v35, %v20222_v21  ;;  %v21148_v13 = vand.u32 4294901760, %v21147_v48 }
 0xc5a   :  { %v24313_v49 = vpop.f32.mrf.mxu1  ;;  %v24320_v23 = vpop.f32.mrf.mxu0 }
 0xc5b   :  { %v20394_v54 = vadd.f32 %v24313_v49, %v20311_v17  ;;  %v21149_v10 = vsub.f32 %v21147_v48, %v21148_v13 }
 0xc5c   :  { %v20385_v62 = vpop.f32.mrf.mxu1  ;;  %v20470_v44 = vpop.f32.mrf.mxu0 }
 0xc5d   :  { %v20477_v42 = vadd.f32 %v24320_v23, %v20394_v54  ;;  %v20386_v45 = vadd.f32 %v20385_v62, %v20304_v0  ;;  %v21150_v38 = vand.u32 4294901760, %v21149_v10  ;;  %v24459_v10 = vld [vmem:[#allocation2 + $0x90] sm:$0xff] }
 0xc5f   :  { %v20471_v25 = vadd.f32 %v20470_v44, %v20386_v45 }
 0xc60   :  { %v24327_v56 = vpop.f32.mrf.mxu1  ;;  %v24334_v36 = vpop.f32.mrf.mxu0 }
 0xc61   :  { %v20556_v47 = vadd.f32 %v24327_v56, %v20477_v42 }
 0xc62   :  { %v20549_v19 = vpop.f32.mrf.mxu1  ;;  %v20632_v12 = vpop.f32.mrf.mxu0 }
 0xc63   :  { %v20643_v1 = vadd.f32 %v24334_v36, %v20556_v47  ;;  %v20550_v22 = vadd.f32 %v20549_v19, %v20471_v25 }
 0xc65   :  { %v20633_v29 = vadd.f32 %v20632_v12, %v20550_v22 }
 0xc66   :  { %v24341_v30 = vpop.f32.mrf.mxu1  ;;  %v24348_v53 = vpop.f32.mrf.mxu0 }
 0xc67   :  { %v20730_v3 = vadd.f32 %v24341_v30, %v20643_v1 }
 0xc68   :  { %v20723_v11 = vpop.f32.mrf.mxu1  ;;  %v20805_v8 = vpop.f32.mrf.mxu0 }
 0xc69   :  { %v20813_v39 = vadd.f32 %v24348_v53, %v20730_v3  ;;  %v20724_v51 = vadd.f32 %v20723_v11, %v20633_v29  ;;  %v24450_v11 = vld [vmem:[#allocation2 + $0x88] sm:$0xff] }
 0xc6b   :  { %v20806_v28 = vadd.f32 %v20805_v8, %v20724_v51 }
 0xc6c   :  { %v24355_v15 = vpop.f32.mrf.mxu1  ;;  %v24362_v40 = vpop.f32.mrf.mxu0 }
 0xc6d   :  { %v20896_v33 = vadd.f32 %v24355_v15, %v20813_v39  ;;  %v24451_v39 = vld [vmem:[#allocation2 + $0x98] sm:$0xff] }
 0xc6e   :  { %v20887_v46 = vpop.f32.mrf.mxu1  ;;  %v20972_v6 = vpop.f32.mrf.mxu0 }
 0xc6f   :  { %v20979_v27 = vadd.f32 %v24362_v40, %v20896_v33  ;;  %v20888_v57 = vadd.f32 %v20887_v46, %v20806_v28  ;;  %v24453_v28 = vld [vmem:[#allocation2 + $0xb8] sm:$0xff]  ;;  %v24454_v40 = vld [vmem:[#allocation2 + $0xc8] sm:$0xff] }
 0xc70   :  { %v24455_v46 = vld [vmem:[#allocation2 + $0xd8] sm:$0xff] }
 0xc71   :  { %v20973_v50 = vadd.f32 %v20972_v6, %v20888_v57  ;;  %v24369_v55 = vpop.f32.mrf.mxu1  ;;  %v24457_v6 = vld [vmem:[#allocation2 + $0xf8] sm:$0xff] }
 0xc72   :  { %v21058_v59 = vadd.f32 %v24369_v55, %v20979_v27  ;;  %v24456_v27 = vld [vmem:[#allocation2 + $0xe8] sm:$0xff]  ;;  %v24458_v55 = vld [vmem:[#allocation2 + $0x80] sm:$0xff] }
 0xc73   :  { %v21051_v5 = vpop.f32.mrf.mxu1 }
 0xc74   :  { %v21098_v9 = vand.u32 4294901760, %v21058_v59  ;;  %v21052_v61 = vadd.f32 %v21051_v5, %v20973_v50 }
 0xc76   :  { %v21186_v2 = vsub.f32 %v21058_v59, %v21098_v9  ;;  %v21101_v20 = vand.u32 4294901760, %v21052_v61  ;;  %24370 = vmatprep.subr.mxu0 %v21098_v9 }
 0xc77   :  { %24371 = vmatpush3.msra.mxu0 %v21098_v9 }
 0xc78   :  { %v21193_v14 = vsub.f32 %v21052_v61, %v21101_v20  ;;  %24372 = vmatprep.subr.mxu0 %v21101_v20  ;;  %v21187_v58 = vand.u32 4294901760, %v21186_v2 }
 0xc79   :  { %24373 = vmatpush3.msra.mxu0 %v21101_v20 }
 0xc7a   :  { %24384 = vmatprep.subr.mxu0 %v21186_v2  ;;  %24375 = vmatmul.mubr.f32.vlgmr.msra.gmra.mxu0 %v21150_v38  ;;  %v21188_v26 = vsub.f32 %v21186_v2, %v21187_v58  ;;  %v21194_v52 = vand.u32 4294901760, %v21193_v14  ;;  %v24462_v38 = vld [vmem:[#allocation2 + $0xc0] sm:$0xff] }
 0xc7b   :  { %24385 = vmatpush3.msra.mxu0 %v21186_v2  ;;  %24388 = vmatprep.mubr.f32.mxu0 %v26468_v18  ;;  %v24461_v2 = vld [vmem:[#allocation2 + $0xb0] sm:$0xff] }
 0xc7c   :  { %24386 = vmatprep.subr.mxu0 %v21193_v14  ;;  %v21189_v7 = vand.u32 4294901760, %v21188_v26  ;;  %v21195_v16 = vsub.f32 %v21193_v14, %v21194_v52 }
 0xc7d   :  { %24387 = vmatpush3.msra.mxu0 %v21193_v14 }
 0xc7e   :  { %24377 = vmatprep.subr.mxu1 %v21189_v7  ;;  %24398 = vmatprep.subr.mxu0 %v21187_v58  ;;  %v21196_v63 = vand.u32 4294901760, %v21195_v16  ;;  %v24465_v16 = vld [vmem:[#allocation2 + $0xf0] sm:$0xff] }
 0xc7f   :  { %24378 = vmatpush3.msra.mxu1 %v21189_v7  ;;  %24389 = vmatmul.mubr.f32.vlgmr.msra.gmra.mxu0 %v21147_v48  ;;  %v24452_v48 = vld [vmem:[#allocation2 + $0xa8] sm:$0xff] }
 0xc80   :  { %24399 = vmatpush3.msra.mxu0 %v21187_v58  ;;  %24379 = vmatprep.subr.mxu1 %v21196_v63  ;;  %v24463_v58 = vld [vmem:[#allocation2 + $0xd0] sm:$0xff] }
 0xc81   :  { %24400 = vmatprep.subr.mxu0 %v21194_v52  ;;  %24380 = vmatpush3.msra.mxu1 %v21196_v63 }
 0xc82   :  { %24401 = vmatpush3.msra.mxu0 %v21194_v52  ;;  %24382 = vmatmul.mubr.f32.vlgmr.msra.gmra.mxu1 %v26482_v37  ;;  %v24464_v52 = vld [vmem:[#allocation2 + $0xe0] sm:$0xff] }
 0xc83   :  { %24391 = vmatprep.subr.mxu1 %v21098_v9  ;;  %24395 = vmatprep.mubr.f32.mxu1 %v21138_v32 }
 0xc84   :  { %24392 = vmatpush3.msra.mxu1 %v21098_v9  ;;  %24402 = vmatprep.mubr.f32.mxu0 %v26465_v4 }
 0xc85   :  { %24393 = vmatprep.subr.mxu1 %v21101_v20  ;;  %24403 = vmatmul.mubr.f32.vlgmr.msra.gmra.mxu0 %v26482_v37 }
 0xc86   :  { %24394 = vmatpush3.msra.mxu1 %v21101_v20 }
 0xc87   :  { %24396 = vmatmul.mubr.f32.vlgmr.msra.gmra.mxu1 %v21148_v13  ;;  %24405 = vmatprep.subr.mxu1 %v21098_v9 }
 0xc88   :  { %24406 = vmatpush3.msra.mxu1 %v21098_v9  ;;  %24409 = vmatprep.mubr.f32.mxu1 %v26465_v4  ;;  %v24460_v9 = vld [vmem:[#allocation2 + $0xa0] sm:$0xff] }
 0xc89   :  { %24407 = vmatprep.subr.mxu1 %v21101_v20 }
 0xc8a   :  { %24408 = vmatpush3.msra.mxu1 %v21101_v20 }
 0xc8b   :  { %24410 = vmatmul.mubr.f32.vlgmr.msra.gmra.mxu1 %v26482_v37 }
 0xd3a   :  { %v24376_v60 = vpop.f32.mrf.mxu0 }
 0xd3c   :  { %v21142_v41 = vpop.f32.mrf.mxu0 }
 0xd3f   :  { %v24390_v18 = vpop.f32.mrf.mxu0 }
 0xd41   :  { %v21315_v17 = vpop.f32.mrf.mxu0 }
 0xd42   :  { %v24383_v32 = vpop.f32.mrf.mxu1 }
 0xd43   :  { %v21240_v35 = vadd.f32 %v24383_v32, %v24376_v60 }
 0xd44   :  { %v21233_v21 = vpop.f32.mrf.mxu1 }
 0xd45   :  { %v21323_v0 = vadd.f32 %v24390_v18, %v21240_v35  ;;  %v21234_v49 = vadd.f32 %v21233_v21, %v21142_v41  ;;  %v24404_v62 = vpop.f32.mrf.mxu0 }
 0xd47   :  { %v21316_v23 = vadd.f32 %v21315_v17, %v21234_v49  ;;  %v24397_v54 = vpop.f32.mrf.mxu1  ;;  %v21482_v25 = vpop.f32.mrf.mxu0 }
 0xd48   :  { %v21406_v44 = vadd.f32 %v24397_v54, %v21323_v0 }
 0xd49   :  { %v21397_v42 = vpop.f32.mrf.mxu1 }
 0xd4a   :  { %v21489_v45 = vadd.f32 %v24404_v62, %v21406_v44  ;;  %v21398_v4 = vadd.f32 %v21397_v42, %v21316_v23 }
 0xd4b   :  { %v24411_v56 = vpop.f32.mrf.mxu1 }
 0xd4c   :  { %v21483_v36 = vadd.f32 %v21482_v25, %v21398_v4  ;;  %v21568_v43 = vadd.f32 %v24411_v56, %v21489_v45 }
 0xd4d   :  { %v21561_v47 = vpop.f32.mrf.mxu1 }
 0xd4e   :  { %v21572_v19 = vadd.f32 %v21568_v43, %v26476_v34  ;;  %v21562_v12 = vadd.f32 %v21561_v47, %v21483_v36 }
 0xd50   :  { %v21639_v1 = vmul.f32 -1.442695, %v21572_v19  ;;  %v21571_v22 = vadd.f32 %v21562_v12, %v26479_v24 }
 0xd52   :  { %24426 = vpow2.f32 %v21639_v1  ;;  %v21638_v31 = vmul.f32 -1.442695, %v21571_v22 }
 0xd54   :  { %24428 = vpow2.f32 %v21638_v31 }
 0xd5f   :  { %v24427_v29 = vpop.eup %24426 }
 0xd60   :  { %v21580_v30 = vadd.f32 1.0, %v24427_v29 }
 0xd61   :  { %v24429_v53 = vpop.eup %24428 }
 0xd62   :  { %24430 = vrcp.f32 %v21580_v30  ;;  %v21579_v37 = vadd.f32 1.0, %v24429_v53 }
 0xd64   :  { %24432 = vrcp.f32 %v21579_v37 }
 0xd6f   :  { %v24431_v3 = vpop.eup %24430 }
 0xd70   :  { %v21586_v8 = vmul.f32 %v24450_v11, %v24431_v3  ;;  %v21588_v51 = vmul.f32 %v24451_v39, %v24431_v3  ;;  %v21590_v34 = vmul.f32 %v24452_v48, %v24431_v3  ;;  %v21592_v15 = vmul.f32 %v24453_v28, %v24431_v3 }
 0xd71   :  { %v24433_v24 = vpop.eup %24432  ;;  %v21594_v33 = vmul.f32 %v24454_v40, %v24431_v3  ;;  %v21596_v13 = vmul.f32 %v24455_v46, %v24431_v3  ;;  %v21598_v57 = vmul.f32 %v24456_v27, %v24431_v3  ;;  %v21600_v50 = vmul.f32 %v24457_v6, %v24431_v3 }
 0xd72   :  { %21603 = vst.msk [vmem:[#allocation8 + $0x88] sm:$0xff] %vm72_vm0, %v21586_v8  ;;  %21605 = vst.msk [vmem:[#allocation8 + $0x98] sm:$0xff] %vm72_vm0, %v21588_v51  ;;  %v21585_v59 = vmul.f32 %v24458_v55, %v24433_v24  ;;  %v21587_v5 = vmul.f32 %v24459_v10, %v24433_v24  ;;  %v21589_v61 = vmul.f32 %v24460_v9, %v24433_v24 }
 0xd73   :  { %21607 = vst.msk [vmem:[#allocation8 + $0xa8] sm:$0xff] %vm72_vm0, %v21590_v34  ;;  %21609 = vst.msk [vmem:[#allocation8 + $0xb8] sm:$0xff] %vm72_vm0, %v21592_v15  ;;  %v21591_v20 = vmul.f32 %v24461_v2, %v24433_v24  ;;  %v21593_v14 = vmul.f32 %v24462_v38, %v24433_v24  ;;  %v21595_v26 = vmul.f32 %v24463_v58, %v24433_v24 }
 0xd74   :  { %21611 = vst.msk [vmem:[#allocation8 + $0xc8] sm:$0xff] %vm72_vm0, %v21594_v33  ;;  %21613 = vst.msk [vmem:[#allocation8 + $0xd8] sm:$0xff] %vm72_vm0, %v21596_v13  ;;  %v21597_v7 = vmul.f32 %v24464_v52, %v24433_v24  ;;  %v21599_v63 = vmul.f32 %v24465_v16, %v24433_v24 }
 0xd75   :  { %21615 = vst.msk [vmem:[#allocation8 + $0xe8] sm:$0xff] %vm72_vm0, %v21598_v57  ;;  %21617 = vst.msk [vmem:[#allocation8 + $0xf8] sm:$0xff] %vm72_vm0, %v21600_v50 }
 0xd76   :  { %21602 = vst.msk [vmem:[#allocation8 + $0x80] sm:$0xff] %vm72_vm0, %v21585_v59  ;;  %21604 = vst.msk [vmem:[#allocation8 + $0x90] sm:$0xff] %vm72_vm0, %v21587_v5 }
 0xd77   :  { %21606 = vst.msk [vmem:[#allocation8 + $0xa0] sm:$0xff] %vm72_vm0, %v21589_v61  ;;  %21608 = vst.msk [vmem:[#allocation8 + $0xb0] sm:$0xff] %vm72_vm0, %v21591_v20 }
 0xd78   :  { %21610 = vst.msk [vmem:[#allocation8 + $0xc0] sm:$0xff] %vm72_vm0, %v21593_v14  ;;  %21612 = vst.msk [vmem:[#allocation8 + $0xd0] sm:$0xff] %vm72_vm0, %v21595_v26 }
 0xd79   :  { %21614 = vst.msk [vmem:[#allocation8 + $0xe0] sm:$0xff] %vm72_vm0, %v21597_v7  ;;  %21616 = vst.msk [vmem:[#allocation8 + $0xf0] sm:$0xff] %vm72_vm0, %v21599_v63 }
 0xd7a   :  { %24537 = shalt.err (!%p24534_p5)
}
 0xd7b   :  { %21629 = dma.vmem_to_hbm [thread:$0]  %s21624_s2, 4096, %s26523_s3, [#allocation4], %s24554_s17, %s24554_s17, %s24555_s18  }
 0xd7c   :  { %24550 = dma.done.wait [#allocation4], 4096  }
 0xd7d   :  { %24551 = vsyncadd [#allocation4], 4294963200 }
 0xd7e   :  { %21633 = vsyncpa [#allocation3], 1 }
 0xd7f   :  { %21634 = vsyncpa [#allocation6], 1 }
 0xd80   :  { %21635 = vsyncpa [#allocation4], 1 }

</bundles_post_ra>
